<compile_context>
chip_gen: v7x
topology: tpu7x:2x2x1
jax: 0.10.0
libtpu: 0.0.40
codegen_flags: <defaults>
</compile_context>

<pallas_src>
import functools

import jax
import jax.numpy as jnp
from jax.experimental import pallas as pl
from jax.experimental.pallas import tpu as pltpu

# ---------------- model configuration (small, consistent with the module) ---
IMAGE_SIZE = 16
PATCH_SIZE = 4
CHANNELS = 4
DIM = 32
DEPTH = 2
HEADS = 8
MLP_DIM = 64
Z_DIM = 8

NUM_PATCHES = (IMAGE_SIZE // PATCH_SIZE) ** 2     # 16
PATCH_DIM = CHANNELS * PATCH_SIZE ** 2            # 64
SEQ = NUM_PATCHES + 1                             # 17 (cls token + patches)
SEQ_PAD = 24                                      # padded to a multiple of 8 sublanes
HEAD_DIM = DIM // HEADS                           # 4
LN_EPS = 1e-5
SCALE = DIM ** (-0.5)                             # torch code scales by dim**-0.5
OUT_PAD = 128                                     # lane-dense head output width
QKV_PAD = 128                                     # qkv matmul output padded to 128 lanes
SLAB_W = 128                                      # packed-weight slab width
HS = HEADS * SEQ_PAD                              # 192: all heads' keys side by side
B_TILE_MAX = 64                                   # images per grid step (sweep 64/128)


# ---------------- packed-weight slab layout (static, shared wrapper/kernel) --
def _build_layout():
    layout = {}
    row = [0]

    def add(name, rows, cols):
        layout[name] = (row[0], rows, cols)
        row[0] += ((rows + 15) // 16) * 16        # 16-row aligned (bf16 sublane packing)

    add("pw", PATCH_DIM, DIM)                     # patch_to_embedding weight
    add("addrow", SEQ_PAD, DIM)                   # fused cls/pos/patch-bias table
    add("amask", HS, DIM)                         # block-diag + key-validity mask
    for l in range(DEPTH):
        add(f"qkvw{l}", DIM, QKV_PAD)             # qkv weight, zero-padded to 128 lanes
        add(f"ow{l}", DIM, DIM)
        add(f"ffw1{l}", DIM, MLP_DIM)
        add(f"ffw2{l}", MLP_DIM, DIM)
        add(f"ln1g{l}", 1, DIM)
        add(f"ln1b{l}", 1, DIM)
        add(f"ln2g{l}", 1, DIM)
        add(f"ln2b{l}", 1, DIM)
        add(f"ob{l}", 1, DIM)
        add(f"ffb1{l}", 1, MLP_DIM)
        add(f"ffb2{l}", 1, DIM)
    add("hw1", DIM, MLP_DIM)
    add("hb1", 1, MLP_DIM)
    add("hw2", MLP_DIM, OUT_PAD)                  # padded to 128 output lanes
    add("hb2", 1, OUT_PAD)
    return layout, row[0]


_LAYOUT, _SLAB_ROWS = _build_layout()


# ---------------- in-kernel helpers -----------------------------------------
def _wget(w_ref, name):
    r, nr, nc = _LAYOUT[name]
    return w_ref[pl.ds(r, nr), pl.ds(0, nc)]      # bf16 slice


def _layer_norm(x, gamma, beta):
    mean = jnp.mean(x, axis=-1, keepdims=True)
    var = jnp.mean((x - mean) ** 2, axis=-1, keepdims=True)   # biased, like torch
    return (x - mean) * jax.lax.rsqrt(var + LN_EPS) * gamma + beta


def _gelu(x):
    # exact (erf-based) GELU, matching nn.GELU() default
    return 0.5 * x * (1.0 + jax.lax.erf(x * (1.0 / jnp.sqrt(jnp.float32(2.0)))))


# ---------------- the Pallas kernel (grid over batch tiles) -------------------
def vit_kernel(x_ref, w_ref, out_ref, *, b_tile):
    bs = b_tile * SEQ_PAD
    f32 = jnp.float32
    bf16 = jnp.bfloat16

    def wf(name):                                  # f32 view (LN params, biases, masks)
        return _wget(w_ref, name).astype(f32)

    # patch embedding; x already has the cls slot (row 0) and tail rows zeroed,
    # so tokens = x @ pw + addrow gives cls+pos in row 0, emb+pb+pos in 1..16,
    # and exactly 0 in the padded rows (before layer 0).
    x = x_ref[...]                                                # (bs, 64) bf16
    emb = jnp.dot(x, _wget(w_ref, "pw"), preferred_element_type=f32)
    h = (emb.reshape(b_tile, SEQ_PAD, DIM) + wf("addrow")[None]).reshape(bs, DIM)

    # amask[h*SEQ_PAD + j, h*HEAD_DIM + d] = 1 iff same head AND j is a real key.
    amask = wf("amask")                                           # (192, 32)

    for l in range(DEPTH):
        # ---- Residual(PreNorm(Attention)) ----
        xn = _layer_norm(h, wf(f"ln1g{l}"), wf(f"ln1b{l}"))
        qkv = jnp.dot(xn.astype(bf16), _wget(w_ref, f"qkvw{l}"),
                      preferred_element_type=f32)                 # (bs, 128) f32
        qkv3 = qkv.reshape(b_tile, SEQ_PAD, QKV_PAD)
        q = qkv3[..., 0:DIM]                                      # (b, 24, 32)
        k = qkv3[..., DIM:2 * DIM]
        v = qkv3[..., 2 * DIM:3 * DIM]

        # block-diagonal K/V: row h*24+j, cols h*4..h*4+3 hold head h's key/value j;
        # everything else (other heads' cols, padded-key rows) is exactly 0.
        k_blk = jnp.concatenate([k] * HEADS, axis=1) * amask      # (b, 192, 32)
        v_blk = jnp.concatenate([v] * HEADS, axis=1) * amask      # (b, 192, 32)

        # all heads' scores in one batched pass: lane h*24+j = head h, key j.
        dots = jnp.einsum('bik,bjk->bij', q, k_blk,
                          preferred_element_type=f32) * SCALE     # (b, 24, 192)
        # per-row max: constant within every head group -> softmax stays exact.
        dots = dots - jnp.max(dots, axis=-1, keepdims=True)
        e = jnp.exp(dots)

        # unnormalized output already lands in (h d) lane order -> (b, 24, 32)
        o_un = jnp.einsum('bij,bjc->bic', e, v_blk,
                          preferred_element_type=f32)
        # per-head denominators (real keys only), repeated over each head's 4 lanes.
        denom = jnp.dot(e.reshape(bs, HS), amask,
                        preferred_element_type=f32)               # (bs, 32)
        o = o_un.reshape(bs, DIM) * pl.reciprocal(denom, approx=True)

        h = h + jnp.dot(o.astype(bf16), _wget(w_ref, f"ow{l}"),
                        preferred_element_type=f32) + wf(f"ob{l}")

        # ---- Residual(PreNorm(FeedForward)) ----
        xn = _layer_norm(h, wf(f"ln2g{l}"), wf(f"ln2b{l}"))
        hid = jnp.dot(xn.astype(bf16), _wget(w_ref, f"ffw1{l}"),
                      preferred_element_type=f32) + wf(f"ffb1{l}")
        hid = _gelu(hid)
        ffo = jnp.dot(hid.astype(bf16), _wget(w_ref, f"ffw2{l}"),
                      preferred_element_type=f32) + wf(f"ffb2{l}")
        h = h + ffo

    # ---- cls token -> MLP head (Linear -> ReLU -> Linear), lane-dense store --
    cls_tok = h.reshape(b_tile, SEQ_PAD, DIM)[:, 0:1, :].reshape(b_tile, DIM)
    z = jnp.dot(cls_tok.astype(bf16), _wget(w_ref, "hw1"),
                preferred_element_type=f32) + wf("hb1")
    z = jnp.maximum(z, 0.0)
    out_ref[...] = jnp.dot(z.astype(bf16), _wget(w_ref, "hw2"),
                           preferred_element_type=f32) + wf("hb2")


# ---------------- wrapper -----------------------------------------------------
def _to_patches(img):
    # 'b c (h p1) (w p2) -> b (h w) (p1 p2 c)'
    B, C, H, W = img.shape
    p = PATCH_SIZE
    hn, wn = H // p, W // p
    x = img.reshape(B, C, hn, p, wn, p)
    x = jnp.transpose(x, (0, 2, 4, 3, 5, 1))          # b h w p1 p2 c
    return x.reshape(B, hn * wn, p * p * C)


def _to_patches_padded(img):
    # rows: [cls slot (zero), 16 patches, 7 zero pad rows] -> (B, SEQ_PAD, PATCH_DIM)
    x = _to_patches(img)
    return jnp.pad(x, ((0, 0), (1, SEQ_PAD - SEQ), (0, 0)))


def _pack_weights(params):
    (pw, pb, cls, pos, ln1g, ln1b, qkvw, ow, ob, ln2g, ln2b,
     ffw1, ffb1, ffw2, ffb2, hw1, hb1, hw2, hb2) = params

    slab = jnp.zeros((_SLAB_ROWS, SLAB_W), jnp.float32)

    def put(slab, name, val):
        r, nr, nc = _LAYOUT[name]
        val = jnp.asarray(val, jnp.float32).reshape(nr, nc)
        return jax.lax.dynamic_update_slice(slab, val, (r, 0))

    # fused per-row additive table: row0 = cls + pos0, rows 1..16 = pb + pos, tail = 0
    addrow = jnp.zeros((SEQ_PAD, DIM), jnp.float32)
    addrow = addrow.at[0:1, :].set(cls + pos[0:1])
    addrow = addrow.at[1:SEQ, :].set(pb + pos[1:SEQ])

    # block-diag + key-validity mask (192, 32)
    r = jnp.arange(HS)
    c = jnp.arange(DIM)
    amask = ((r[:, None] // SEQ_PAD) == (c[None, :] // HEAD_DIM)) & \
            ((r[:, None] % SEQ_PAD) < SEQ)
    amask = amask.astype(jnp.float32)

    slab = put(slab, "pw", pw)
    slab = put(slab, "addrow", addrow)
    slab = put(slab, "amask", amask)
    for l in range(DEPTH):
        qkvp = jnp.zeros((DIM, QKV_PAD), jnp.float32).at[:, :3 * DIM].set(qkvw[l])
        slab = put(slab, f"qkvw{l}", qkvp)
        slab = put(slab, f"ow{l}", ow[l])
        slab = put(slab, f"ffw1{l}", ffw1[l])
        slab = put(slab, f"ffw2{l}", ffw2[l])
        slab = put(slab, f"ln1g{l}", ln1g[l])
        slab = put(slab, f"ln1b{l}", ln1b[l])
        slab = put(slab, f"ln2g{l}", ln2g[l])
        slab = put(slab, f"ln2b{l}", ln2b[l])
        slab = put(slab, f"ob{l}", ob[l])
        slab = put(slab, f"ffb1{l}", ffb1[l])
        slab = put(slab, f"ffb2{l}", ffb2[l])
    slab = put(slab, "hw1", hw1)
    slab = put(slab, "hb1", hb1)
    hw2p = jnp.zeros((MLP_DIM, OUT_PAD), jnp.float32).at[:, :Z_DIM].set(hw2)
    hb2p = jnp.zeros((1, OUT_PAD), jnp.float32).at[:, :Z_DIM].set(hb2)
    slab = put(slab, "hw2", hw2p)
    slab = put(slab, "hb2", hb2p)
    return slab.astype(jnp.bfloat16)


def vit_forward(img, params):
    B = img.shape[0]
    # Batch-tile policy: small B -> one maximal tile; larger B -> at least two
    # grid steps (v7x has 2 TCs; dimension_semantics=('parallel',) shards them)
    # with an 8-aligned tile, capped at B_TILE_MAX.
    if B <= 32:
        b_tile = B
    else:
        half = -(-B // 2)
        b_tile = min(B_TILE_MAX, ((half + 7) // 8) * 8)
    n_tiles = pl.cdiv(B, b_tile)
    b_padded = n_tiles * b_tile

    x = _to_patches_padded(img)                       # (B, SEQ_PAD, PATCH_DIM) f32
    if b_padded != B:
        x = jnp.pad(x, ((0, b_padded - B), (0, 0), (0, 0)))
    x = x.reshape(b_padded * SEQ_PAD, PATCH_DIM).astype(jnp.bfloat16)
    slab = _pack_weights(params)                      # bf16 slab

    out = pl.pallas_call(
        functools.partial(vit_kernel, b_tile=b_tile),
        out_shape=jax.ShapeDtypeStruct((b_padded, OUT_PAD), jnp.float32),
        grid_spec=pltpu.PrefetchScalarGridSpec(
            num_scalar_prefetch=0,
            grid=(n_tiles,),
            in_specs=[
                pl.BlockSpec((b_tile * SEQ_PAD, PATCH_DIM), lambda b: (b, 0)),
                pl.BlockSpec((_SLAB_ROWS, SLAB_W), lambda b: (0, 0)),
            ],
            out_specs=pl.BlockSpec((b_tile, OUT_PAD), lambda b: (b, 0)),
        ),
        compiler_params=pltpu.CompilerParams(
            dimension_semantics=("parallel",),
            vmem_limit_bytes=32 * 1024 * 1024),       # v5e scoped default is only 16 MiB
    )(x, slab)
    return out[:B, :Z_DIM]                            # (B, Z_DIM)


# ---------------- deterministic parameter init --------------------------------
def init_params(key):
    keys = iter(jax.random.split(key, 32))

    def nrm(shape, s=0.02):
        return jax.random.normal(next(keys), shape, jnp.float32) * s

    return (
        nrm((PATCH_DIM, DIM)),                                  # patch_to_embedding W
        nrm((1, DIM)),                                          # patch_to_embedding b
        jax.random.normal(next(keys), (1, DIM), jnp.float32),   # cls_token
        jax.random.normal(next(keys), (SEQ, DIM), jnp.float32), # pos_embedding
        jnp.ones((DEPTH, DIM), jnp.float32),                    # ln1 gamma
        jnp.zeros((DEPTH, DIM), jnp.float32),                   # ln1 beta
        nrm((DEPTH, DIM, 3 * DIM)),                             # to_qkv W (bias=False)
        nrm((DEPTH, DIM, DIM)),                                 # to_out W
        nrm((DEPTH, DIM)),                                      # to_out b
        jnp.ones((DEPTH, DIM), jnp.float32),                    # ln2 gamma
        jnp.zeros((DEPTH, DIM), jnp.float32),                   # ln2 beta
        nrm((DEPTH, DIM, MLP_DIM)),                             # ff W1
        nrm((DEPTH, MLP_DIM)),                                  # ff b1
        nrm((DEPTH, MLP_DIM, DIM)),                             # ff W2
        nrm((DEPTH, DIM)),                                      # ff b2
        nrm((DIM, MLP_DIM)),                                    # head W1
        nrm((1, MLP_DIM)),                                      # head b1
        nrm((MLP_DIM, Z_DIM)),                                  # head W2
        nrm((1, Z_DIM)),                                        # head b2
    )


# ---------------- pure-JAX reference (mirrors the PyTorch forward) -------------
def vit_reference(img, params):
    (pw, pb, cls, pos, ln1g, ln1b, qkvw, ow, ob,
     ln2g, ln2b, ffw1, ffb1, ffw2, ffb2, hw1, hb1, hw2, hb2) = params
    B = img.shape[0]
    x = _to_patches(img) @ pw + pb
    cls_t = jnp.broadcast_to(cls[None], (B, 1, DIM))
    h = jnp.concatenate([cls_t, x], axis=1) + pos[None]

    def layer_norm(y, g, b):
        m = y.mean(-1, keepdims=True)
        v = ((y - m) ** 2).mean(-1, keepdims=True)
        return (y - m) / jnp.sqrt(v + LN_EPS) * g + b

    for l in range(DEPTH):
        xn = layer_norm(h, ln1g[l], ln1b[l])
        qkv = xn @ qkvw[l]
        q, k, v = qkv[..., :DIM], qkv[..., DIM:2 * DIM], qkv[..., 2 * DIM:]
        q = q.reshape(B, SEQ, HEADS, HEAD_DIM).transpose(0, 2, 1, 3)
        k = k.reshape(B, SEQ, HEADS, HEAD_DIM).transpose(0, 2, 1, 3)
        v = v.reshape(B, SEQ, HEADS, HEAD_DIM).transpose(0, 2, 1, 3)
        dots = jnp.einsum('bhid,bhjd->bhij', q, k) * SCALE
        attn = jax.nn.softmax(dots, axis=-1)
        o = jnp.einsum('bhij,bhjd->bhid', attn, v)
        o = o.transpose(0, 2, 1, 3).reshape(B, SEQ, DIM)
        h = h + (o @ ow[l] + ob[l])
        xn = layer_norm(h, ln2g[l], ln2b[l])
        hid = xn @ ffw1[l] + ffb1[l]
        hid = 0.5 * hid * (1.0 + jax.lax.erf(hid / jnp.sqrt(2.0)))
        h = h + (hid @ ffw2[l] + ffb2[l])

    c = h[:, 0]
    z = jnp.maximum(c @ hw1 + hb1, 0.0)
    return z @ hw2 + hb2


if __name__ == "__main__":
    key = jax.random.PRNGKey(0)
    pkey, ikey = jax.random.split(key)
    params = init_params(pkey)
    img = jax.random.normal(ikey, (2, CHANNELS, IMAGE_SIZE, IMAGE_SIZE), jnp.float32)

    out = jax.jit(vit_forward)(img, params)
    out = jax.block_until_ready(out)
    assert out.shape == (2, Z_DIM)

    ref = vit_reference(img, params)
    assert jnp.allclose(out, ref, atol=1e-2, rtol=1e-2), (out, ref)
    print("KERNEL_OK")
</pallas_src>

<mosaic_0001>
module attributes {stable_mosaic.version = 11 : i64} {
  func.func @vit_kernel(%arg0: i32, %arg1: memref<48x64xbf16, #tpu.memory_space<vmem>>, %arg2: memref<960x128xbf16, #tpu.memory_space<vmem>>, %arg3: memref<2x128xf32, #tpu.memory_space<vmem>>) attributes {dimension_semantics = [#tpu.dimension_semantics<parallel>], iteration_bounds = array<i64: 1>, scalar_prefetch = 0 : i64, scratch_operands = 0 : i64, tpu.core_type = #tpu.core_type<tc>, window_params = [{transform_indices = @transform_0, window_bounds = array<i64: 48, 64>}, {pipeline_mode = #tpu.pipeline_mode<synchronous>, transform_indices = @transform_1, window_bounds = array<i64: 960, 128>}, {transform_indices = @transform_2, window_bounds = array<i64: 2, 128>}]} {
    %c0 = arith.constant 0 : index
    %c0_0 = arith.constant 0 : index
    %0 = vector.load %arg1[%c0, %c0_0] : memref<48x64xbf16, #tpu.memory_space<vmem>>, vector<48x64xbf16>
    %c0_1 = arith.constant 0 : index
    %c0_2 = arith.constant 0 : index
    %1 = vector.load %arg2[%c0_1, %c0_2] : memref<960x128xbf16, #tpu.memory_space<vmem>>, vector<64x32xbf16>
    %cst = arith.constant dense<0.000000e+00> : vector<48x32xf32>
    %2 = tpu.matmul %0, %1, %cst {dimension_numbers = #tpu.dot_dimension_numbers<[1], [0], [0], [1], [0, 0, 1, 1], [], []>} : vector<48x64xbf16>, vector<64x32xbf16>, vector<48x32xf32> -> vector<48x32xf32>
    %3 = vector.shape_cast %2 : vector<48x32xf32> to vector<2x24x32xf32>
    %c64 = arith.constant 64 : index
    %c0_3 = arith.constant 0 : index
    %4 = vector.load %arg2[%c64, %c0_3] : memref<960x128xbf16, #tpu.memory_space<vmem>>, vector<24x32xbf16>
    %5 = arith.extf %4 : vector<24x32xbf16> to vector<24x32xf32>
    %6 = vector.shape_cast %5 : vector<24x32xf32> to vector<1x24x32xf32>
    %7 = vector.broadcast %6 : vector<1x24x32xf32> to vector<2x24x32xf32>
    %8 = arith.addf %3, %7 : vector<2x24x32xf32>
    %9 = vector.shape_cast %8 : vector<2x24x32xf32> to vector<48x32xf32>
    %c96 = arith.constant 96 : index
    %c0_4 = arith.constant 0 : index
    %10 = vector.load %arg2[%c96, %c0_4] : memref<960x128xbf16, #tpu.memory_space<vmem>>, vector<192x32xbf16>
    %11 = arith.extf %10 : vector<192x32xbf16> to vector<192x32xf32>
    %c448 = arith.constant 448 : index
    %c0_5 = arith.constant 0 : index
    %12 = vector.load %arg2[%c448, %c0_5] : memref<960x128xbf16, #tpu.memory_space<vmem>>, vector<1x32xbf16>
    %13 = arith.extf %12 : vector<1x32xbf16> to vector<1x32xf32>
    %c464 = arith.constant 464 : index
    %c0_6 = arith.constant 0 : index
    %14 = vector.load %arg2[%c464, %c0_6] : memref<960x128xbf16, #tpu.memory_space<vmem>>, vector<1x32xbf16>
    %15 = arith.extf %14 : vector<1x32xbf16> to vector<1x32xf32>
    %cst_7 = arith.constant dense<0.000000e+00> : vector<48xf32>
    %16 = vector.multi_reduction <add>, %9, %cst_7 [1] : vector<48x32xf32> to vector<48xf32>
    %17 = vector.shape_cast %16 : vector<48xf32> to vector<48x1xf32>
    %cst_8 = arith.constant 3.200000e+01 : f32
    %18 = vector.broadcast %cst_8 : f32 to vector<48x1xf32>
    %19 = arith.divf %17, %18 : vector<48x1xf32>
    %20 = vector.broadcast %19 : vector<48x1xf32> to vector<48x32xf32>
    %21 = arith.subf %9, %20 : vector<48x32xf32>
    %22 = arith.mulf %21, %21 : vector<48x32xf32>
    %cst_9 = arith.constant dense<0.000000e+00> : vector<48xf32>
    %23 = vector.multi_reduction <add>, %22, %cst_9 [1] : vector<48x32xf32> to vector<48xf32>
    %24 = vector.shape_cast %23 : vector<48xf32> to vector<48x1xf32>
    %cst_10 = arith.constant 3.200000e+01 : f32
    %25 = vector.broadcast %cst_10 : f32 to vector<48x1xf32>
    %26 = arith.divf %24, %25 : vector<48x1xf32>
    %27 = vector.broadcast %19 : vector<48x1xf32> to vector<48x32xf32>
    %28 = arith.subf %9, %27 : vector<48x32xf32>
    %cst_11 = arith.constant 9.99999974E-6 : f32
    %29 = vector.broadcast %cst_11 : f32 to vector<48x1xf32>
    %30 = arith.addf %26, %29 : vector<48x1xf32>
    %31 = math.rsqrt %30 : vector<48x1xf32>
    %32 = vector.broadcast %31 : vector<48x1xf32> to vector<48x32xf32>
    %33 = arith.mulf %28, %32 : vector<48x32xf32>
    %34 = vector.broadcast %13 : vector<1x32xf32> to vector<48x32xf32>
    %35 = arith.mulf %33, %34 : vector<48x32xf32>
    %36 = vector.broadcast %15 : vector<1x32xf32> to vector<48x32xf32>
    %37 = arith.addf %35, %36 : vector<48x32xf32>
    %38 = arith.truncf %37 : vector<48x32xf32> to vector<48x32xbf16>
    %c288 = arith.constant 288 : index
    %c0_12 = arith.constant 0 : index
    %39 = vector.load %arg2[%c288, %c0_12] : memref<960x128xbf16, #tpu.memory_space<vmem>>, vector<32x128xbf16>
    %cst_13 = arith.constant dense<0.000000e+00> : vector<48x128xf32>
    %40 = tpu.matmul %38, %39, %cst_13 {dimension_numbers = #tpu.dot_dimension_numbers<[1], [0], [0], [1], [0, 0, 1, 1], [], []>} : vector<48x32xbf16>, vector<32x128xbf16>, vector<48x128xf32> -> vector<48x128xf32>
    %41 = vector.shape_cast %40 : vector<48x128xf32> to vector<2x24x128xf32>
    %42 = vector.extract_strided_slice %41 {offsets = [0, 0, 0], sizes = [2, 24, 32], strides = [1, 1, 1]} : vector<2x24x128xf32> to vector<2x24x32xf32>
    %43 = vector.extract_strided_slice %41 {offsets = [0, 0, 32], sizes = [2, 24, 32], strides = [1, 1, 1]} : vector<2x24x128xf32> to vector<2x24x32xf32>
    %44 = vector.extract_strided_slice %41 {offsets = [0, 0, 64], sizes = [2, 24, 32], strides = [1, 1, 1]} : vector<2x24x128xf32> to vector<2x24x32xf32>
    %45 = tpu.concatenate %43, %43, %43, %43, %43, %43, %43, %43 in 1 : vector<2x24x32xf32>, vector<2x24x32xf32>, vector<2x24x32xf32>, vector<2x24x32xf32>, vector<2x24x32xf32>, vector<2x24x32xf32>, vector<2x24x32xf32>, vector<2x24x32xf32> -> vector<2x192x32xf32>
    %46 = vector.shape_cast %11 : vector<192x32xf32> to vector<1x192x32xf32>
    %47 = vector.broadcast %46 : vector<1x192x32xf32> to vector<2x192x32xf32>
    %48 = arith.mulf %45, %47 : vector<2x192x32xf32>
    %49 = tpu.concatenate %44, %44, %44, %44, %44, %44, %44, %44 in 1 : vector<2x24x32xf32>, vector<2x24x32xf32>, vector<2x24x32xf32>, vector<2x24x32xf32>, vector<2x24x32xf32>, vector<2x24x32xf32>, vector<2x24x32xf32>, vector<2x24x32xf32> -> vector<2x192x32xf32>
    %50 = vector.shape_cast %11 : vector<192x32xf32> to vector<1x192x32xf32>
    %51 = vector.broadcast %50 : vector<1x192x32xf32> to vector<2x192x32xf32>
    %52 = arith.mulf %49, %51 : vector<2x192x32xf32>
    "tpu.trace_start"() <{level = 10 : i32, message = "bik,bjk->bij"}> : () -> ()
    %cst_14 = arith.constant dense<0.000000e+00> : vector<2x24x192xf32>
    %53 = tpu.matmul %42, %48, %cst_14 {dimension_numbers = #tpu.dot_dimension_numbers<[2], [2], [1], [1], [0, 0, 0, 1, 1, 1], [0], [0]>} : vector<2x24x32xf32>, vector<2x192x32xf32>, vector<2x24x192xf32> -> vector<2x24x192xf32>
    "tpu.trace_stop"() : () -> ()
    %cst_15 = arith.constant 0.176776692 : f32
    %54 = vector.broadcast %cst_15 : f32 to vector<2x24x192xf32>
    %55 = arith.mulf %53, %54 : vector<2x24x192xf32>
    %cst_16 = arith.constant dense<0xFF800000> : vector<2x24xf32>
    %56 = vector.multi_reduction <maximumf>, %55, %cst_16 [2] : vector<2x24x192xf32> to vector<2x24xf32>
    %57 = vector.shape_cast %56 : vector<2x24xf32> to vector<2x24x1xf32>
    %58 = vector.broadcast %57 : vector<2x24x1xf32> to vector<2x24x192xf32>
    %59 = arith.subf %55, %58 : vector<2x24x192xf32>
    %60 = math.exp %59 : vector<2x24x192xf32>
    "tpu.trace_start"() <{level = 10 : i32, message = "bij,bjc->bic"}> : () -> ()
    %cst_17 = arith.constant dense<0.000000e+00> : vector<2x24x32xf32>
    %61 = tpu.matmul %60, %52, %cst_17 {dimension_numbers = #tpu.dot_dimension_numbers<[2], [1], [1], [2], [0, 0, 0, 1, 1, 2], [0], [0]>} : vector<2x24x192xf32>, vector<2x192x32xf32>, vector<2x24x32xf32> -> vector<2x24x32xf32>
    "tpu.trace_stop"() : () -> ()
    %62 = vector.shape_cast %60 : vector<2x24x192xf32> to vector<48x192xf32>
    %cst_18 = arith.constant dense<0.000000e+00> : vector<48x32xf32>
    %63 = tpu.matmul %62, %11, %cst_18 {dimension_numbers = #tpu.dot_dimension_numbers<[1], [0], [0], [1], [0, 0, 1, 1], [], []>} : vector<48x192xf32>, vector<192x32xf32>, vector<48x32xf32> -> vector<48x32xf32>
    %64 = vector.shape_cast %61 : vector<2x24x32xf32> to vector<48x32xf32>
    %65 = tpu.reciprocal %63 {approx = true} : vector<48x32xf32> -> vector<48x32xf32>
    %66 = arith.mulf %64, %65 : vector<48x32xf32>
    %67 = arith.truncf %66 : vector<48x32xf32> to vector<48x32xbf16>
    %c320 = arith.constant 320 : index
    %c0_19 = arith.constant 0 : index
    %68 = vector.load %arg2[%c320, %c0_19] : memref<960x128xbf16, #tpu.memory_space<vmem>>, vector<32x32xbf16>
    %cst_20 = arith.constant dense<0.000000e+00> : vector<48x32xf32>
    %69 = tpu.matmul %67, %68, %cst_20 {dimension_numbers = #tpu.dot_dimension_numbers<[1], [0], [0], [1], [0, 0, 1, 1], [], []>} : vector<48x32xbf16>, vector<32x32xbf16>, vector<48x32xf32> -> vector<48x32xf32>
    %70 = arith.addf %9, %69 : vector<48x32xf32>
    %c512 = arith.constant 512 : index
    %c0_21 = arith.constant 0 : index
    %71 = vector.load %arg2[%c512, %c0_21] : memref<960x128xbf16, #tpu.memory_space<vmem>>, vector<1x32xbf16>
    %72 = arith.extf %71 : vector<1x32xbf16> to vector<1x32xf32>
    %73 = vector.broadcast %72 : vector<1x32xf32> to vector<48x32xf32>
    %74 = arith.addf %70, %73 : vector<48x32xf32>
    %c480 = arith.constant 480 : index
    %c0_22 = arith.constant 0 : index
    %75 = vector.load %arg2[%c480, %c0_22] : memref<960x128xbf16, #tpu.memory_space<vmem>>, vector<1x32xbf16>
    %76 = arith.extf %75 : vector<1x32xbf16> to vector<1x32xf32>
    %c496 = arith.constant 496 : index
    %c0_23 = arith.constant 0 : index
    %77 = vector.load %arg2[%c496, %c0_23] : memref<960x128xbf16, #tpu.memory_space<vmem>>, vector<1x32xbf16>
    %78 = arith.extf %77 : vector<1x32xbf16> to vector<1x32xf32>
    %cst_24 = arith.constant dense<0.000000e+00> : vector<48xf32>
    %79 = vector.multi_reduction <add>, %74, %cst_24 [1] : vector<48x32xf32> to vector<48xf32>
    %80 = vector.shape_cast %79 : vector<48xf32> to vector<48x1xf32>
    %cst_25 = arith.constant 3.200000e+01 : f32
    %81 = vector.broadcast %cst_25 : f32 to vector<48x1xf32>
    %82 = arith.divf %80, %81 : vector<48x1xf32>
    %83 = vector.broadcast %82 : vector<48x1xf32> to vector<48x32xf32>
    %84 = arith.subf %74, %83 : vector<48x32xf32>
    %85 = arith.mulf %84, %84 : vector<48x32xf32>
    %cst_26 = arith.constant dense<0.000000e+00> : vector<48xf32>
    %86 = vector.multi_reduction <add>, %85, %cst_26 [1] : vector<48x32xf32> to vector<48xf32>
    %87 = vector.shape_cast %86 : vector<48xf32> to vector<48x1xf32>
    %cst_27 = arith.constant 3.200000e+01 : f32
    %88 = vector.broadcast %cst_27 : f32 to vector<48x1xf32>
    %89 = arith.divf %87, %88 : vector<48x1xf32>
    %90 = vector.broadcast %82 : vector<48x1xf32> to vector<48x32xf32>
    %91 = arith.subf %74, %90 : vector<48x32xf32>
    %cst_28 = arith.constant 9.99999974E-6 : f32
    %92 = vector.broadcast %cst_28 : f32 to vector<48x1xf32>
    %93 = arith.addf %89, %92 : vector<48x1xf32>
    %94 = math.rsqrt %93 : vector<48x1xf32>
    %95 = vector.broadcast %94 : vector<48x1xf32> to vector<48x32xf32>
    %96 = arith.mulf %91, %95 : vector<48x32xf32>
    %97 = vector.broadcast %76 : vector<1x32xf32> to vector<48x32xf32>
    %98 = arith.mulf %96, %97 : vector<48x32xf32>
    %99 = vector.broadcast %78 : vector<1x32xf32> to vector<48x32xf32>
    %100 = arith.addf %98, %99 : vector<48x32xf32>
    %101 = arith.truncf %100 : vector<48x32xf32> to vector<48x32xbf16>
    %c352 = arith.constant 352 : index
    %c0_29 = arith.constant 0 : index
    %102 = vector.load %arg2[%c352, %c0_29] : memref<960x128xbf16, #tpu.memory_space<vmem>>, vector<32x64xbf16>
    %cst_30 = arith.constant dense<0.000000e+00> : vector<48x64xf32>
    %103 = tpu.matmul %101, %102, %cst_30 {dimension_numbers = #tpu.dot_dimension_numbers<[1], [0], [0], [1], [0, 0, 1, 1], [], []>} : vector<48x32xbf16>, vector<32x64xbf16>, vector<48x64xf32> -> vector<48x64xf32>
    %c528 = arith.constant 528 : index
    %c0_31 = arith.constant 0 : index
    %104 = vector.load %arg2[%c528, %c0_31] : memref<960x128xbf16, #tpu.memory_space<vmem>>, vector<1x64xbf16>
    %105 = arith.extf %104 : vector<1x64xbf16> to vector<1x64xf32>
    %106 = vector.broadcast %105 : vector<1x64xf32> to vector<48x64xf32>
    %107 = arith.addf %103, %106 : vector<48x64xf32>
    %cst_32 = arith.constant 5.000000e-01 : f32
    %108 = vector.broadcast %cst_32 : f32 to vector<48x64xf32>
    %109 = arith.mulf %108, %107 : vector<48x64xf32>
    %cst_33 = arith.constant 2.000000e+00 : f32
    %110 = math.sqrt %cst_33 : f32
    %cst_34 = arith.constant 1.000000e+00 : f32
    %111 = arith.divf %cst_34, %110 : f32
    %112 = vector.broadcast %111 : f32 to vector<48x64xf32>
    %113 = arith.mulf %107, %112 : vector<48x64xf32>
    %114 = math.erf %113 : vector<48x64xf32>
    %cst_35 = arith.constant 1.000000e+00 : f32
    %115 = vector.broadcast %cst_35 : f32 to vector<48x64xf32>
    %116 = arith.addf %115, %114 : vector<48x64xf32>
    %117 = arith.mulf %109, %116 : vector<48x64xf32>
    %118 = arith.truncf %117 : vector<48x64xf32> to vector<48x64xbf16>
    %c384 = arith.constant 384 : index
    %c0_36 = arith.constant 0 : index
    %119 = vector.load %arg2[%c384, %c0_36] : memref<960x128xbf16, #tpu.memory_space<vmem>>, vector<64x32xbf16>
    %cst_37 = arith.constant dense<0.000000e+00> : vector<48x32xf32>
    %120 = tpu.matmul %118, %119, %cst_37 {dimension_numbers = #tpu.dot_dimension_numbers<[1], [0], [0], [1], [0, 0, 1, 1], [], []>} : vector<48x64xbf16>, vector<64x32xbf16>, vector<48x32xf32> -> vector<48x32xf32>
    %c544 = arith.constant 544 : index
    %c0_38 = arith.constant 0 : index
    %121 = vector.load %arg2[%c544, %c0_38] : memref<960x128xbf16, #tpu.memory_space<vmem>>, vector<1x32xbf16>
    %122 = arith.extf %121 : vector<1x32xbf16> to vector<1x32xf32>
    %123 = vector.broadcast %122 : vector<1x32xf32> to vector<48x32xf32>
    %124 = arith.addf %120, %123 : vector<48x32xf32>
    %125 = arith.addf %74, %124 : vector<48x32xf32>
    %c720 = arith.constant 720 : index
    %c0_39 = arith.constant 0 : index
    %126 = vector.load %arg2[%c720, %c0_39] : memref<960x128xbf16, #tpu.memory_space<vmem>>, vector<1x32xbf16>
    %127 = arith.extf %126 : vector<1x32xbf16> to vector<1x32xf32>
    %c736 = arith.constant 736 : index
    %c0_40 = arith.constant 0 : index
    %128 = vector.load %arg2[%c736, %c0_40] : memref<960x128xbf16, #tpu.memory_space<vmem>>, vector<1x32xbf16>
    %129 = arith.extf %128 : vector<1x32xbf16> to vector<1x32xf32>
    %cst_41 = arith.constant dense<0.000000e+00> : vector<48xf32>
    %130 = vector.multi_reduction <add>, %125, %cst_41 [1] : vector<48x32xf32> to vector<48xf32>
    %131 = vector.shape_cast %130 : vector<48xf32> to vector<48x1xf32>
    %cst_42 = arith.constant 3.200000e+01 : f32
    %132 = vector.broadcast %cst_42 : f32 to vector<48x1xf32>
    %133 = arith.divf %131, %132 : vector<48x1xf32>
    %134 = vector.broadcast %133 : vector<48x1xf32> to vector<48x32xf32>
    %135 = arith.subf %125, %134 : vector<48x32xf32>
    %136 = arith.mulf %135, %135 : vector<48x32xf32>
    %cst_43 = arith.constant dense<0.000000e+00> : vector<48xf32>
    %137 = vector.multi_reduction <add>, %136, %cst_43 [1] : vector<48x32xf32> to vector<48xf32>
    %138 = vector.shape_cast %137 : vector<48xf32> to vector<48x1xf32>
    %cst_44 = arith.constant 3.200000e+01 : f32
    %139 = vector.broadcast %cst_44 : f32 to vector<48x1xf32>
    %140 = arith.divf %138, %139 : vector<48x1xf32>
    %141 = vector.broadcast %133 : vector<48x1xf32> to vector<48x32xf32>
    %142 = arith.subf %125, %141 : vector<48x32xf32>
    %cst_45 = arith.constant 9.99999974E-6 : f32
    %143 = vector.broadcast %cst_45 : f32 to vector<48x1xf32>
    %144 = arith.addf %140, %143 : vector<48x1xf32>
    %145 = math.rsqrt %144 : vector<48x1xf32>
    %146 = vector.broadcast %145 : vector<48x1xf32> to vector<48x32xf32>
    %147 = arith.mulf %142, %146 : vector<48x32xf32>
    %148 = vector.broadcast %127 : vector<1x32xf32> to vector<48x32xf32>
    %149 = arith.mulf %147, %148 : vector<48x32xf32>
    %150 = vector.broadcast %129 : vector<1x32xf32> to vector<48x32xf32>
    %151 = arith.addf %149, %150 : vector<48x32xf32>
    %152 = arith.truncf %151 : vector<48x32xf32> to vector<48x32xbf16>
    %c560 = arith.constant 560 : index
    %c0_46 = arith.constant 0 : index
    %153 = vector.load %arg2[%c560, %c0_46] : memref<960x128xbf16, #tpu.memory_space<vmem>>, vector<32x128xbf16>
    %cst_47 = arith.constant dense<0.000000e+00> : vector<48x128xf32>
    %154 = tpu.matmul %152, %153, %cst_47 {dimension_numbers = #tpu.dot_dimension_numbers<[1], [0], [0], [1], [0, 0, 1, 1], [], []>} : vector<48x32xbf16>, vector<32x128xbf16>, vector<48x128xf32> -> vector<48x128xf32>
    %155 = vector.shape_cast %154 : vector<48x128xf32> to vector<2x24x128xf32>
    %156 = vector.extract_strided_slice %155 {offsets = [0, 0, 0], sizes = [2, 24, 32], strides = [1, 1, 1]} : vector<2x24x128xf32> to vector<2x24x32xf32>
    %157 = vector.extract_strided_slice %155 {offsets = [0, 0, 32], sizes = [2, 24, 32], strides = [1, 1, 1]} : vector<2x24x128xf32> to vector<2x24x32xf32>
    %158 = vector.extract_strided_slice %155 {offsets = [0, 0, 64], sizes = [2, 24, 32], strides = [1, 1, 1]} : vector<2x24x128xf32> to vector<2x24x32xf32>
    %159 = tpu.concatenate %157, %157, %157, %157, %157, %157, %157, %157 in 1 : vector<2x24x32xf32>, vector<2x24x32xf32>, vector<2x24x32xf32>, vector<2x24x32xf32>, vector<2x24x32xf32>, vector<2x24x32xf32>, vector<2x24x32xf32>, vector<2x24x32xf32> -> vector<2x192x32xf32>
    %160 = vector.shape_cast %11 : vector<192x32xf32> to vector<1x192x32xf32>
    %161 = vector.broadcast %160 : vector<1x192x32xf32> to vector<2x192x32xf32>
    %162 = arith.mulf %159, %161 : vector<2x192x32xf32>
    %163 = tpu.concatenate %158, %158, %158, %158, %158, %158, %158, %158 in 1 : vector<2x24x32xf32>, vector<2x24x32xf32>, vector<2x24x32xf32>, vector<2x24x32xf32>, vector<2x24x32xf32>, vector<2x24x32xf32>, vector<2x24x32xf32>, vector<2x24x32xf32> -> vector<2x192x32xf32>
    %164 = vector.shape_cast %11 : vector<192x32xf32> to vector<1x192x32xf32>
    %165 = vector.broadcast %164 : vector<1x192x32xf32> to vector<2x192x32xf32>
    %166 = arith.mulf %163, %165 : vector<2x192x32xf32>
    "tpu.trace_start"() <{level = 10 : i32, message = "bik,bjk->bij"}> : () -> ()
    %cst_48 = arith.constant dense<0.000000e+00> : vector<2x24x192xf32>
    %167 = tpu.matmul %156, %162, %cst_48 {dimension_numbers = #tpu.dot_dimension_numbers<[2], [2], [1], [1], [0, 0, 0, 1, 1, 1], [0], [0]>} : vector<2x24x32xf32>, vector<2x192x32xf32>, vector<2x24x192xf32> -> vector<2x24x192xf32>
    "tpu.trace_stop"() : () -> ()
    %cst_49 = arith.constant 0.176776692 : f32
    %168 = vector.broadcast %cst_49 : f32 to vector<2x24x192xf32>
    %169 = arith.mulf %167, %168 : vector<2x24x192xf32>
    %cst_50 = arith.constant dense<0xFF800000> : vector<2x24xf32>
    %170 = vector.multi_reduction <maximumf>, %169, %cst_50 [2] : vector<2x24x192xf32> to vector<2x24xf32>
    %171 = vector.shape_cast %170 : vector<2x24xf32> to vector<2x24x1xf32>
    %172 = vector.broadcast %171 : vector<2x24x1xf32> to vector<2x24x192xf32>
    %173 = arith.subf %169, %172 : vector<2x24x192xf32>
    %174 = math.exp %173 : vector<2x24x192xf32>
    "tpu.trace_start"() <{level = 10 : i32, message = "bij,bjc->bic"}> : () -> ()
    %cst_51 = arith.constant dense<0.000000e+00> : vector<2x24x32xf32>
    %175 = tpu.matmul %174, %166, %cst_51 {dimension_numbers = #tpu.dot_dimension_numbers<[2], [1], [1], [2], [0, 0, 0, 1, 1, 2], [0], [0]>} : vector<2x24x192xf32>, vector<2x192x32xf32>, vector<2x24x32xf32> -> vector<2x24x32xf32>
    "tpu.trace_stop"() : () -> ()
    %176 = vector.shape_cast %174 : vector<2x24x192xf32> to vector<48x192xf32>
    %cst_52 = arith.constant dense<0.000000e+00> : vector<48x32xf32>
    %177 = tpu.matmul %176, %11, %cst_52 {dimension_numbers = #tpu.dot_dimension_numbers<[1], [0], [0], [1], [0, 0, 1, 1], [], []>} : vector<48x192xf32>, vector<192x32xf32>, vector<48x32xf32> -> vector<48x32xf32>
    %178 = vector.shape_cast %175 : vector<2x24x32xf32> to vector<48x32xf32>
    %179 = tpu.reciprocal %177 {approx = true} : vector<48x32xf32> -> vector<48x32xf32>
    %180 = arith.mulf %178, %179 : vector<48x32xf32>
    %181 = arith.truncf %180 : vector<48x32xf32> to vector<48x32xbf16>
    %c592 = arith.constant 592 : index
    %c0_53 = arith.constant 0 : index
    %182 = vector.load %arg2[%c592, %c0_53] : memref<960x128xbf16, #tpu.memory_space<vmem>>, vector<32x32xbf16>
    %cst_54 = arith.constant dense<0.000000e+00> : vector<48x32xf32>
    %183 = tpu.matmul %181, %182, %cst_54 {dimension_numbers = #tpu.dot_dimension_numbers<[1], [0], [0], [1], [0, 0, 1, 1], [], []>} : vector<48x32xbf16>, vector<32x32xbf16>, vector<48x32xf32> -> vector<48x32xf32>
    %184 = arith.addf %125, %183 : vector<48x32xf32>
    %c784 = arith.constant 784 : index
    %c0_55 = arith.constant 0 : index
    %185 = vector.load %arg2[%c784, %c0_55] : memref<960x128xbf16, #tpu.memory_space<vmem>>, vector<1x32xbf16>
    %186 = arith.extf %185 : vector<1x32xbf16> to vector<1x32xf32>
    %187 = vector.broadcast %186 : vector<1x32xf32> to vector<48x32xf32>
    %188 = arith.addf %184, %187 : vector<48x32xf32>
    %c752 = arith.constant 752 : index
    %c0_56 = arith.constant 0 : index
    %189 = vector.load %arg2[%c752, %c0_56] : memref<960x128xbf16, #tpu.memory_space<vmem>>, vector<1x32xbf16>
    %190 = arith.extf %189 : vector<1x32xbf16> to vector<1x32xf32>
    %c768 = arith.constant 768 : index
    %c0_57 = arith.constant 0 : index
    %191 = vector.load %arg2[%c768, %c0_57] : memref<960x128xbf16, #tpu.memory_space<vmem>>, vector<1x32xbf16>
    %192 = arith.extf %191 : vector<1x32xbf16> to vector<1x32xf32>
    %cst_58 = arith.constant dense<0.000000e+00> : vector<48xf32>
    %193 = vector.multi_reduction <add>, %188, %cst_58 [1] : vector<48x32xf32> to vector<48xf32>
    %194 = vector.shape_cast %193 : vector<48xf32> to vector<48x1xf32>
    %cst_59 = arith.constant 3.200000e+01 : f32
    %195 = vector.broadcast %cst_59 : f32 to vector<48x1xf32>
    %196 = arith.divf %194, %195 : vector<48x1xf32>
    %197 = vector.broadcast %196 : vector<48x1xf32> to vector<48x32xf32>
    %198 = arith.subf %188, %197 : vector<48x32xf32>
    %199 = arith.mulf %198, %198 : vector<48x32xf32>
    %cst_60 = arith.constant dense<0.000000e+00> : vector<48xf32>
    %200 = vector.multi_reduction <add>, %199, %cst_60 [1] : vector<48x32xf32> to vector<48xf32>
    %201 = vector.shape_cast %200 : vector<48xf32> to vector<48x1xf32>
    %cst_61 = arith.constant 3.200000e+01 : f32
    %202 = vector.broadcast %cst_61 : f32 to vector<48x1xf32>
    %203 = arith.divf %201, %202 : vector<48x1xf32>
    %204 = vector.broadcast %196 : vector<48x1xf32> to vector<48x32xf32>
    %205 = arith.subf %188, %204 : vector<48x32xf32>
    %cst_62 = arith.constant 9.99999974E-6 : f32
    %206 = vector.broadcast %cst_62 : f32 to vector<48x1xf32>
    %207 = arith.addf %203, %206 : vector<48x1xf32>
    %208 = math.rsqrt %207 : vector<48x1xf32>
    %209 = vector.broadcast %208 : vector<48x1xf32> to vector<48x32xf32>
    %210 = arith.mulf %205, %209 : vector<48x32xf32>
    %211 = vector.broadcast %190 : vector<1x32xf32> to vector<48x32xf32>
    %212 = arith.mulf %210, %211 : vector<48x32xf32>
    %213 = vector.broadcast %192 : vector<1x32xf32> to vector<48x32xf32>
    %214 = arith.addf %212, %213 : vector<48x32xf32>
    %215 = arith.truncf %214 : vector<48x32xf32> to vector<48x32xbf16>
    %c624 = arith.constant 624 : index
    %c0_63 = arith.constant 0 : index
    %216 = vector.load %arg2[%c624, %c0_63] : memref<960x128xbf16, #tpu.memory_space<vmem>>, vector<32x64xbf16>
    %cst_64 = arith.constant dense<0.000000e+00> : vector<48x64xf32>
    %217 = tpu.matmul %215, %216, %cst_64 {dimension_numbers = #tpu.dot_dimension_numbers<[1], [0], [0], [1], [0, 0, 1, 1], [], []>} : vector<48x32xbf16>, vector<32x64xbf16>, vector<48x64xf32> -> vector<48x64xf32>
    %c800 = arith.constant 800 : index
    %c0_65 = arith.constant 0 : index
    %218 = vector.load %arg2[%c800, %c0_65] : memref<960x128xbf16, #tpu.memory_space<vmem>>, vector<1x64xbf16>
    %219 = arith.extf %218 : vector<1x64xbf16> to vector<1x64xf32>
    %220 = vector.broadcast %219 : vector<1x64xf32> to vector<48x64xf32>
    %221 = arith.addf %217, %220 : vector<48x64xf32>
    %cst_66 = arith.constant 5.000000e-01 : f32
    %222 = vector.broadcast %cst_66 : f32 to vector<48x64xf32>
    %223 = arith.mulf %222, %221 : vector<48x64xf32>
    %cst_67 = arith.constant 2.000000e+00 : f32
    %224 = math.sqrt %cst_67 : f32
    %cst_68 = arith.constant 1.000000e+00 : f32
    %225 = arith.divf %cst_68, %224 : f32
    %226 = vector.broadcast %225 : f32 to vector<48x64xf32>
    %227 = arith.mulf %221, %226 : vector<48x64xf32>
    %228 = math.erf %227 : vector<48x64xf32>
    %cst_69 = arith.constant 1.000000e+00 : f32
    %229 = vector.broadcast %cst_69 : f32 to vector<48x64xf32>
    %230 = arith.addf %229, %228 : vector<48x64xf32>
    %231 = arith.mulf %223, %230 : vector<48x64xf32>
    %232 = arith.truncf %231 : vector<48x64xf32> to vector<48x64xbf16>
    %c656 = arith.constant 656 : index
    %c0_70 = arith.constant 0 : index
    %233 = vector.load %arg2[%c656, %c0_70] : memref<960x128xbf16, #tpu.memory_space<vmem>>, vector<64x32xbf16>
    %cst_71 = arith.constant dense<0.000000e+00> : vector<48x32xf32>
    %234 = tpu.matmul %232, %233, %cst_71 {dimension_numbers = #tpu.dot_dimension_numbers<[1], [0], [0], [1], [0, 0, 1, 1], [], []>} : vector<48x64xbf16>, vector<64x32xbf16>, vector<48x32xf32> -> vector<48x32xf32>
    %c816 = arith.constant 816 : index
    %c0_72 = arith.constant 0 : index
    %235 = vector.load %arg2[%c816, %c0_72] : memref<960x128xbf16, #tpu.memory_space<vmem>>, vector<1x32xbf16>
    %236 = arith.extf %235 : vector<1x32xbf16> to vector<1x32xf32>
    %237 = vector.broadcast %236 : vector<1x32xf32> to vector<48x32xf32>
    %238 = arith.addf %234, %237 : vector<48x32xf32>
    %239 = arith.addf %188, %238 : vector<48x32xf32>
    %240 = vector.shape_cast %239 : vector<48x32xf32> to vector<2x24x32xf32>
    %241 = vector.extract_strided_slice %240 {offsets = [0, 0, 0], sizes = [2, 1, 32], strides = [1, 1, 1]} : vector<2x24x32xf32> to vector<2x1x32xf32>
    %242 = vector.shape_cast %241 : vector<2x1x32xf32> to vector<2x32xf32>
    %243 = arith.truncf %242 : vector<2x32xf32> to vector<2x32xbf16>
    %c832 = arith.constant 832 : index
    %c0_73 = arith.constant 0 : index
    %244 = vector.load %arg2[%c832, %c0_73] : memref<960x128xbf16, #tpu.memory_space<vmem>>, vector<32x64xbf16>
    %cst_74 = arith.constant dense<0.000000e+00> : vector<2x64xf32>
    %245 = tpu.matmul %243, %244, %cst_74 {dimension_numbers = #tpu.dot_dimension_numbers<[1], [0], [0], [1], [0, 0, 1, 1], [], []>} : vector<2x32xbf16>, vector<32x64xbf16>, vector<2x64xf32> -> vector<2x64xf32>
    %c864 = arith.constant 864 : index
    %c0_75 = arith.constant 0 : index
    %246 = vector.load %arg2[%c864, %c0_75] : memref<960x128xbf16, #tpu.memory_space<vmem>>, vector<1x64xbf16>
    %247 = arith.extf %246 : vector<1x64xbf16> to vector<1x64xf32>
    %248 = vector.broadcast %247 : vector<1x64xf32> to vector<2x64xf32>
    %249 = arith.addf %245, %248 : vector<2x64xf32>
    %cst_76 = arith.constant 0.000000e+00 : f32
    %250 = vector.broadcast %cst_76 : f32 to vector<2x64xf32>
    %251 = arith.maximumf %249, %250 : vector<2x64xf32>
    %252 = arith.truncf %251 : vector<2x64xf32> to vector<2x64xbf16>
    %c880 = arith.constant 880 : index
    %c0_77 = arith.constant 0 : index
    %253 = vector.load %arg2[%c880, %c0_77] : memref<960x128xbf16, #tpu.memory_space<vmem>>, vector<64x128xbf16>
    %cst_78 = arith.constant dense<0.000000e+00> : vector<2x128xf32>
    %254 = tpu.matmul %252, %253, %cst_78 {dimension_numbers = #tpu.dot_dimension_numbers<[1], [0], [0], [1], [0, 0, 1, 1], [], []>} : vector<2x64xbf16>, vector<64x128xbf16>, vector<2x128xf32> -> vector<2x128xf32>
    %c944 = arith.constant 944 : index
    %c0_79 = arith.constant 0 : index
    %255 = vector.load %arg2[%c944, %c0_79] : memref<960x128xbf16, #tpu.memory_space<vmem>>, vector<1x128xbf16>
    %256 = arith.extf %255 : vector<1x128xbf16> to vector<1x128xf32>
    %257 = vector.broadcast %256 : vector<1x128xf32> to vector<2x128xf32>
    %258 = arith.addf %254, %257 : vector<2x128xf32>
    %c0_80 = arith.constant 0 : index
    %c0_81 = arith.constant 0 : index
    %259 = vector.load %arg3[%c0_80, %c0_81] : memref<2x128xf32, #tpu.memory_space<vmem>>, vector<2x128xf32>
    tpu.vector_store %arg3[%c0_80, %c0_81], %258 {strides = array<i32>} : memref<2x128xf32, #tpu.memory_space<vmem>>, vector<2x128xf32>,
    return
  }
  func.func @transform_0(%arg0: i32) -> (i32, i32) {
    %c0_i32 = arith.constant 0 : i32
    %c0_i32_0 = arith.constant 0 : i32
    return %arg0, %c0_i32 : i32, i32
  }
  func.func @transform_1(%arg0: i32) -> (i32, i32) {
    %c0_i32 = arith.constant 0 : i32
    %c0_i32_0 = arith.constant 0 : i32
    %c0_i32_1 = arith.constant 0 : i32
    return %c0_i32, %c0_i32_0 : i32, i32
  }
  func.func @transform_2(%arg0: i32) -> (i32, i32) {
    %c0_i32 = arith.constant 0 : i32
    %c0_i32_0 = arith.constant 0 : i32
    return %arg0, %c0_i32 : i32, i32
  }
}

</mosaic_0001>

<bundles_post_ra>
// kernel: vit_forward.1
= control target key start
LH: loop header
LB: loop body
LE: loop exit
PB: predicated region body
PF: predicated region fallthrough
CT: control target
= control target key end

     0   :  { %v7834_v1 = vmov 0.0   ;;  %vm5653_vm0 = vmmov 0   ;;  %vm66_vm1 = vcmask 523264   ;;  %s7831_s0 = inlined_call_operand.vmem [shape: bf16[48,64], index: 0, kind: input, shape index: {}]   ;;  %s7832_s1 = inlined_call_operand.vmem [shape: bf16[960,128], index: 1, kind: input, shape index: {}]   ;;  %s7833_s2 = inlined_call_operand.hbm [shape: f32[2,128], index: 2, kind: output, shape index: {}]  }
   0x1   :  { %v5427_v0 = vld [vmem:[%s7832_s1] sm:$0xff]   ;;  %4236 = vmatprep.subr.bf16.mxu0 %v7834_v1  ;;  %4256 = vmatprep.subr.bf16.mxu1 %v7834_v1  ;;  %v5428_v2 = vld [vmem:[%s7832_s1 + $0x8] sm:$0xff]   ;;  %v5429_v3 = vld [vmem:[%s7832_s1 + $0x10] sm:$0xff]  }
   0x2   :  { %4237 = vmatpush3.bf16.msra.mxu0 %v5427_v0  ;;  %4244 = vmatprep.mubr.msk.bf16.mxu0 %vm5653_vm0, %v7834_v1  ;;  %v5430_v4 = vld [vmem:[%s7832_s1 + $0x18] sm:$0xff]   ;;  %v5431_v5 = vld [vmem:[%s7831_s0] sm:$0xff]   ;;  %v5432_v6 = vld [vmem:[%s7831_s0 + $0x8] sm:$0xff]  }
   0x3   :  { %4238 = vmatprep.subr.bf16.mxu0 %v7834_v1  ;;  %4260 = vmatprep.mubr.msk.bf16.mxu1 %vm5653_vm0, %v7834_v1 }
   0x6   :  { %4239 = vmatpush3.bf16.msra.mxu0 %v5428_v2 }
   0x7   :  { %4240 = vmatprep.subr.bf16.mxu0 %v7834_v1 }
   0xa   :  { %4241 = vmatpush3.bf16.msra.mxu0 %v5429_v3 }
   0xb   :  { %4242 = vmatprep.subr.bf16.mxu0 %v7834_v1 }
   0xe   :  { %4243 = vmatpush3.bf16.msra.mxu0 %v5430_v4 }
  0x11   :  { %4245 = vmatmul.mubr.msk.bf16.vlgmr.msra.gmra.mrb[0].mxu0 %vm66_vm1, %v5431_v5 }
  0x12   :  { %4248 = vmatprep.mubr.msk.bf16.mxu0 %vm5653_vm0, %v7834_v1 }
  0x13   :  { %7 = vsyncpa [#allocation3], 0  ;;  %v5433_v7 = vld [vmem:[%s7831_s0 + $0x10] sm:$0xff]   ;;  %v4164_v8 = vld [vmem:[%s7832_s1 + $0x20] sm:$0xff]   ;;  %vm197_vm2 = vcmask 261120   ;;  %s5654_s12 = smov 32  }
  0x14   :  { %v4114_v9 = vunpack.c.l.bf16 %v4164_v8  ;;  %v4115_v10 = vunpack.c.h.bf16 %v4164_v8  ;;  %v135_v15 = vld [vmem:[%s7832_s1 + $0x28] sm:$0xf]  ;;  %v5434_v4 = vld [vmem:[%s7832_s1 + $0x90] sm:$0xff]   ;;  %v5435_v5 = vld [vmem:[%s7832_s1 + $0x98] sm:$0xff]   ;;  %s5656_s30 = smov 96   ;;  %s5657_s3 = smov 64  }
  0x15   :  { %v138_v19 = vunpack.c.l.bf16 %v135_v15  ;;  %4257 = vmatpush3.bf16.msra.mxu1 %v5434_v4  ;;  %vm6137_vm3 = vmpackc.low %vm197_vm2, %vm197_vm2  ;;  %vm3762_vm4 = vcmask 1041409   ;;  %s5658_s14 = smov [#allocation2]  }
  0x16   :  { %4258 = vmatprep.subr.bf16.mxu1 %v7834_v1  ;;  %s3910_s15 = sshll.u32 %s5658_s14, 4  ;;  %s3911_s15 = int_to_ptr.vmem [resolvable:$true] %s3910_s15 }
  0x17   :  { %s5628_s16 = scalar_lea.vmem %s3911_s15, 32  ;;  %p5633_p1 = scmp.lt.s32.totalorder %s3911_s15, %s3911_s15 }
  0x18   :  { %p5629_p0 = scmp.ne.s32.totalorder %s3911_s15, %s5628_s16  ;;  %p5634_p2 = scmp.lt.s32.totalorder %s5628_s16, %s5628_s16 }
  0x19   :  { %4249 = vmatmul.mubr.msk.bf16.gmra.mrb[4].mxu0 %vm66_vm1, %v5432_v6  ;;  %4259 = vmatpush3.bf16.msra.mxu1 %v5435_v5  ;;  %v4166_v6 = vld [vmem:[%s7832_s1 + $0x38] sm:$0xff]  }
  0x1a   :  { %4252 = vmatprep.mubr.msk.bf16.mxu0 %vm5653_vm0, %v7834_v1  ;;  %v4122_v8 = vunpack.c.l.bf16 %v4166_v6  ;;  %p5635_p3 = por %p5634_p2, %p5633_p1 }
  0x1c   :  { %p5636_p4 = pnand %p5635_p3, %p5629_p0 }
  0x21   :  { %4253 = vmatmul.mubr.msk.bf16.gmra.mrb[8].mxu0 %vm66_vm1, %v5433_v7  ;;  %v4167_v7 = vld [vmem:[%s7832_s1 + $0x40] sm:$0xff]  }
  0x22   :  { %1051 = vmatprep.mubr.f32.mxu0 %v7834_v1 }
  0xe4   :  { %v110_v11 = vpop.f32.mrb[0].mxu0 }
  0xe5   :  { %v5715_v12 = vadd.f32 %v4114_v9, %v110_v11  ;;  %v4246_v13 = vpop.f32.mrb[1].mxu0  ;;  %v4127_v11 = vunpack.c.h.bf16 %v4167_v7 }
  0xe6   :  { %v113_v14 = vpop.f32.mrb[2].mxu0  ;;  %v4168_v13 = vld [vmem:[%s7832_s1 + $0x48] sm:$0xff]  }
  0xe7   :  { %7954 = vst [vmem:[#allocation5_spill] sm:$0xff] %v5715_v12  ;;  %v5720_v16 = vadd.f32 %v4115_v10, %v113_v14  ;;  %v4247_v17 = vpop.f32.mrb[3].mxu0  ;;  %v198_v18 = vsel %vm197_vm2, %v5715_v12, 0.0  ;;  %v4165_v14 = vld [vmem:[%s7832_s1 + $0x30] sm:$0xff]  }
  0xe8   :  { %199 = vadd.xlane.f32.xlu0 %v198_v18  ;;  %v4169_v17 = vld [vmem:[%s7832_s1 + $0x50] sm:$0xff]   ;;  %v4130_v18 = vunpack.c.l.bf16 %v4168_v13 }
  0xe9   :  { %7955 = vst [vmem:[#allocation6_spill] sm:$0xff] %v5720_v16  ;;  %v201_v20 = vsel %vm197_vm2, %v5720_v16, 0.0 }
  0xec   :  { %202 = vadd.xlane.f32.xlu0 %v201_v20  ;;  %v118_v21 = vpop.f32.mrb[4].mxu0  ;;  %v4131_v20 = vunpack.c.h.bf16 %v4168_v13 }
  0xed   :  { %v5726_v22 = vadd.f32 %v138_v19, %v118_v21  ;;  %v4250_v23 = vpop.f32.mrb[5].mxu0  ;;  %v4170_v21 = vld [vmem:[%s7832_s1 + $0x58] sm:$0xff]  }
  0xee   :  { %v121_v24 = vpop.f32.mrb[6].mxu0  ;;  %v4118_v23 = vunpack.c.l.bf16 %v4165_v14 }
  0xef   :  { %7956 = vst [vmem:[#allocation7_spill] sm:$0xff] %v5726_v22  ;;  %v5728_v25 = vadd.f32 %v4114_v9, %v121_v24  ;;  %v4251_v26 = vpop.f32.mrb[7].mxu0  ;;  %v204_v27 = vsel %vm197_vm2, %v5726_v22, 0.0  ;;  %v4123_v9 = vunpack.c.h.bf16 %v4166_v6  ;;  %v4119_v24 = vunpack.c.h.bf16 %v4165_v14  ;;  %v193_v14 = vld [vmem:[%s7832_s1 + $0xe0] sm:$0x1] }
  0xf0   :  { %205 = vadd.xlane.f32.xlu1 %v204_v27  ;;  %v4134_v26 = vunpack.c.l.bf16 %v4169_v17  ;;  %v4135_v27 = vunpack.c.h.bf16 %v4169_v17 }
  0xf1   :  { %7957 = vst [vmem:[#allocation8_spill] sm:$0xff] %v5728_v25  ;;  %v207_v28 = vsel %vm197_vm2, %v5728_v25, 0.0  ;;  %v5797_v15 = vpack.i.bf16 %v4123_v9, %v4122_v8 }
  0xf4   :  { %208 = vadd.xlane.f32.xlu1 %v207_v28  ;;  %v126_v29 = vpop.f32.mrb[8].mxu0  ;;  %v4171_v28 = vld [vmem:[%s7832_s1 + $0x60] sm:$0xff]  }
  0xf5   :  { %v5734_v30 = vadd.f32 %v4115_v10, %v126_v29  ;;  %v4254_v31 = vpop.f32.mrb[9].mxu0  ;;  %v4126_v10 = vunpack.c.l.bf16 %v4167_v7  ;;  %v5812_v29 = vpack.i.bf16 %v4119_v24, %v4118_v23  ;;  %v277_v7 = vlaneseq  ;;  %v195_v24 = vld [vmem:[%s7832_s1 + $0xe8] sm:$0x1] }
  0xf6   :  { %v129_v32 = vpop.f32.mrb[10].mxu0  ;;  %v4138_v31 = vunpack.c.l.bf16 %v4170_v21 }
  0xf7   :  { %7958 = vst [vmem:[#allocation9_spill] sm:$0xff] %v5734_v30  ;;  %v5736_v33 = vadd.f32 %v138_v19, %v129_v32  ;;  %v210_v34 = vsel %vm197_vm2, %v5734_v30, 0.0  ;;  %v4255_v35 = vpop.f32.mrb[11].mxu0  ;;  %v5804_v19 = vpack.i.bf16 %v4127_v11, %v4126_v10  ;;  %v4139_v32 = vunpack.c.h.bf16 %v4170_v21 }
  0xf8   :  { %211 = vadd.xlane.f32.xlu0 %v210_v34  ;;  %v5816_v34 = vpack.i.bf16 %v4131_v20, %v4130_v18  ;;  %v5820_v35 = vpack.i.bf16 %v4135_v27, %v4134_v26  ;;  %v278_v11 = vshrl.u32 %v277_v7, 7  ;;  %v194_v20 = vunpack.c.l.bf16 %v193_v14 }
  0xf9   :  { %7959 = vst [vmem:[#allocation10_spill] sm:$0xff] %v5736_v33  ;;  %v213_v36 = vsel %vm197_vm2, %v5736_v33, 0.0  ;;  %7960 = vst [vmem:[#allocation11_spill] sm:$0xff] %v5804_v19 }
  0xfa   :  { %214 = vadd.xlane.f32.xlu1 %v213_v36  ;;  %7961 = vst [vmem:[#allocation12_spill] sm:$0xff] %v5820_v35  ;;  %v4142_v36 = vunpack.c.l.bf16 %v4171_v28  ;;  %v5872_v21 = vsub.s32 0, %v278_v11 }
  0xfc   :  { %7966 = vst [vmem:[#allocation17_spill] sm:$0xff] %v5872_v21 }
 0x175   :  { %v200_v37 = vpop.xlane.xlu0 %199 }
 0x176   :  { %v217_v38 = vmul.f32 0.03125, %v200_v37  ;;  %v4143_v37 = vunpack.c.h.bf16 %v4171_v28 }
 0x178   :  { %v5743_v39 = vsub.f32 %v5715_v12, %v217_v38  ;;  %v4172_v38 = vld [vmem:[%s7832_s1 + $0x68] sm:$0xff]  }
 0x179   :  { %v203_v40 = vpop.xlane.xlu0 %202 }
 0x17a   :  { %v218_v41 = vmul.f32 0.03125, %v203_v40  ;;  %v229_v42 = vmul.f32 %v5743_v39, %v5743_v39  ;;  %v5827_v40 = vpack.i.bf16 %v4139_v32, %v4138_v31  ;;  %v196_v31 = vunpack.c.l.bf16 %v195_v24 }
 0x17c   :  { %v5748_v43 = vsub.f32 %v5720_v16, %v218_v41  ;;  %v235_v44 = vsel %vm197_vm2, %v229_v42, 0.0  ;;  %v4146_v41 = vunpack.c.l.bf16 %v4172_v38  ;;  %v4147_v42 = vunpack.c.h.bf16 %v4172_v38 }
 0x17d   :  { %v206_v45 = vpop.xlane.xlu1 %205  ;;  %236 = vadd.xlane.f32.xlu0 %v235_v44  ;;  %v5831_v44 = vpack.i.bf16 %v4143_v37, %v4142_v36  ;;  %v280_v36 = vrot.slane %v194_v20, %v5872_v21 }
 0x17e   :  { %v219_v46 = vmul.f32 0.03125, %v206_v45  ;;  %v230_v47 = vmul.f32 %v5748_v43, %v5748_v43  ;;  %v4173_v45 = vld [vmem:[%s7832_s1 + $0x70] sm:$0xff]  }
 0x17f   :  { %7962 = vst [vmem:[#allocation13_spill] sm:$0xff] %v5831_v44 }
 0x180   :  { %v5754_v48 = vsub.f32 %v5726_v22, %v219_v46  ;;  %v238_v49 = vsel %vm197_vm2, %v230_v47, 0.0  ;;  %v5838_v46 = vpack.i.bf16 %v4147_v42, %v4146_v41  ;;  %v4150_v47 = vunpack.c.l.bf16 %v4173_v45 }
 0x181   :  { %v209_v50 = vpop.xlane.xlu1 %208  ;;  %239 = vadd.xlane.f32.xlu1 %v238_v49  ;;  %v4151_v49 = vunpack.c.h.bf16 %v4173_v45 }
 0x182   :  { %v220_v51 = vmul.f32 0.03125, %v209_v50  ;;  %v231_v52 = vmul.f32 %v5754_v48, %v5754_v48  ;;  %v4174_v50 = vld [vmem:[%s7832_s1 + $0x78] sm:$0xff]  }
 0x184   :  { %v5760_v53 = vsub.f32 %v5728_v25, %v220_v51  ;;  %v241_v54 = vsel %vm197_vm2, %v231_v52, 0.0  ;;  %v5847_v51 = vpack.i.bf16 %v4151_v49, %v4150_v47  ;;  %v4154_v52 = vunpack.c.l.bf16 %v4174_v50 }
 0x185   :  { %242 = vadd.xlane.f32.xlu0 %v241_v54  ;;  %v212_v55 = vpop.xlane.xlu0 %211  ;;  %v4155_v54 = vunpack.c.h.bf16 %v4174_v50  ;;  %v290_v50 = vrot.slane %v196_v31, %v5872_v21 }
 0x186   :  { %v221_v56 = vmul.f32 0.03125, %v212_v55  ;;  %v232_v57 = vmul.f32 %v5760_v53, %v5760_v53  ;;  %7963 = vst [vmem:[#allocation14_spill] sm:$0xff] %v5847_v51  ;;  %v4175_v55 = vld [vmem:[%s7832_s1 + $0x80] sm:$0xff]  }
 0x187   :  { %v215_v58 = vpop.xlane.xlu1 %214 }
 0x188   :  { %v5766_v59 = vsub.f32 %v5734_v30, %v221_v56  ;;  %v222_v60 = vmul.f32 0.03125, %v215_v58  ;;  %v244_v61 = vsel %vm197_vm2, %v232_v57, 0.0  ;;  %v5854_v56 = vpack.i.bf16 %v4155_v54, %v4154_v52 }
 0x189   :  { %245 = vadd.xlane.f32.xlu1 %v244_v61  ;;  %v4158_v57 = vunpack.c.l.bf16 %v4175_v55  ;;  %v4159_v58 = vunpack.c.h.bf16 %v4175_v55 }
 0x18a   :  { %v5770_v62 = vsub.f32 %v5736_v33, %v222_v60  ;;  %v233_v63 = vmul.f32 %v5766_v59, %v5766_v59  ;;  %v4176_v60 = vld [vmem:[%s7832_s1 + $0x88] sm:$0xff]  }
 0x18b   :  { %v5861_v61 = vpack.i.bf16 %v4159_v58, %v4158_v57 }
 0x18c   :  { %v247_v0 = vsel %vm197_vm2, %v233_v63, 0.0  ;;  %v234_v2 = vmul.f32 %v5770_v62, %v5770_v62  ;;  %v4162_v63 = vunpack.c.l.bf16 %v4176_v60 }
 0x18d   :  { %248 = vadd.xlane.f32.xlu0 %v247_v0  ;;  %7964 = vst [vmem:[#allocation15_spill] sm:$0xff] %v5861_v61  ;;  %v4163_v0 = vunpack.c.h.bf16 %v4176_v60 }
 0x18e   :  { %v250_v3 = vsel %vm197_vm2, %v234_v2, 0.0 }
 0x18f   :  { %251 = vadd.xlane.f32.xlu1 %v250_v3  ;;  %v5865_v2 = vpack.i.bf16 %v4163_v0, %v4162_v63 }
 0x191   :  { %7965 = vst [vmem:[#allocation16_spill] sm:$0xff] %v5865_v2 }
 0x1a0   :  { %4833 = vrot.lane.b32.xlu1 %v5797_v15, %s5654_s12 }
 0x1a3   :  { %4828 = vrot.lane.b32.xlu0 %v5812_v29, %s5654_s12 }
 0x1a4   :  { %4838 = vrot.lane.b32.xlu1 %v5804_v19, %s5654_s12 }
 0x1a7   :  { %4848 = vrot.lane.b32.xlu0 %v5820_v35, %s5654_s12 }
 0x1a8   :  { %4843 = vrot.lane.b32.xlu1 %v5816_v34, %s5654_s12 }
 0x1ab   :  { %4858 = vrot.lane.b32.xlu0 %v5831_v44, %s5654_s12 }
 0x1ac   :  { %4853 = vrot.lane.b32.xlu1 %v5827_v40, %s5654_s12 }
 0x1b0   :  { %4863 = vrot.lane.b32.xlu1 %v5838_v46, %s5654_s12 }
 0x1b4   :  { %4873 = vrot.lane.b32.xlu1 %v5847_v51, %s5654_s12 }
 0x1b8   :  { %4883 = vrot.lane.b32.xlu1 %v5854_v56, %s5654_s12 }
 0x1bc   :  { %4893 = vrot.lane.b32.xlu1 %v5861_v61, %s5654_s12 }
 0x1c0   :  { %4903 = vrot.lane.b32.xlu1 %v5865_v2, %s5654_s12 }
 0x20a   :  { %v237_v3 = vpop.xlane.xlu0 %236 }
 0x20b   :  { %v253_v4 = vmul.f32 0.03125, %v237_v3 }
 0x20d   :  { %v259_v5 = vadd.f32 1e-05, %v253_v4 }
 0x20e   :  { %v240_v6 = vpop.xlane.xlu1 %239 }
 0x20f   :  { %5460 = vrsqrt.f32 %v259_v5  ;;  %v254_v8 = vmul.f32 0.03125, %v240_v6 }
 0x211   :  { %v260_v9 = vadd.f32 1e-05, %v254_v8 }
 0x212   :  { %v243_v10 = vpop.xlane.xlu0 %242 }
 0x213   :  { %5462 = vrsqrt.f32 %v260_v9  ;;  %v255_v13 = vmul.f32 0.03125, %v243_v10 }
 0x215   :  { %v261_v17 = vadd.f32 1e-05, %v255_v13 }
 0x216   :  { %v246_v18 = vpop.xlane.xlu1 %245 }
 0x217   :  { %5464 = vrsqrt.f32 %v261_v17  ;;  %v256_v23 = vmul.f32 0.03125, %v246_v18 }
 0x219   :  { %v5461_v26 = vpop.eup %5460  ;;  %v262_v27 = vadd.f32 1e-05, %v256_v23 }
 0x21a   :  { %v249_v28 = vpop.xlane.xlu0 %248  ;;  %v271_v32 = vmul.f32 %v5461_v26, %v5743_v39 }
 0x21b   :  { %5466 = vrsqrt.f32 %v262_v27  ;;  %v257_v37 = vmul.f32 0.03125, %v249_v28 }
 0x21c   :  { %v252_v38 = vpop.xlane.xlu1 %251  ;;  %v281_v49 = vmul.f32 %v280_v36, %v271_v32  ;;  %v7836_v32 = vmov 0.0|0.0  }
 0x21d   :  { %v5463_v41 = vpop.eup %5462  ;;  %v263_v42 = vadd.f32 1e-05, %v257_v37  ;;  %v258_v45 = vmul.f32 0.03125, %v252_v38  ;;  %4412 = vmatprep.subr.bf16.mxu1 %v7836_v32  ;;  %4460 = vmatprep.subr.bf16.mxu0 %v7836_v32 }
 0x21e   :  { %v272_v47 = vmul.f32 %v5463_v41, %v5748_v43  ;;  %v291_v57 = vadd.f32 %v290_v50, %v281_v49  ;;  %v4829_v24 = vpop.permute.xlu0 %4828 }
 0x21f   :  { %5468 = vrsqrt.f32 %v263_v42  ;;  %v264_v52 = vadd.f32 1e-05, %v258_v45  ;;  %v5905_v45 = vunpack.i.h.bf16 %v4829_v24 }
 0x220   :  { %v282_v54 = vmul.f32 %v280_v36, %v272_v47  ;;  %v4834_v17 = vpop.permute.xlu1 %4833  ;;  %v5907_v47 = vunpack.i.l.bf16 %v4829_v24 }
 0x221   :  { %v5465_v55 = vpop.eup %5464  ;;  %5470 = vrsqrt.f32 %v264_v52  ;;  %v5897_v37 = vunpack.i.l.bf16 %v4834_v17 }
 0x222   :  { %v292_v39 = vadd.f32 %v290_v50, %v282_v54  ;;  %v273_v58 = vmul.f32 %v5465_v55, %v5754_v48  ;;  %v4849_v27 = vpop.permute.xlu0 %4848 }
 0x223   :  { %7967 = vst [vmem:[#allocation18_spill] sm:$0xff] %v5897_v37 }
 0x224   :  { %v297_v60 = vpack.c.bf16 %v292_v39, %v291_v57  ;;  %v283_v3 = vmul.f32 %v280_v36, %v273_v58 }
 0x225   :  { %v5467_v63 = vpop.eup %5466 }
 0x226   :  { %4261 = vmatmul.mubr.msk.bf16.vlgmr.msra.gmra.mrb[0].mxu1 %vm197_vm2, %v297_v60  ;;  %v274_v0 = vmul.f32 %v5467_v63, %v5760_v53  ;;  %v293_v5 = vadd.f32 %v290_v50, %v283_v3  ;;  %v4859_v31 = vpop.permute.xlu0 %4858  ;;  %v5925_v63 = vunpack.i.h.bf16 %v4849_v27 }
 0x227   :  { %4264 = vmatprep.mubr.msk.bf16.mxu1 %vm5653_vm0, %v7834_v1  ;;  %v5915_v55 = vunpack.i.h.bf16 %v4859_v31  ;;  %v5917_v57 = vunpack.i.l.bf16 %v4859_v31 }
 0x228   :  { %v284_v43 = vmul.f32 %v280_v36, %v274_v0  ;;  %v5927_v0 = vunpack.i.l.bf16 %v4849_v27 }
 0x229   :  { %v5469_v4 = vpop.eup %5468 }
 0x22a   :  { %v294_v6 = vadd.f32 %v290_v50, %v284_v43  ;;  %v275_v7 = vmul.f32 %v5469_v4, %v5766_v59  ;;  %v4839_v59 = vpop.permute.xlu1 %4838  ;;  %7973 = vst [vmem:[#allocation24_spill] sm:$0xff] %v5927_v0 }
 0x22b   :  { %v5471_v8 = vpop.eup %5470  ;;  %v5899_v38 = vunpack.i.h.bf16 %v4839_v59  ;;  %v5901_v41 = vunpack.i.l.bf16 %v4839_v59 }
 0x22c   :  { %v298_v9 = vpack.c.bf16 %v294_v6, %v293_v5  ;;  %v276_v48 = vmul.f32 %v5471_v8, %v5770_v62  ;;  %v285_v10 = vmul.f32 %v280_v36, %v275_v7 }
 0x22d   :  { %7968 = vst [vmem:[#allocation19_spill] sm:$0xff] %v5899_v38  ;;  %7969 = vst [vmem:[#allocation20_spill] sm:$0xff] %v5901_v41 }
 0x22e   :  { %4265 = vmatmul.mubr.msk.bf16.gmra.mrb[4].mxu1 %vm197_vm2, %v298_v9  ;;  %v286_v11 = vmul.f32 %v280_v36, %v276_v48  ;;  %v295_v13 = vadd.f32 %v290_v50, %v285_v10  ;;  %v4844_v18 = vpop.permute.xlu1 %4843  ;;  %v5895_v36 = vunpack.i.h.bf16 %v4834_v17 }
 0x22f   :  { %4268 = vmatprep.mubr.msk.bf16.mxu1 %vm5653_vm0, %v7834_v1  ;;  %v5903_v42 = vunpack.i.l.bf16 %v4844_v18  ;;  %v5911_v52 = vunpack.i.h.bf16 %v4844_v18 }
 0x230   :  { %v296_v53 = vadd.f32 %v290_v50, %v286_v11 }
 0x232   :  { %v299_v14 = vpack.c.bf16 %v296_v53, %v295_v13  ;;  %v4854_v20 = vpop.permute.xlu1 %4853 }
 0x233   :  { %v5921_v58 = vunpack.i.h.bf16 %v4854_v20  ;;  %v5923_v60 = vunpack.i.l.bf16 %v4854_v20 }
 0x235   :  { %7971 = vst [vmem:[#allocation22_spill] sm:$0xff] %v5921_v58  ;;  %7972 = vst [vmem:[#allocation23_spill] sm:$0xff] %v5923_v60 }
 0x236   :  { %4269 = vmatmul.mubr.msk.bf16.gmra.mrb[8].mxu1 %vm197_vm2, %v299_v14  ;;  %v4864_v23 = vpop.permute.xlu1 %4863 }
 0x237   :  { %839 = vmatprep.mubr.f32.mxu1 %v7834_v1  ;;  %v5929_v43 = vunpack.i.h.bf16 %v4864_v23  ;;  %v5967_v59 = vunpack.i.l.bf16 %v4864_v23 }
 0x239   :  { %7974 = vst [vmem:[#allocation25_spill] sm:$0xff] %v5929_v43  ;;  %7979 = vst [vmem:[#allocation30_spill] sm:$0xff] %v5967_v59 }
 0x23a   :  { %v4874_v62 = vpop.permute.xlu1 %4873 }
 0x23b   :  { %v5931_v4 = vunpack.i.l.bf16 %v4874_v62  ;;  %v5969_v18 = vunpack.i.h.bf16 %v4874_v62 }
 0x23d   :  { %7975 = vst [vmem:[#allocation26_spill] sm:$0xff] %v5931_v4  ;;  %7980 = vst [vmem:[#allocation31_spill] sm:$0xff] %v5969_v18 }
 0x23e   :  { %v4884_v26 = vpop.permute.xlu1 %4883 }
 0x23f   :  { %v5909_v49 = vunpack.i.l.bf16 %v4884_v26  ;;  %v5913_v54 = vunpack.i.h.bf16 %v4884_v26 }
 0x242   :  { %v4894_v28 = vpop.permute.xlu1 %4893 }
 0x243   :  { %v5933_v5 = vunpack.i.h.bf16 %v4894_v28  ;;  %v5971_v20 = vunpack.i.l.bf16 %v4894_v28 }
 0x245   :  { %7976 = vst [vmem:[#allocation27_spill] sm:$0xff] %v5933_v5  ;;  %7981 = vst [vmem:[#allocation32_spill] sm:$0xff] %v5971_v20 }
 0x246   :  { %v4904_v50 = vpop.permute.xlu1 %4903 }
 0x247   :  { %v5935_v6 = vunpack.i.l.bf16 %v4904_v50  ;;  %v5973_v26 = vunpack.i.h.bf16 %v4904_v50 }
 0x249   :  { %7977 = vst [vmem:[#allocation28_spill] sm:$0xff] %v5935_v6  ;;  %7982 = vst [vmem:[#allocation33_spill] sm:$0xff] %v5973_v26 }
 0x2f9   :  { %v5919_v39 = vpop.f32.mrb[0].mxu1 }
 0x2fa   :  { %7970 = vst [vmem:[#allocation21_spill] sm:$0xff] %v5919_v39  ;;  %v4262_v3 = vpop.f32.mrb[1].mxu1  ;;  %v478_v9 = vmul.f32 %v5907_v47, %v5919_v39  ;;  %v5945_v10 = vmul.f32 %v5903_v42, %v5919_v39  ;;  %v5949_v11 = vmul.f32 %v5909_v49, %v5919_v39  ;;  %v5961_v14 = vmul.f32 %v5917_v57, %v5919_v39 }
 0x2fb   :  { %v5937_v7 = vpop.f32.mrb[2].mxu1  ;;  %v481_v23 = vmul.f32 %v5895_v36, %v5919_v39  ;;  %v493_v62 = vmul.f32 %v5929_v43, %v5919_v39  ;;  %v5988_v28 = vmul.f32 %v5925_v63, %v5919_v39  ;;  %v5992_v50 = vmul.f32 %v5933_v5, %v5919_v39 }
 0x2fc   :  { %7978 = vst [vmem:[#allocation29_spill] sm:$0xff] %v5937_v7  ;;  %v4263_v8 = vpop.f32.mrb[3].mxu1  ;;  %v479_v48 = vmul.f32 %v5905_v45, %v5937_v7  ;;  %v5953_v53 = vmul.f32 %v5911_v52, %v5937_v7  ;;  %v5957_v13 = vmul.f32 %v5913_v54, %v5937_v7  ;;  %v5965_v17 = vmul.f32 %v5915_v55, %v5937_v7 }
 0x2fd   :  { %v6004_v1 = vmul.f32 %v5935_v6, %v5937_v7 }
 0x2fe   :  { %v4867_v24 = vpack.i.bf16 %v479_v48, %v478_v9  ;;  %v488_v9 = vmul.f32 %v5923_v60, %v5937_v7  ;;  %v482_v48 = vmul.f32 %v5901_v41, %v5937_v7 }
 0x300   :  { %4868 = vrot.lane.b32.xlu0 %v4867_v24, %s5656_s30  ;;  %v494_v24 = vmul.f32 %v5931_v4, %v5937_v7 }
 0x301   :  { %v5994_v8 = vpop.f32.mrb[4].mxu1 }
 0x302   :  { %v4266_v32 = vpop.f32.mrb[5].mxu1  ;;  %v489_v3 = vmul.f32 %v5921_v58, %v5994_v8  ;;  %v480_v31 = vmul.f32 %v5897_v37, %v5994_v8  ;;  %v492_v27 = vmul.f32 %v5967_v59, %v5994_v8  ;;  %v483_v33 = vmul.f32 %v5899_v38, %v5994_v8 }
 0x303   :  { %v6014_v30 = vpop.f32.mrb[6].mxu1  ;;  %v495_v25 = vmul.f32 %v5969_v18, %v5994_v8  ;;  %v486_v32 = vmul.f32 %v5927_v0, %v5994_v8  ;;  %v498_v22 = vmul.f32 %v5971_v20, %v5994_v8  ;;  %v501_v16 = vmul.f32 %v5973_v26, %v5994_v8 }
 0x304   :  { %v4267_v12 = vpop.f32.mrb[7].mxu1  ;;  %v4912_v21 = vpack.i.bf16 %v489_v3, %v488_v9  ;;  %v4877_v7 = vpack.i.bf16 %v481_v23, %v480_v31  ;;  %v4922_v39 = vpack.i.bf16 %v493_v62, %v492_v27  ;;  %v4887_v61 = vpack.i.bf16 %v483_v33, %v482_v48 }
 0x305   :  { %v4932_v51 = vpack.i.bf16 %v495_v25, %v494_v24  ;;  %v4907_v44 = vpack.i.bf16 %v5988_v28, %v486_v32  ;;  %v4952_v35 = vpack.i.bf16 %v5992_v50, %v498_v22  ;;  %v4962_v2 = vpack.i.bf16 %v501_v16, %v6004_v1 }
 0x306   :  { %4913 = vrot.lane.b32.xlu1 %v4912_v21, %s5656_s30  ;;  %4878 = vrot.lane.b32.xlu0 %v4877_v7, %s5656_s30  ;;  %v502_v19 = vmul.f32 %v5907_v47, %v6014_v30  ;;  %v505_v12 = vmul.f32 %v5895_v36, %v6014_v30  ;;  %v517_v33 = vmul.f32 %v5929_v43, %v6014_v30 }
 0x307   :  { %v520_v22 = vmul.f32 %v5909_v49, %v6014_v30  ;;  %v508_v1 = vmul.f32 %v5903_v42, %v6014_v30  ;;  %v511_v16 = vmul.f32 %v5925_v63, %v6014_v30  ;;  %v514_v21 = vmul.f32 %v5917_v57, %v6014_v30 }
 0x309   :  { %v6035_v25 = vpop.f32.mrb[8].mxu1 }
 0x30a   :  { %v4270_v7 = vpop.f32.mrb[9].mxu1  ;;  %4923 = vrot.lane.b32.xlu1 %v4922_v39, %s5656_s30  ;;  %4888 = vrot.lane.b32.xlu0 %v4887_v61, %s5656_s30  ;;  %v503_v27 = vmul.f32 %v5905_v45, %v6035_v25  ;;  %v512_v31 = vmul.f32 %v5923_v60, %v6035_v25  ;;  %v506_v3 = vmul.f32 %v5901_v41, %v6035_v25 }
 0x30b   :  { %v6053_v23 = vpop.f32.mrb[10].mxu1  ;;  %v521_v62 = vmul.f32 %v5913_v54, %v6035_v25  ;;  %v509_v28 = vmul.f32 %v5911_v52, %v6035_v25  ;;  %v524_v61 = vmul.f32 %v5935_v6, %v6035_v25  ;;  %v515_v39 = vmul.f32 %v5915_v55, %v6035_v25 }
 0x30c   :  { %v4271_v50 = vpop.f32.mrb[11].mxu1  ;;  %v4927_v9 = vpack.i.bf16 %v503_v27, %v502_v19  ;;  %v513_v48 = vmul.f32 %v5921_v58, %v6053_v23  ;;  %v504_v24 = vmul.f32 %v5897_v37, %v6053_v23  ;;  %v516_v32 = vmul.f32 %v5967_v59, %v6053_v23 }
 0x30d   :  { %v507_v7 = vmul.f32 %v5899_v38, %v6053_v23  ;;  %v4992_v43 = vpack.i.bf16 %v521_v62, %v520_v22  ;;  %v4957_v60 = vpack.i.bf16 %v509_v28, %v508_v1  ;;  %v525_v6 = vmul.f32 %v5973_v26, %v6053_v23 }
 0x30e   :  { %4933 = vrot.lane.b32.xlu1 %v4932_v51, %s5656_s30  ;;  %v7983_v19 = vpack.i.bf16 %v5953_v53, %v5945_v10  ;;  %v4972_v27 = vpack.i.bf16 %v513_v48, %v512_v31  ;;  %v4937_v50 = vpack.i.bf16 %v505_v12, %v504_v24  ;;  %v4982_v58 = vpack.i.bf16 %v517_v33, %v516_v32 }
 0x30f   :  { %v4947_v37 = vpack.i.bf16 %v507_v7, %v506_v3  ;;  %v5002_v59 = vpack.i.bf16 %v525_v6, %v524_v61  ;;  %v510_v38 = vmul.f32 %v5927_v0, %v6053_v23  ;;  %v4977_v22 = vpack.i.bf16 %v515_v39, %v514_v21 }
 0x310   :  { %4898 = vrot.lane.b32.xlu0 %v7983_v19, %s5656_s30  ;;  %v518_v1 = vmul.f32 %v5931_v4, %v6035_v25  ;;  %v519_v51 = vmul.f32 %v5969_v18, %v6053_v23  ;;  %v522_v62 = vmul.f32 %v5971_v20, %v6053_v23  ;;  %v523_v10 = vmul.f32 %v5933_v5, %v6014_v30 }
 0x311   :  { %v4967_v53 = vpack.i.bf16 %v511_v16, %v510_v38  ;;  %v7984_v6 = vpack.i.bf16 %v5957_v13, %v5949_v11  ;;  %v7985_v21 = vpack.i.bf16 %v5965_v17, %v5961_v14 }
 0x312   :  { %v4987_v12 = vpack.i.bf16 %v519_v51, %v518_v1  ;;  %v4997_v33 = vpack.i.bf16 %v523_v10, %v522_v62 }
 0x313   :  { %4943 = vrot.lane.b32.xlu1 %v7984_v6, %s5656_s30 }
 0x314   :  { %4908 = vrot.lane.b32.xlu0 %v4907_v44, %s5656_s30  ;;  %v7990_v44 = vld [vmem:[#allocation14_spill] sm:$0xff] }
 0x317   :  { %4953 = vrot.lane.b32.xlu1 %v4952_v35, %s5656_s30  ;;  %v7988_v35 = vld [vmem:[#allocation12_spill] sm:$0xff] }
 0x318   :  { %4918 = vrot.lane.b32.xlu0 %v7985_v21, %s5656_s30 }
 0x31b   :  { %4963 = vrot.lane.b32.xlu1 %v4962_v2, %s5656_s30 }
 0x31c   :  { %4928 = vrot.lane.b32.xlu0 %v4927_v9, %s5656_s30 }
 0x31f   :  { %4973 = vrot.lane.b32.xlu1 %v4972_v27, %s5656_s30 }
 0x320   :  { %4938 = vrot.lane.b32.xlu0 %v4937_v50, %s5656_s30 }
 0x323   :  { %4983 = vrot.lane.b32.xlu1 %v4982_v58, %s5656_s30 }
 0x324   :  { %4948 = vrot.lane.b32.xlu0 %v4947_v37, %s5656_s30  ;;  %v7992_v37 = vmov 0 }
 0x325   :  { %v7993_v37 = vsel %vm6137_vm3, 4294967295, %v7992_v37 }
 0x327   :  { %4993 = vrot.lane.b32.xlu1 %v4992_v43, %s5656_s30  ;;  %v7995_v43 = vmov 0.0|0.0  }
 0x328   :  { %4958 = vrot.lane.b32.xlu0 %v4957_v60, %s5656_s30 }
 0x32b   :  { %5003 = vrot.lane.b32.xlu1 %v5002_v59, %s5656_s30 }
 0x32c   :  { %4968 = vrot.lane.b32.xlu0 %v4967_v53, %s5656_s30 }
 0x32f   :  { %5013 = vrot.lane.b32.xlu1 %v5797_v15, %s5657_s3  ;;  %v7986_v15 = vld [vmem:[#allocation11_spill] sm:$0xff] }
 0x330   :  { %4978 = vrot.lane.b32.xlu0 %v4977_v22, %s5656_s30  ;;  %7994 = vst [vmem:[#allocation11_spill] sm:$0xff] %v7993_v37 }
 0x333   :  { %5023 = vrot.lane.b32.xlu1 %v5816_v34, %s5657_s3  ;;  %v7987_v34 = vld [vmem:[#allocation16_spill] sm:$0xff] }
 0x334   :  { %4988 = vrot.lane.b32.xlu0 %v4987_v12, %s5656_s30 }
 0x337   :  { %5033 = vrot.lane.b32.xlu1 %v5827_v40, %s5657_s3  ;;  %v7989_v40 = vld [vmem:[#allocation13_spill] sm:$0xff] }
 0x338   :  { %4998 = vrot.lane.b32.xlu0 %v4997_v33, %s5656_s30 }
 0x33b   :  { %5043 = vrot.lane.b32.xlu1 %v5838_v46, %s5657_s3 }
 0x33c   :  { %5008 = vrot.lane.b32.xlu0 %v5812_v29, %s5657_s3  ;;  %v7991_v29 = vld [vmem:[#allocation15_spill] sm:$0xff] }
 0x33f   :  { %5053 = vrot.lane.b32.xlu1 %v5854_v56, %s5657_s3 }
 0x340   :  { %5018 = vrot.lane.b32.xlu0 %v7986_v15, %s5657_s3 }
 0x343   :  { %5063 = vrot.lane.b32.xlu1 %v7987_v34, %s5657_s3 }
 0x344   :  { %5028 = vrot.lane.b32.xlu0 %v7988_v35, %s5657_s3 }
 0x348   :  { %5038 = vrot.lane.b32.xlu0 %v7989_v40, %s5657_s3 }
 0x34c   :  { %5048 = vrot.lane.b32.xlu0 %v7990_v44, %s5657_s3 }
 0x350   :  { %5058 = vrot.lane.b32.xlu0 %v7991_v29, %s5657_s3 }
 0x372   :  { %v4869_v46 = vpop.permute.xlu0 %4868 }
 0x373   :  { %v4871_v56 = vunpack.i.h.bf16 %v4869_v46  ;;  %v4870_v2 = vunpack.i.l.bf16 %v4869_v46 }
 0x375   :  { %v4413_v38 = vpack.c.bf16 %v4871_v56, %v4870_v2 }
 0x377   :  { %4415 = vmatpush1.bf16.xpose.msk.msra.mxu1 %vm6137_vm3, %v4413_v38 }
 0x378   :  { %v4914_v58 = vpop.permute.xlu1 %4913  ;;  %v4879_v60 = vpop.permute.xlu0 %4878  ;;  %4416 = vmatprep.subr.bf16.mxu1 %v7995_v43 }
 0x379   :  { %v4881_v11 = vunpack.i.h.bf16 %v4879_v60  ;;  %v4880_v13 = vunpack.i.l.bf16 %v4879_v60  ;;  %v4916_v29 = vunpack.i.h.bf16 %v4914_v58  ;;  %v4915_v46 = vunpack.i.l.bf16 %v4914_v58 }
 0x37b   :  { %v4417_v59 = vpack.c.bf16 %v4881_v11, %v4880_v13  ;;  %v4433_v11 = vpack.c.bf16 %v4916_v29, %v4915_v46 }
 0x37c   :  { %v6144_v14 = vpop.permute.xlu1 %4923  ;;  %v4889_v17 = vpop.permute.xlu0 %4888 }
 0x37d   :  { %v4891_v3 = vunpack.i.h.bf16 %v4889_v17  ;;  %v4890_v28 = vunpack.i.l.bf16 %v4889_v17  ;;  %v4925_v46 = vunpack.i.l.bf16 %v6144_v14 }
 0x37f   :  { %4419 = vmatpush1.bf16.xpose.msk.msra.mxu1 %vm6137_vm3, %v4417_v59  ;;  %v4421_v9 = vpack.c.bf16 %v4891_v3, %v4890_v28 }
 0x380   :  { %v6148_v16 = vpop.permute.xlu1 %4933  ;;  %4420 = vmatprep.subr.bf16.mxu1 %v7995_v43 }
 0x382   :  { %v4899_v31 = vpop.permute.xlu0 %4898 }
 0x383   :  { %v4901_v32 = vunpack.i.h.bf16 %v4899_v31  ;;  %v4900_v7 = vunpack.i.l.bf16 %v4899_v31 }
 0x385   :  { %v6151_v61 = vpop.permute.xlu1 %4943  ;;  %v4425_v50 = vpack.c.bf16 %v4901_v32, %v4900_v7  ;;  %v7998_v7 = vld [vmem:[#allocation21_spill] sm:$0xff] }
 0x386   :  { %v4909_v39 = vpop.permute.xlu0 %4908 }
 0x387   :  { %4423 = vmatpush1.bf16.xpose.msk.msra.mxu1 %vm6137_vm3, %v4421_v9  ;;  %v4911_v53 = vunpack.i.h.bf16 %v4909_v39  ;;  %v4910_v6 = vunpack.i.l.bf16 %v4909_v39 }
 0x388   :  { %4424 = vmatprep.subr.bf16.mxu1 %v7995_v43 }
 0x389   :  { %v6155_v48 = vpop.permute.xlu1 %4953  ;;  %v4429_v34 = vpack.c.bf16 %v4911_v53, %v4910_v6  ;;  %v4926_v6 = vunpack.i.h.bf16 %v6144_v14 }
 0x38a   :  { %v4919_v24 = vpop.permute.xlu0 %4918 }
 0x38b   :  { %v4921_v58 = vunpack.i.h.bf16 %v4919_v24  ;;  %v4920_v31 = vunpack.i.l.bf16 %v4919_v24 }
 0x38d   :  { %v6158_v19 = vpop.permute.xlu1 %4963 }
 0x38e   :  { %v4929_v27 = vpop.permute.xlu0 %4928 }
 0x38f   :  { %v4931_v22 = vunpack.i.h.bf16 %v4929_v27  ;;  %v4930_v1 = vunpack.i.l.bf16 %v4929_v27  ;;  %4427 = vmatpush1.bf16.xpose.msk.msra.mxu1 %vm6137_vm3, %v4425_v50 }
 0x390   :  { %4428 = vmatprep.subr.bf16.mxu1 %v7995_v43 }
 0x391   :  { %v4461_v51 = vpack.c.bf16 %v4931_v22, %v4930_v1  ;;  %v6162_v62 = vpop.permute.xlu1 %4973 }
 0x392   :  { %v4939_v10 = vpop.permute.xlu0 %4938 }
 0x393   :  { %4463 = vmatpush1.bf16.xpose.msk.msra.mxu0 %vm6137_vm3, %v4461_v51  ;;  %v4941_v12 = vunpack.i.h.bf16 %v4939_v10  ;;  %v4940_v33 = vunpack.i.l.bf16 %v4939_v10  ;;  %v4437_v51 = vpack.c.bf16 %v4921_v58, %v4920_v31  ;;  %v4976_v58 = vunpack.i.h.bf16 %v6162_v62 }
 0x394   :  { %4464 = vmatprep.subr.bf16.mxu0 %v7995_v43  ;;  %v4975_v31 = vunpack.i.l.bf16 %v6162_v62 }
 0x395   :  { %v6168_v21 = vpop.permute.xlu1 %4983  ;;  %v4465_v35 = vpack.c.bf16 %v4941_v12, %v4940_v33 }
 0x396   :  { %v4949_v15 = vpop.permute.xlu0 %4948 }
 0x397   :  { %4431 = vmatpush1.bf16.xpose.msk.msra.mxu1 %vm6137_vm3, %v4429_v34  ;;  %v4951_v56 = vunpack.i.h.bf16 %v4949_v15  ;;  %v4950_v2 = vunpack.i.l.bf16 %v4949_v15 }
 0x398   :  { %4432 = vmatprep.subr.bf16.mxu1 %v7995_v43 }
 0x399   :  { %v6172_v40 = vpop.permute.xlu1 %4993  ;;  %v4469_v13 = vpack.c.bf16 %v4951_v56, %v4950_v2  ;;  %v4936_v56 = vunpack.i.h.bf16 %v6148_v16  ;;  %v4935_v2 = vunpack.i.l.bf16 %v6148_v16 }
 0x39a   :  { %v4959_v44 = vpop.permute.xlu0 %4958 }
 0x39b   :  { %4467 = vmatpush1.bf16.xpose.msk.msra.mxu0 %vm6137_vm3, %v4465_v35  ;;  %v4961_v39 = vunpack.i.h.bf16 %v4959_v44  ;;  %v4960_v9 = vunpack.i.l.bf16 %v4959_v44  ;;  %v8001_v35 = vld [vmem:[#allocation29_spill] sm:$0xff] }
 0x39c   :  { %4468 = vmatprep.subr.bf16.mxu0 %v7995_v43 }
 0x39d   :  { %v6178_v38 = vpop.permute.xlu1 %5003  ;;  %v4473_v15 = vpack.c.bf16 %v4961_v39, %v4960_v9 }
 0x39e   :  { %v6180_v60 = vpop.permute.xlu0 %4968 }
 0x39f   :  { %4435 = vmatpush1.bf16.xpose.msk.msra.mxu1 %vm6137_vm3, %v4433_v11  ;;  %v4971_v16 = vunpack.i.h.bf16 %v6180_v60  ;;  %v4970_v9 = vunpack.i.l.bf16 %v6180_v60  ;;  %v4445_v60 = vpack.c.bf16 %v4936_v56, %v4935_v2 }
 0x3a0   :  { %4436 = vmatprep.subr.bf16.mxu1 %v7995_v43 }
 0x3a1   :  { %v5014_v17 = vpop.permute.xlu1 %5013 }
 0x3a2   :  { %v6184_v59 = vpop.permute.xlu0 %4978  ;;  %v6187_v3 = vunpack.i.h.bf16 %v5014_v17  ;;  %v6189_v28 = vunpack.i.l.bf16 %v5014_v17 }
 0x3a3   :  { %4471 = vmatpush1.bf16.xpose.msk.msra.mxu0 %vm6137_vm3, %v4469_v13 }
 0x3a4   :  { %7996 = vst [vmem:[#allocation16_spill] sm:$0xff] %v6187_v3  ;;  %7997 = vst [vmem:[#allocation12_spill] sm:$0xff] %v6189_v28  ;;  %4472 = vmatprep.subr.bf16.mxu0 %v7995_v43  ;;  %v600_v32 = vmul.f32 %v6189_v28, %v5994_v8  ;;  %v601_v27 = vmul.f32 %v6187_v3, %v7998_v7  ;;  %v6200_v24 = vmul.f32 %v6189_v28, %v6053_v23 }
 0x3a5   :  { %v5024_v50 = vpop.permute.xlu1 %5023  ;;  %v6206_v1 = vmul.f32 %v6187_v3, %v6014_v30 }
 0x3a6   :  { %v6202_v22 = vpop.permute.xlu0 %4988  ;;  %v6208_v10 = vunpack.i.h.bf16 %v5024_v50  ;;  %v6210_v53 = vunpack.i.l.bf16 %v5024_v50  ;;  %v5072_v12 = vpack.i.bf16 %v601_v27, %v600_v32 }
 0x3a7   :  { %4439 = vmatpush1.bf16.xpose.msk.msra.mxu1 %vm6137_vm3, %v4437_v51 }
 0x3a8   :  { %7999 = vst [vmem:[#allocation13_spill] sm:$0xff] %v6208_v10  ;;  %8000 = vst [vmem:[#allocation14_spill] sm:$0xff] %v6210_v53  ;;  %v604_v34 = vmul.f32 %v6210_v53, %v7998_v7  ;;  %v605_v44 = vmul.f32 %v6208_v10, %v8001_v35  ;;  %v6223_v29 = vmul.f32 %v6210_v53, %v6014_v30  ;;  %5073 = vrot.lane.b32.xlu1 %v5072_v12, %s5657_s3 }
 0x3a9   :  { %v5034_v11 = vpop.permute.xlu1 %5033  ;;  %4440 = vmatprep.subr.bf16.mxu1 %v7995_v43  ;;  %v6234_v17 = vmul.f32 %v6208_v10, %v6035_v25  ;;  %v4441_v12 = vpack.c.bf16 %v4926_v6, %v4925_v46  ;;  %v4481_v6 = vpack.c.bf16 %v4976_v58, %v4975_v31  ;;  %v4477_v46 = vpack.c.bf16 %v4971_v16, %v4970_v9 }
 0x3aa   :  { %v6229_v13 = vpop.permute.xlu0 %4998  ;;  %v6238_v14 = vunpack.i.h.bf16 %v5034_v11  ;;  %v6240_v39 = vunpack.i.l.bf16 %v5034_v11  ;;  %v5082_v32 = vpack.i.bf16 %v605_v44, %v604_v34 }
 0x3ab   :  { %4475 = vmatpush1.bf16.xpose.msk.msra.mxu0 %vm6137_vm3, %v4473_v15 }
 0x3ac   :  { %8002 = vst [vmem:[#allocation15_spill] sm:$0xff] %v6238_v14  ;;  %8003 = vst [vmem:[#allocation21_spill] sm:$0xff] %v6240_v39  ;;  %4476 = vmatprep.subr.bf16.mxu0 %v7995_v43  ;;  %v6251_v62 = vmul.f32 %v6240_v39, %v8001_v35  ;;  %v6255_v50 = vmul.f32 %v6238_v14, %v5994_v8  ;;  %v6259_v51 = vmul.f32 %v6240_v39, %v6035_v25 }
 0x3ad   :  { %5083 = vrot.lane.b32.xlu1 %v5082_v32, %s5657_s3  ;;  %v5044_v34 = vpop.permute.xlu1 %5043  ;;  %v6265_v11 = vmul.f32 %v6238_v14, %v6053_v23 }
 0x3ae   :  { %v5009_v44 = vpop.permute.xlu0 %5008  ;;  %v6267_v27 = vunpack.i.h.bf16 %v5044_v34  ;;  %v6269_v33 = vunpack.i.l.bf16 %v5044_v34 }
 0x3af   :  { %v6271_v3 = vunpack.i.h.bf16 %v5009_v44  ;;  %v6273_v39 = vunpack.i.l.bf16 %v5009_v44  ;;  %4443 = vmatpush1.bf16.xpose.msk.msra.mxu1 %vm6137_vm3, %v4441_v12 }
 0x3b0   :  { %8004 = vst [vmem:[#allocation29_spill] sm:$0xff] %v6267_v27  ;;  %8005 = vst [vmem:[#allocation34_spill] sm:$0xff] %v6269_v33  ;;  %4444 = vmatprep.subr.bf16.mxu1 %v7995_v43  ;;  %v6292_v9 = vmul.f32 %v6269_v33, %v5994_v8  ;;  %v6296_v12 = vmul.f32 %v6267_v27, %v7998_v7  ;;  %v6300_v2 = vmul.f32 %v6269_v33, %v6053_v23 }
 0x3b1   :  { %8006 = vst [vmem:[#allocation35_spill] sm:$0xff] %v6271_v3  ;;  %8007 = vst [vmem:[#allocation36_spill] sm:$0xff] %v6273_v39  ;;  %v622_v32 = vmul.f32 %v6273_v39, %v6014_v30  ;;  %v623_v34 = vmul.f32 %v6271_v3, %v6035_v25  ;;  %v598_v44 = vmul.f32 %v6273_v39, %v7998_v7  ;;  %v5054_v31 = vpop.permute.xlu1 %5053 }
 0x3b2   :  { %v599_v58 = vmul.f32 %v6271_v3, %v8001_v35  ;;  %v5019_v16 = vpop.permute.xlu0 %5018  ;;  %v6304_v56 = vmul.f32 %v6267_v27, %v6014_v30  ;;  %v6306_v15 = vunpack.i.h.bf16 %v5054_v31  ;;  %v6308_v14 = vunpack.i.l.bf16 %v5054_v31 }
 0x3b3   :  { %v6310_v39 = vunpack.i.h.bf16 %v5019_v16  ;;  %v6312_v28 = vunpack.i.l.bf16 %v5019_v16  ;;  %4479 = vmatpush1.bf16.xpose.msk.msra.mxu0 %vm6137_vm3, %v4477_v46  ;;  %v5127_v26 = vpack.i.bf16 %v623_v34, %v622_v32  ;;  %v4945_v32 = vunpack.i.l.bf16 %v6151_v61 }
 0x3b4   :  { %8008 = vst [vmem:[#allocation37_spill] sm:$0xff] %v6306_v15  ;;  %8009 = vst [vmem:[#allocation38_spill] sm:$0xff] %v6308_v14  ;;  %v5067_v20 = vpack.i.bf16 %v599_v58, %v598_v44  ;;  %4480 = vmatprep.subr.bf16.mxu0 %v7995_v43  ;;  %v6334_v58 = vmul.f32 %v6308_v14, %v7998_v7  ;;  %v6338_v27 = vmul.f32 %v6306_v15, %v8001_v35 }
 0x3b5   :  { %8010 = vst [vmem:[#allocation39_spill] sm:$0xff] %v6310_v39  ;;  %8011 = vst [vmem:[#allocation40_spill] sm:$0xff] %v6312_v28  ;;  %v602_v31 = vmul.f32 %v6312_v28, %v8001_v35  ;;  %v603_v16 = vmul.f32 %v6310_v39, %v5994_v8  ;;  %v626_v18 = vmul.f32 %v6312_v28, %v6035_v25  ;;  %5128 = vrot.lane.b32.xlu1 %v5127_v26, %s5657_s3  ;;  %v5064_v34 = vpop.permute.xlu1 %5063 }
 0x3b6   :  { %v627_v46 = vmul.f32 %v6310_v39, %v6053_v23  ;;  %5068 = vrot.lane.b32.xlu0 %v5067_v20, %s5657_s3  ;;  %v5029_v44 = vpop.permute.xlu0 %5028  ;;  %v6342_v33 = vmul.f32 %v6308_v14, %v6014_v30  ;;  %v6344_v39 = vunpack.i.h.bf16 %v5064_v34  ;;  %v6346_v28 = vunpack.i.l.bf16 %v5064_v34 }
 0x3b7   :  { %v6348_v26 = vunpack.i.h.bf16 %v5029_v44  ;;  %v6350_v20 = vunpack.i.l.bf16 %v5029_v44  ;;  %v5077_v0 = vpack.i.bf16 %v603_v16, %v602_v31  ;;  %v6356_v5 = vmul.f32 %v6306_v15, %v6035_v25  ;;  %4447 = vmatpush1.bf16.xpose.msk.msra.mxu1 %vm6137_vm3, %v4445_v60 }
 0x3b8   :  { %8012 = vst [vmem:[#allocation41_spill] sm:$0xff] %v6344_v39  ;;  %8013 = vst [vmem:[#allocation42_spill] sm:$0xff] %v6346_v28  ;;  %v5137_v3 = vpack.i.bf16 %v627_v46, %v626_v18  ;;  %v6366_v31 = vmul.f32 %v6346_v28, %v8001_v35  ;;  %v6370_v18 = vmul.f32 %v6344_v39, %v5994_v8  ;;  %v4981_v16 = vunpack.i.h.bf16 %v6184_v59 }
 0x3b9   :  { %8014 = vst [vmem:[#allocation43_spill] sm:$0xff] %v6348_v26  ;;  %8015 = vst [vmem:[#allocation44_spill] sm:$0xff] %v6350_v20  ;;  %v606_v34 = vmul.f32 %v6350_v20, %v5994_v8  ;;  %v607_v14 = vmul.f32 %v6348_v26, %v7998_v7  ;;  %v8016_v60 = vpack.i.bf16 %v6206_v1, %v6200_v24  ;;  %4448 = vmatprep.subr.bf16.mxu1 %v7995_v43 }
 0x3ba   :  { %5078 = vrot.lane.b32.xlu0 %v5077_v0, %s5657_s3  ;;  %v5039_v46 = vpop.permute.xlu0 %5038  ;;  %v6380_v44 = vmul.f32 %v6350_v20, %v6053_v23  ;;  %v6384_v4 = vmul.f32 %v6348_v26, %v6014_v30  ;;  %v4980_v1 = vunpack.i.l.bf16 %v6184_v59 }
 0x3bb   :  { %5133 = vrot.lane.b32.xlu1 %v8016_v60, %s5657_s3  ;;  %v6388_v41 = vunpack.i.h.bf16 %v5039_v46  ;;  %v6390_v10 = vunpack.i.l.bf16 %v5039_v46  ;;  %4483 = vmatpush1.bf16.xpose.msk.msra.mxu0 %vm6137_vm3, %v4481_v6  ;;  %v5087_v0 = vpack.i.bf16 %v607_v14, %v606_v34  ;;  %v6403_v46 = vmul.f32 %v6346_v28, %v6035_v25 }
 0x3bc   :  { %4484 = vmatprep.subr.bf16.mxu0 %v7995_v43  ;;  %v6407_v6 = vmul.f32 %v6344_v39, %v6053_v23  ;;  %v8019_v60 = vunpack.i.h.bf16 %v6151_v61  ;;  %v4485_v53 = vpack.c.bf16 %v4981_v16, %v4980_v1  ;;  %v4955_v16 = vunpack.i.l.bf16 %v6155_v48 }
 0x3bd   :  { %8017 = vst [vmem:[#allocation45_spill] sm:$0xff] %v6388_v41  ;;  %8018 = vst [vmem:[#allocation46_spill] sm:$0xff] %v6390_v10  ;;  %v610_v14 = vmul.f32 %v6390_v10, %v7998_v7  ;;  %v611_v34 = vmul.f32 %v6388_v41, %v8001_v35  ;;  %v6415_v59 = vmul.f32 %v6390_v10, %v6014_v30 }
 0x3be   :  { %v6419_v15 = vmul.f32 %v6388_v41, %v6035_v25  ;;  %v4449_v24 = vpack.c.bf16 %v8019_v60, %v4945_v32  ;;  %5088 = vrot.lane.b32.xlu0 %v5087_v0, %s5657_s3  ;;  %v5049_v39 = vpop.permute.xlu0 %5048  ;;  %v4956_v0 = vunpack.i.h.bf16 %v6155_v48  ;;  %v4986_v48 = vunpack.i.h.bf16 %v6168_v21 }
 0x3bf   :  { %5138 = vrot.lane.b32.xlu1 %v5137_v3, %s5657_s3  ;;  %v6427_v20 = vunpack.i.h.bf16 %v5049_v39  ;;  %v6429_v26 = vunpack.i.l.bf16 %v5049_v39  ;;  %v5097_v10 = vpack.i.bf16 %v611_v34, %v610_v14  ;;  %v4985_v41 = vunpack.i.l.bf16 %v6168_v21 }
 0x3c0   :  { %4451 = vmatpush1.bf16.xpose.msk.msra.mxu1 %vm6137_vm3, %v4449_v24  ;;  %v8020_v24 = vpack.i.bf16 %v6255_v50, %v6251_v62  ;;  %v8022_v28 = vpack.i.bf16 %v6296_v12, %v6292_v9 }
 0x3c1   :  { %v614_v61 = vmul.f32 %v6429_v26, %v8001_v35  ;;  %v615_v3 = vmul.f32 %v6427_v20, %v5994_v8  ;;  %v6441_v32 = vmul.f32 %v6429_v26, %v6035_v25  ;;  %v6445_v39 = vmul.f32 %v6427_v20, %v6053_v23  ;;  %4452 = vmatprep.subr.bf16.mxu1 %v7995_v43 }
 0x3c2   :  { %5093 = vrot.lane.b32.xlu0 %v8020_v24, %s5657_s3  ;;  %v5059_v1 = vpop.permute.xlu0 %5058 }
 0x3c3   :  { %v6454_v60 = vunpack.i.h.bf16 %v5059_v1  ;;  %v6456_v14 = vunpack.i.l.bf16 %v5059_v1  ;;  %4487 = vmatpush1.bf16.xpose.msk.msra.mxu0 %vm6137_vm3, %v4485_v53  ;;  %v5107_v34 = vpack.i.bf16 %v615_v3, %v614_v61  ;;  %v4453_v61 = vpack.c.bf16 %v4956_v0, %v4955_v16 }
 0x3c4   :  { %4488 = vmatprep.subr.bf16.mxu0 %v7995_v43  ;;  %v4489_v1 = vpack.c.bf16 %v4986_v48, %v4985_v41  ;;  %v4991_v41 = vunpack.i.h.bf16 %v6202_v22  ;;  %v4990_v0 = vunpack.i.l.bf16 %v6202_v22  ;;  %v4995_v22 = vunpack.i.l.bf16 %v6172_v40 }
 0x3c5   :  { %8021 = vst [vmem:[#allocation47_spill] sm:$0xff] %v6454_v60  ;;  %v618_v62 = vmul.f32 %v6456_v14, %v5994_v8  ;;  %v619_v50 = vmul.f32 %v6454_v60, %v7998_v7  ;;  %v6471_v24 = vmul.f32 %v6456_v14, %v6053_v23  ;;  %v6475_v53 = vmul.f32 %v6454_v60, %v6014_v30 }
 0x3c6   :  { %5098 = vrot.lane.b32.xlu0 %v5097_v10, %s5657_s3  ;;  %v4966_v60 = vunpack.i.h.bf16 %v6158_v19  ;;  %v4965_v10 = vunpack.i.l.bf16 %v6158_v19  ;;  %v4493_v9 = vpack.c.bf16 %v4991_v41, %v4990_v0  ;;  %v8023_v19 = vpack.i.bf16 %v6338_v27, %v6334_v58 }
 0x3c7   :  { %v5117_v21 = vpack.i.bf16 %v619_v50, %v618_v62  ;;  %v5177_v3 = vpack.i.bf16 %v6475_v53, %v6471_v24  ;;  %v8025_v27 = vpack.i.bf16 %v6370_v18, %v6366_v31  ;;  %v5006_v31 = vunpack.i.h.bf16 %v6178_v38 }
 0x3c8   :  { %4455 = vmatpush1.bf16.xpose.msk.msra.mxu1 %vm6137_vm3, %v4453_v61  ;;  %v4457_v16 = vpack.c.bf16 %v4966_v60, %v4965_v10  ;;  %v8024_v60 = vmov 0.0  }
 0x3c9   :  { %4456 = vmatprep.subr.bf16.mxu1 %v7995_v43 }
 0x3ca   :  { %5103 = vrot.lane.b32.xlu0 %v8022_v28, %s5657_s3  ;;  %v4996_v28 = vunpack.i.h.bf16 %v6172_v40  ;;  %v5001_v40 = vunpack.i.h.bf16 %v6229_v13 }
 0x3cb   :  { %4491 = vmatpush1.bf16.xpose.msk.msra.mxu0 %vm6137_vm3, %v4489_v1 }
 0x3cc   :  { %4492 = vmatprep.subr.bf16.mxu0 %v7995_v43  ;;  %v4497_v12 = vpack.c.bf16 %v4996_v28, %v4995_v22 }
 0x3ce   :  { %5108 = vrot.lane.b32.xlu0 %v5107_v34, %s5657_s3 }
 0x3d0   :  { %4459 = vmatpush1.bf16.xpose.msk.msra.mxu1 %vm6137_vm3, %v4457_v16 }
 0x3d1   :  { %4508 = vmatprep.subr.bf16.mxu1 %v7995_v43 }
 0x3d2   :  { %5113 = vrot.lane.b32.xlu0 %v8023_v19, %s5657_s3 }
 0x3d3   :  { %4495 = vmatpush1.bf16.xpose.msk.msra.mxu0 %vm6137_vm3, %v4493_v9 }
 0x3d4   :  { %4496 = vmatprep.subr.bf16.mxu0 %v7995_v43 }
 0x3d6   :  { %5118 = vrot.lane.b32.xlu0 %v5117_v21, %s5657_s3 }
 0x3d7   :  { %3957 = vmatmul.mubr.msk.f32.vlgmr.msra.gmra.mrb[12].mxu1 %vm197_vm2, %v7998_v7  ;;  %v5000_v7 = vunpack.i.l.bf16 %v6229_v13 }
 0x3d8   :  { %845 = vmatprep.mubr.f32.mxu1 %v8024_v60 }
 0x3d9   :  { %v4501_v58 = vpack.c.bf16 %v5001_v40, %v5000_v7 }
 0x3da   :  { %5123 = vrot.lane.b32.xlu0 %v8025_v27, %s5657_s3 }
 0x3db   :  { %4499 = vmatpush1.bf16.xpose.msk.msra.mxu0 %vm6137_vm3, %v4497_v12  ;;  %3958 = vmatmul.mubr.msk.f32.gmra.mrb[14].mxu1 %vm197_vm2, %v8001_v35  ;;  %v5005_v35 = vunpack.i.l.bf16 %v6178_v38 }
 0x3dc   :  { %4500 = vmatprep.subr.bf16.mxu0 %v7995_v43  ;;  %851 = vmatprep.mubr.f32.mxu1 %v8024_v60 }
 0x3dd   :  { %v4505_v18 = vpack.c.bf16 %v5006_v31, %v5005_v35 }
 0x3df   :  { %3959 = vmatmul.mubr.msk.f32.gmra.mrb[16].mxu1 %vm197_vm2, %v5994_v8 }
 0x3e3   :  { %4503 = vmatpush1.bf16.xpose.msk.msra.mxu0 %vm6137_vm3, %v4501_v58 }
 0x3e4   :  { %4504 = vmatprep.subr.bf16.mxu0 %v7995_v43 }
 0x3eb   :  { %4507 = vmatpush1.bf16.xpose.msk.msra.mxu0 %vm6137_vm3, %v4505_v18 }
 0x3ec   :  { %4544 = vmatprep.subr.bf16.mxu0 %v7995_v43 }
 0x3f2   :  { %3984 = vmatmul.mubr.msk.f32.vlgmr.msra.gmra.mrb[12].mxu0 %vm197_vm2, %v6014_v30 }
 0x3f3   :  { %1057 = vmatprep.mubr.f32.mxu0 %v8024_v60 }
 0x3f6   :  { %3985 = vmatmul.mubr.msk.f32.gmra.mrb[14].mxu0 %vm197_vm2, %v6035_v25 }
 0x3f7   :  { %1063 = vmatprep.mubr.f32.mxu0 %v8024_v60 }
 0x3fa   :  { %3986 = vmatmul.mubr.msk.f32.gmra.mrb[16].mxu0 %vm197_vm2, %v6053_v23 }
 0x41a   :  { %v5074_v8 = vpop.permute.xlu1 %5073 }
 0x41b   :  { %v5076_v21 = vunpack.i.h.bf16 %v5074_v8  ;;  %v5075_v30 = vunpack.i.l.bf16 %v5074_v8 }
 0x41d   :  { %v4512_v23 = vpack.c.bf16 %v5076_v21, %v5075_v30 }
 0x41f   :  { %v5084_v38 = vpop.permute.xlu1 %5083 }
 0x420   :  { %v5086_v7 = vunpack.i.h.bf16 %v5084_v38  ;;  %v5085_v58 = vunpack.i.l.bf16 %v5084_v38 }
 0x422   :  { %v4518_v8 = vpack.c.bf16 %v5086_v7, %v5085_v58 }
 0x427   :  { %v5129_v13 = vpop.permute.xlu1 %5128 }
 0x428   :  { %v5069_v34 = vpop.permute.xlu0 %5068  ;;  %v5131_v48 = vunpack.i.h.bf16 %v5129_v13  ;;  %v5130_v62 = vunpack.i.l.bf16 %v5129_v13 }
 0x429   :  { %v5071_v50 = vunpack.i.h.bf16 %v5069_v34  ;;  %v5070_v61 = vunpack.i.l.bf16 %v5069_v34 }
 0x42a   :  { %v4545_v1 = vpack.c.bf16 %v5131_v48, %v5130_v62 }
 0x42b   :  { %v4509_v10 = vpack.c.bf16 %v5071_v50, %v5070_v61 }
 0x42c   :  { %v5079_v0 = vpop.permute.xlu0 %5078  ;;  %4546 = vmatpush1.bf16.msra.mxu0 %v4545_v1 }
 0x42d   :  { %v5134_v41 = vpop.permute.xlu1 %5133  ;;  %4510 = vmatpush1.bf16.msra.mxu1 %v4509_v10  ;;  %4547 = vmatprep.subr.bf16.mxu0 %v7995_v43  ;;  %v5081_v19 = vunpack.i.h.bf16 %v5079_v0  ;;  %v5080_v28 = vunpack.i.l.bf16 %v5079_v0 }
 0x42e   :  { %v5136_v25 = vunpack.i.h.bf16 %v5134_v41  ;;  %v5135_v16 = vunpack.i.l.bf16 %v5134_v41  ;;  %4511 = vmatprep.subr.bf16.mxu1 %v7995_v43 }
 0x42f   :  { %v4515_v31 = vpack.c.bf16 %v5081_v19, %v5080_v28 }
 0x430   :  { %v4548_v9 = vpack.c.bf16 %v5136_v25, %v5135_v16  ;;  %v5089_v12 = vpop.permute.xlu0 %5088 }
 0x431   :  { %v5139_v22 = vpop.permute.xlu1 %5138  ;;  %4513 = vmatpush1.bf16.msra.mxu1 %v4512_v23  ;;  %v5091_v13 = vunpack.i.h.bf16 %v5089_v12  ;;  %v5090_v34 = vunpack.i.l.bf16 %v5089_v12 }
 0x432   :  { %v5141_v27 = vunpack.i.h.bf16 %v5139_v22  ;;  %v5140_v40 = vunpack.i.l.bf16 %v5139_v22  ;;  %4549 = vmatpush1.bf16.msra.mxu0 %v4548_v9  ;;  %4514 = vmatprep.subr.bf16.mxu1 %v7995_v43 }
 0x433   :  { %4550 = vmatprep.subr.bf16.mxu0 %v7995_v43  ;;  %v4521_v62 = vpack.c.bf16 %v5091_v13, %v5090_v34 }
 0x434   :  { %v4551_v35 = vpack.c.bf16 %v5141_v27, %v5140_v40  ;;  %v5094_v18 = vpop.permute.xlu0 %5093 }
 0x435   :  { %4516 = vmatpush1.bf16.msra.mxu1 %v4515_v31  ;;  %v5096_v50 = vunpack.i.h.bf16 %v5094_v18  ;;  %v5095_v61 = vunpack.i.l.bf16 %v5094_v18 }
 0x436   :  { %4552 = vmatpush1.bf16.msra.mxu0 %v4551_v35  ;;  %4517 = vmatprep.subr.bf16.mxu1 %v7995_v43 }
 0x437   :  { %4553 = vmatprep.subr.bf16.mxu0 %v7995_v43  ;;  %v4524_v21 = vpack.c.bf16 %v5096_v50, %v5095_v61 }
 0x438   :  { %v5099_v48 = vpop.permute.xlu0 %5098 }
 0x439   :  { %4519 = vmatpush1.bf16.msra.mxu1 %v4518_v8  ;;  %v5101_v30 = vunpack.i.h.bf16 %v5099_v48  ;;  %v5100_v1 = vunpack.i.l.bf16 %v5099_v48 }
 0x43a   :  { %4520 = vmatprep.subr.bf16.mxu1 %v7995_v43 }
 0x43b   :  { %v4527_v41 = vpack.c.bf16 %v5101_v30, %v5100_v1 }
 0x43c   :  { %v5104_v38 = vpop.permute.xlu0 %5103 }
 0x43d   :  { %4522 = vmatpush1.bf16.msra.mxu1 %v4521_v62  ;;  %v5106_v0 = vunpack.i.h.bf16 %v5104_v38  ;;  %v5105_v25 = vunpack.i.l.bf16 %v5104_v38 }
 0x43e   :  { %4523 = vmatprep.subr.bf16.mxu1 %v7995_v43 }
 0x43f   :  { %v4530_v23 = vpack.c.bf16 %v5106_v0, %v5105_v25 }
 0x440   :  { %v5109_v10 = vpop.permute.xlu0 %5108 }
 0x441   :  { %4525 = vmatpush1.bf16.msra.mxu1 %v4524_v21  ;;  %v5111_v9 = vunpack.i.h.bf16 %v5109_v10  ;;  %v5110_v19 = vunpack.i.l.bf16 %v5109_v10 }
 0x442   :  { %4526 = vmatprep.subr.bf16.mxu1 %v7995_v43 }
 0x443   :  { %v4533_v22 = vpack.c.bf16 %v5111_v9, %v5110_v19 }
 0x444   :  { %v5114_v16 = vpop.permute.xlu0 %5113 }
 0x445   :  { %4528 = vmatpush1.bf16.msra.mxu1 %v4527_v41  ;;  %v5116_v12 = vunpack.i.h.bf16 %v5114_v16  ;;  %v5115_v27 = vunpack.i.l.bf16 %v5114_v16 }
 0x446   :  { %4529 = vmatprep.subr.bf16.mxu1 %v7995_v43 }
 0x447   :  { %v4536_v40 = vpack.c.bf16 %v5116_v12, %v5115_v27  ;;  %v8028_v27 = vpack.i.bf16 %v6234_v17, %v6223_v29  ;;  %v8029_v17 = vpack.i.bf16 %v6419_v15, %v6415_v59  ;;  %v8032_v15 = vpack.i.bf16 %v6356_v5, %v6342_v33 }
 0x448   :  { %v5119_v28 = vpop.permute.xlu0 %5118 }
 0x449   :  { %4531 = vmatpush1.bf16.msra.mxu1 %v4530_v23  ;;  %v5121_v7 = vunpack.i.h.bf16 %v5119_v28  ;;  %v5120_v58 = vunpack.i.l.bf16 %v5119_v28  ;;  %v8026_v23 = vpack.i.bf16 %v6384_v4, %v6380_v44  ;;  %v8027_v28 = vpack.i.bf16 %v6265_v11, %v6259_v51 }
 0x44a   :  { %4532 = vmatprep.subr.bf16.mxu1 %v7995_v43 }
 0x44b   :  { %v4539_v35 = vpack.c.bf16 %v5121_v7, %v5120_v58 }
 0x44c   :  { %v5124_v31 = vpop.permute.xlu0 %5123 }
 0x44d   :  { %4534 = vmatpush1.bf16.msra.mxu1 %v4533_v22  ;;  %v5126_v18 = vunpack.i.h.bf16 %v5124_v31  ;;  %v5125_v8 = vunpack.i.l.bf16 %v5124_v31 }
 0x44e   :  { %4535 = vmatprep.subr.bf16.mxu1 %v7995_v43 }
 0x44f   :  { %v4542_v13 = vpack.c.bf16 %v5126_v18, %v5125_v8  ;;  %v8030_v18 = vpack.i.bf16 %v6304_v56, %v6300_v2  ;;  %v8031_v8 = vpack.i.bf16 %v6445_v39, %v6441_v32  ;;  %v8033_v56 = vpack.i.bf16 %v6407_v6, %v6403_v46 }
 0x451   :  { %4537 = vmatpush1.bf16.msra.mxu1 %v4536_v40 }
 0x452   :  { %4538 = vmatprep.subr.bf16.mxu1 %v7995_v43 }
 0x455   :  { %4540 = vmatpush1.bf16.msra.mxu1 %v4539_v35 }
 0x456   :  { %4541 = vmatprep.subr.bf16.mxu1 %v7995_v43 }
 0x459   :  { %4543 = vmatpush1.bf16.msra.mxu1 %v4542_v13 }
 0x45a   :  { %4580 = vmatprep.subr.bf16.mxu1 %v7995_v43 }
 0x4aa   :  { %v841_v34 = vpop.f32.mrb[12].mxu1 }
 0x4ab   :  { %v843_v48 = vpop.f32.mrb[13].mxu1  ;;  %v1070_v50 = vmul.f32 0.17677669, %v841_v34 }
 0x4ac   :  { %v1071_v62 = vmul.f32 0.17677669, %v843_v48 }
 0x4ae   :  { %v847_v61 = vpop.f32.mrb[14].mxu1  ;;  %v1082_v38 = vsel %vm66_vm1, %v1071_v62, -inf }
 0x4af   :  { %v849_v21 = vpop.f32.mrb[15].mxu1  ;;  %v1083_v30 = vmax.f32 %v1070_v50, %v1082_v38  ;;  %v1072_v10 = vmul.f32 0.17677669, %v847_v61 }
 0x4b0   :  { %v1073_v1 = vmul.f32 0.17677669, %v849_v21 }
 0x4b1   :  { %1084 = vmax.xlane.f32.xlu1 %v1083_v30 }
 0x4b2   :  { %v853_v41 = vpop.f32.mrb[16].mxu1  ;;  %v1086_v0 = vsel %vm66_vm1, %v1073_v1, -inf }
 0x4b3   :  { %v855_v25 = vpop.f32.mrb[17].mxu1  ;;  %v1087_v16 = vmax.f32 %v1072_v10, %v1086_v0  ;;  %v6578_v11 = vmul.f32 0.17677669, %v853_v41 }
 0x4b4   :  { %v6570_v58 = vmul.f32 0.17677669, %v855_v25 }
 0x4b5   :  { %1088 = vmax.xlane.f32.xlu0 %v1087_v16 }
 0x4b6   :  { %v1090_v44 = vsel %vm66_vm1, %v6570_v58, -inf }
 0x4b7   :  { %v1091_v35 = vmax.f32 %v6578_v11, %v1090_v44  ;;  %v5605_v44 = vld [vmem:[%s7832_s1 + $0x38] sm:$0xff]  }
 0x4c2   :  { %5148 = vrot.lane.b32.xlu1 %v8026_v23, %s5657_s3 }
 0x4c5   :  { %v1053_v9 = vpop.f32.mrb[12].mxu0 }
 0x4c6   :  { %v1055_v19 = vpop.f32.mrb[13].mxu0  ;;  %5153 = vrot.lane.b32.xlu1 %v8027_v28, %s5657_s3  ;;  %v6580_v31 = vmul.f32 0.17677669, %v1053_v9 }
 0x4c7   :  { %v6572_v4 = vmul.f32 0.17677669, %v1055_v19 }
 0x4c9   :  { %v1059_v22 = vpop.f32.mrb[14].mxu0  ;;  %v1094_v51 = vsel %vm66_vm1, %v6572_v4, -inf }
 0x4ca   :  { %v1061_v12 = vpop.f32.mrb[15].mxu0  ;;  %v1095_v29 = vmax.f32 %v6580_v31, %v1094_v51  ;;  %v6612_v24 = vmul.f32 0.17677669, %v1059_v22  ;;  %v5606_v51 = vld [vmem:[%s7832_s1 + $0x40] sm:$0xff]  }
 0x4cb   :  { %5143 = vrot.lane.b32.xlu0 %v8028_v27, %s5657_s3  ;;  %v6608_v2 = vmul.f32 0.17677669, %v1061_v12  ;;  %v5604_v27 = vld [vmem:[%s7832_s1 + $0x30] sm:$0xff]  }
 0x4cd   :  { %v1065_v40 = vpop.f32.mrb[16].mxu0  ;;  %v1098_v59 = vsel %vm66_vm1, %v6608_v2, -inf }
 0x4ce   :  { %v1067_v7 = vpop.f32.mrb[17].mxu0  ;;  %v1099_v32 = vmax.f32 %v6612_v24, %v1098_v59  ;;  %v6619_v33 = vmul.f32 0.17677669, %v1065_v40 }
 0x4cf   :  { %v6615_v39 = vmul.f32 0.17677669, %v1067_v7 }
 0x4d1   :  { %v1102_v5 = vsel %vm66_vm1, %v6615_v39, -inf }
 0x4d2   :  { %v1103_v46 = vmax.f32 %v6619_v33, %v1102_v5 }
 0x4ea   :  { %1092 = vmax.xlane.f32.xlu1 %v1091_v35  ;;  %1096 = vmax.xlane.f32.xlu0 %v1095_v29  ;;  %v5607_v35 = vld [vmem:[%s7832_s1 + $0x48] sm:$0xff]   ;;  %v5608_v29 = vld [vmem:[%s7832_s1 + $0x50] sm:$0xff]  }
 0x4fb   :  { %5158 = vrot.lane.b32.xlu1 %v8029_v17, %s5657_s3  ;;  %v5609_v17 = vld [vmem:[%s7832_s1 + $0x58] sm:$0xff]  }
 0x4ff   :  { %5163 = vrot.lane.b32.xlu1 %v8030_v18, %s5657_s3  ;;  %v5610_v18 = vld [vmem:[%s7832_s1 + $0x60] sm:$0xff]  }
 0x500   :  { %5178 = vrot.lane.b32.xlu0 %v5177_v3, %s5657_s3 }
 0x503   :  { %5168 = vrot.lane.b32.xlu1 %v8031_v8, %s5657_s3  ;;  %v5611_v8 = vld [vmem:[%s7832_s1 + $0x68] sm:$0xff]  }
 0x507   :  { %5173 = vrot.lane.b32.xlu1 %v8032_v15, %s5657_s3  ;;  %v5612_v15 = vld [vmem:[%s7832_s1 + $0x70] sm:$0xff]  }
 0x50b   :  { %5183 = vrot.lane.b32.xlu1 %v8033_v56, %s5657_s3  ;;  %v5613_v56 = vld [vmem:[%s7832_s1 + $0x78] sm:$0xff]  }
 0x51f   :  { %1100 = vmax.xlane.f32.xlu0 %v1099_v32 }
 0x52f   :  { %1104 = vmax.xlane.f32.xlu1 %v1103_v46 }
 0x53e   :  { %v1085_v6 = vpop.xlane.xlu1 %1084 }
 0x53f   :  { %v1106_v53 = vsub.f32 %v1070_v50, %v1085_v6  ;;  %v1107_v3 = vsub.f32 %v1071_v62, %v1085_v6 }
 0x541   :  { %v1118_v13 = vmul.f32 1.442695, %v1106_v53  ;;  %v1120_v34 = vmul.f32 1.442695, %v1107_v3  ;;  %v5614_v53 = vld [vmem:[%s7832_s1 + $0x80] sm:$0xff]  }
 0x542   :  { %v1089_v48 = vpop.xlane.xlu0 %1088  ;;  %v5149_v21 = vpop.permute.xlu1 %5148 }
 0x543   :  { %5472 = vpow2.f32 %v1118_v13  ;;  %v1108_v61 = vsub.f32 %v1072_v10, %v1089_v48  ;;  %v1109_v38 = vsub.f32 %v1073_v1, %v1089_v48  ;;  %v5151_v23 = vunpack.i.h.bf16 %v5149_v21 }
 0x544   :  { %5474 = vpow2.f32 %v1120_v34  ;;  %v5150_v9 = vunpack.i.l.bf16 %v5149_v21 }
 0x545   :  { %v1122_v30 = vmul.f32 1.442695, %v1108_v61  ;;  %v1124_v41 = vmul.f32 1.442695, %v1109_v38 }
 0x546   :  { %v5144_v0 = vpop.permute.xlu0 %5143  ;;  %v5154_v50 = vpop.permute.xlu1 %5153  ;;  %v4557_v1 = vpack.c.bf16 %v5151_v23, %v5150_v9 }
 0x547   :  { %5476 = vpow2.f32 %v1122_v30  ;;  %v5146_v25 = vunpack.i.h.bf16 %v5144_v0  ;;  %v5145_v16 = vunpack.i.l.bf16 %v5144_v0  ;;  %v5156_v28 = vunpack.i.h.bf16 %v5154_v50 }
 0x548   :  { %5478 = vpow2.f32 %v1124_v41  ;;  %v5155_v22 = vunpack.i.l.bf16 %v5154_v50 }
 0x549   :  { %v4554_v19 = vpack.c.bf16 %v5146_v25, %v5145_v16 }
 0x54a   :  { %v4560_v7 = vpack.c.bf16 %v5156_v28, %v5155_v22 }
 0x54b   :  { %4555 = vmatpush1.bf16.msra.mxu0 %v4554_v19 }
 0x54c   :  { %4556 = vmatprep.subr.bf16.mxu0 %v7995_v43 }
 0x54d   :  { %v6622_v62 = vpop.eup %5472 }
 0x54e   :  { %v6625_v10 = vpop.eup %5474 }
 0x54f   :  { %3987 = vmatprep.mubr.msk.f32.mxu1 %vm66_vm1, %v6625_v10  ;;  %4558 = vmatpush1.bf16.msra.mxu0 %v4557_v1 }
 0x550   :  { %1312 = vmatmul.mubr.f32.vlgmr.msra.gmra.mrb[18].mxu1 %v6622_v62  ;;  %4559 = vmatprep.subr.bf16.mxu0 %v7995_v43 }
 0x551   :  { %v6630_v12 = vpop.eup %5476  ;;  %4582 = vmatpush1.bf16.msra.mxu1 %v5604_v27 }
 0x552   :  { %v6636_v40 = vpop.eup %5478  ;;  %4583 = vmatprep.subr.bf16.mxu1 %v7995_v43 }
 0x553   :  { %3988 = vmatprep.mubr.msk.f32.mxu1 %vm66_vm1, %v6636_v40  ;;  %4561 = vmatpush1.bf16.msra.mxu0 %v4560_v7 }
 0x554   :  { %1317 = vmatmul.mubr.f32.gmra.mrb[20].mxu1 %v6630_v12  ;;  %4562 = vmatprep.subr.bf16.mxu0 %v7995_v43 }
 0x555   :  { %4585 = vmatpush1.bf16.msra.mxu1 %v5605_v44 }
 0x556   :  { %4586 = vmatprep.subr.bf16.mxu1 %v7995_v43 }
 0x559   :  { %4588 = vmatpush1.bf16.msra.mxu1 %v5606_v51 }
 0x55a   :  { %4589 = vmatprep.subr.bf16.mxu1 %v7995_v43 }
 0x55d   :  { %4591 = vmatpush1.bf16.msra.mxu1 %v5607_v35 }
 0x55e   :  { %4592 = vmatprep.subr.bf16.mxu1 %v7995_v43 }
 0x561   :  { %4594 = vmatpush1.bf16.msra.mxu1 %v5608_v29 }
 0x562   :  { %4595 = vmatprep.subr.bf16.mxu1 %v7995_v43 }
 0x565   :  { %4597 = vmatpush1.bf16.msra.mxu1 %v5609_v17 }
 0x566   :  { %4598 = vmatprep.subr.bf16.mxu1 %v7995_v43 }
 0x569   :  { %4600 = vmatpush1.bf16.msra.mxu1 %v5610_v18 }
 0x56a   :  { %4601 = vmatprep.subr.bf16.mxu1 %v7995_v43 }
 0x56d   :  { %4603 = vmatpush1.bf16.msra.mxu1 %v5611_v8 }
 0x56e   :  { %4604 = vmatprep.subr.bf16.mxu1 %v7995_v43 }
 0x571   :  { %4606 = vmatpush1.bf16.msra.mxu1 %v5612_v15 }
 0x572   :  { %4607 = vmatprep.subr.bf16.mxu1 %v7995_v43 }
 0x575   :  { %4609 = vmatpush1.bf16.msra.mxu1 %v5613_v56 }
 0x576   :  { %4610 = vmatprep.subr.bf16.mxu1 %v7995_v43 }
 0x577   :  { %v1093_v59 = vpop.xlane.xlu1 %1092  ;;  %v1097_v32 = vpop.xlane.xlu0 %1096 }
 0x578   :  { %v1110_v5 = vsub.f32 %v6578_v11, %v1093_v59  ;;  %v1111_v46 = vsub.f32 %v6570_v58, %v1093_v59  ;;  %v1113_v6 = vsub.f32 %v6572_v4, %v1097_v32  ;;  %v5615_v58 = vld [vmem:[%s7832_s1 + $0x88] sm:$0xff]   ;;  %v1112_v25 = vsub.f32 %v6580_v31, %v1097_v32 }
 0x579   :  { %4612 = vmatpush1.bf16.msra.mxu1 %v5614_v53 }
 0x57a   :  { %v1126_v3 = vmul.f32 1.442695, %v1110_v5  ;;  %v1128_v13 = vmul.f32 1.442695, %v1111_v46  ;;  %4613 = vmatprep.subr.bf16.mxu1 %v7995_v43  ;;  %v1132_v34 = vmul.f32 1.442695, %v1113_v6 }
 0x57b   :  { %v5159_v48 = vpop.permute.xlu1 %5158  ;;  %v5179_v1 = vpop.permute.xlu0 %5178  ;;  %v1130_v22 = vmul.f32 1.442695, %v1112_v25 }
 0x57c   :  { %5480 = vpow2.f32 %v1126_v3  ;;  %v5161_v61 = vunpack.i.h.bf16 %v5159_v48  ;;  %v5160_v38 = vunpack.i.l.bf16 %v5159_v48  ;;  %v5181_v31 = vunpack.i.h.bf16 %v5179_v1 }
 0x57d   :  { %5482 = vpow2.f32 %v1128_v13  ;;  %4615 = vmatpush1.bf16.msra.mxu1 %v5615_v58  ;;  %v5180_v51 = vunpack.i.l.bf16 %v5179_v1 }
 0x57e   :  { %v4563_v4 = vpack.c.bf16 %v5161_v61, %v5160_v38  ;;  %4324 = vmatprep.subr.bf16.mxu1 %v8024_v60  ;;  %5484 = vpow2.f32 %v1132_v34 }
 0x57f   :  { %v5164_v11 = vpop.permute.xlu1 %5163  ;;  %5486 = vpow2.f32 %v1130_v22  ;;  %v4575_v17 = vpack.c.bf16 %v5181_v31, %v5180_v51 }
 0x580   :  { %v5166_v21 = vunpack.i.h.bf16 %v5164_v11  ;;  %v5165_v30 = vunpack.i.l.bf16 %v5164_v11  ;;  %4564 = vmatpush1.bf16.msra.mxu0 %v4563_v4 }
 0x581   :  { %4565 = vmatprep.subr.bf16.mxu0 %v7995_v43 }
 0x582   :  { %v4566_v41 = vpack.c.bf16 %v5166_v21, %v5165_v30 }
 0x583   :  { %v5169_v0 = vpop.permute.xlu1 %5168 }
 0x584   :  { %v5171_v16 = vunpack.i.h.bf16 %v5169_v0  ;;  %v5170_v23 = vunpack.i.l.bf16 %v5169_v0  ;;  %4567 = vmatpush1.bf16.msra.mxu0 %v4566_v41 }
 0x585   :  { %4568 = vmatprep.subr.bf16.mxu0 %v7995_v43 }
 0x586   :  { %v5481_v9 = vpop.eup %5480  ;;  %v4569_v19 = vpack.c.bf16 %v5171_v16, %v5170_v23 }
 0x587   :  { %v5483_v50 = vpop.eup %5482  ;;  %v5174_v28 = vpop.permute.xlu1 %5173 }
 0x588   :  { %3989 = vmatprep.mubr.msk.f32.mxu1 %vm66_vm1, %v5483_v50  ;;  %v5176_v27 = vunpack.i.h.bf16 %v5174_v28  ;;  %v5175_v7 = vunpack.i.l.bf16 %v5174_v28  ;;  %4570 = vmatpush1.bf16.msra.mxu0 %v4569_v19  ;;  %v5485_v44 = vpop.eup %5484 }
 0x589   :  { %1322 = vmatmul.mubr.f32.gmra.mrb[22].mxu1 %v5481_v9  ;;  %4571 = vmatprep.subr.bf16.mxu0 %v7995_v43 }
 0x58a   :  { %v4572_v35 = vpack.c.bf16 %v5176_v27, %v5175_v7  ;;  %3990 = vmatprep.mubr.msk.f32.mxu0 %vm66_vm1, %v5485_v44  ;;  %3993 = vmatprep.mubr.msk.f32.mxu1 %vm66_vm1, %v6625_v10 }
 0x58b   :  { %v5184_v29 = vpop.permute.xlu1 %5183 }
 0x58c   :  { %4573 = vmatpush1.bf16.msra.mxu0 %v4572_v35  ;;  %v5186_v18 = vunpack.i.h.bf16 %v5184_v29  ;;  %v5185_v8 = vunpack.i.l.bf16 %v5184_v29 }
 0x58d   :  { %1577 = vmatmul.mubr.f32.vlgmr.msra.gmra.mrb[24].mxu1 %v6622_v62  ;;  %4574 = vmatprep.subr.bf16.mxu0 %v7995_v43  ;;  %v5487_v62 = vpop.eup %5486 }
 0x58e   :  { %3994 = vmatprep.mubr.msk.f32.mxu1 %vm66_vm1, %v6636_v40  ;;  %v4578_v15 = vpack.c.bf16 %v5186_v18, %v5185_v8 }
 0x590   :  { %4576 = vmatpush1.bf16.msra.mxu0 %v4575_v17 }
 0x591   :  { %1582 = vmatmul.mubr.f32.gmra.mrb[26].mxu1 %v6630_v12  ;;  %4577 = vmatprep.subr.bf16.mxu0 %v7995_v43 }
 0x592   :  { %3995 = vmatprep.mubr.msk.f32.mxu1 %vm66_vm1, %v5483_v50 }
 0x594   :  { %4579 = vmatpush1.bf16.msra.mxu0 %v4578_v15 }
 0x595   :  { %1587 = vmatmul.mubr.f32.gmra.mrb[28].mxu1 %v5481_v9  ;;  %4272 = vmatprep.subr.bf16.mxu0 %v8024_v60 }
 0x596   :  { %3996 = vmatprep.mubr.msk.f32.mxu1 %vm66_vm1, %v5485_v44 }
 0x597   :  { %1497 = vmatmul.mubr.f32.vlgmr.msra.gmra.mrb[18].mxu0 %v5487_v62 }
 0x599   :  { %1592 = vmatmul.mubr.f32.gmra.mrb[30].mxu1 %v5487_v62 }
 0x5ac   :  { %v1101_v10 = vpop.xlane.xlu0 %1100 }
 0x5ad   :  { %v1114_v40 = vsub.f32 %v6612_v24, %v1101_v10  ;;  %v1115_v56 = vsub.f32 %v6608_v2, %v1101_v10 }
 0x5af   :  { %v1134_v12 = vmul.f32 1.442695, %v1114_v40  ;;  %v1136_v59 = vmul.f32 1.442695, %v1115_v56 }
 0x5b1   :  { %5488 = vpow2.f32 %v1134_v12 }
 0x5b2   :  { %5490 = vpow2.f32 %v1136_v59 }
 0x5bb   :  { %v5489_v32 = vpop.eup %5488 }
 0x5bc   :  { %v5491_v5 = vpop.eup %5490  ;;  %v1105_v46 = vpop.xlane.xlu1 %1104 }
 0x5bd   :  { %3991 = vmatprep.mubr.msk.f32.mxu0 %vm66_vm1, %v5491_v5  ;;  %3997 = vmatprep.mubr.msk.f32.mxu1 %vm66_vm1, %v5491_v5  ;;  %v1116_v6 = vsub.f32 %v6619_v33, %v1105_v46  ;;  %v1117_v53 = vsub.f32 %v6615_v39, %v1105_v46  ;;  %v5436_v39 = vld [vmem:[%s7832_s1 + $0xa0] sm:$0xff]   ;;  %v5437_v33 = vld [vmem:[%s7832_s1 + $0xa8] sm:$0xff]  }
 0x5be   :  { %1502 = vmatmul.mubr.f32.gmra.mrb[20].mxu0 %v5489_v32  ;;  %1597 = vmatmul.mubr.f32.gmra.mrb[32].mxu1 %v5489_v32  ;;  %v1710_v46 = vld [vmem:[%s7832_s1 + $0x100] sm:$0x1] }
 0x5bf   :  { %v1138_v24 = vmul.f32 1.442695, %v1116_v6  ;;  %v1140_v3 = vmul.f32 1.442695, %v1117_v53  ;;  %4273 = vmatpush3.bf16.msra.mxu0 %v5436_v39  ;;  %v1711_v6 = vunpack.c.l.bf16 %v1710_v46  ;;  %v8034_v53 = vld [vmem:[#allocation17_spill] sm:$0xff] }
 0x5c0   :  { %4274 = vmatprep.subr.bf16.mxu0 %v8024_v60 }
 0x5c1   :  { %5492 = vpow2.f32 %v1138_v24  ;;  %v1715_v24 = vrot.slane %v1711_v6, %v8034_v53 }
 0x5c2   :  { %5494 = vpow2.f32 %v1140_v3 }
 0x5c3   :  { %4275 = vmatpush3.bf16.msra.mxu0 %v5437_v33 }
 0x5c4   :  { %4288 = vmatprep.subr.bf16.mxu0 %v8024_v60 }
 0x5cb   :  { %v5493_v2 = vpop.eup %5492 }
 0x5cc   :  { %v5495_v13 = vpop.eup %5494 }
 0x5cd   :  { %3992 = vmatprep.mubr.msk.f32.mxu0 %vm66_vm1, %v5495_v13  ;;  %3998 = vmatprep.mubr.msk.f32.mxu1 %vm66_vm1, %v5495_v13 }
 0x5ce   :  { %1507 = vmatmul.mubr.f32.gmra.mrb[22].mxu0 %v5493_v2  ;;  %1602 = vmatmul.mubr.f32.gmra.mrb[34].mxu1 %v5493_v2  ;;  %v8035_v2 = vld [vmem:[#allocation5_spill] sm:$0xff] }
 0x5cf   :  { %4276 = vmatprep.mubr.msk.bf16.mxu0 %vm5653_vm0, %v8024_v60  ;;  %4328 = vmatprep.mubr.msk.bf16.mxu1 %vm5653_vm0, %v8024_v60 }
 0x623   :  { %v1313_v34 = vpop.f32.mrb[18].mxu1 }
 0x624   :  { %v1315_v48 = vpop.f32.mrb[19].mxu1 }
 0x625   :  { %v8036_v48 = vld [vmem:[#allocation6_spill] sm:$0xff] }
 0x627   :  { %v1318_v61 = vpop.f32.mrb[20].mxu1 }
 0x628   :  { %v1320_v38 = vpop.f32.mrb[21].mxu1 }
 0x65c   :  { %v1323_v58 = vpop.f32.mrb[22].mxu1 }
 0x65d   :  { %v1325_v4 = vpop.f32.mrb[23].mxu1 }
 0x660   :  { %v1578_v11 = vpop.f32.mrb[24].mxu1 }
 0x661   :  { %5496 = vrcp.f32 %v1578_v11  ;;  %v1580_v21 = vpop.f32.mrb[25].mxu1 }
 0x662   :  { %v8037_v21 = vld [vmem:[#allocation7_spill] sm:$0xff] }
 0x664   :  { %v1583_v30 = vpop.f32.mrb[26].mxu1 }
 0x665   :  { %5498 = vrcp.f32 %v1583_v30  ;;  %v1585_v41 = vpop.f32.mrb[27].mxu1 }
 0x668   :  { %v1588_v0 = vpop.f32.mrb[28].mxu1 }
 0x669   :  { %5500 = vrcp.f32 %v1588_v0  ;;  %v1590_v25 = vpop.f32.mrb[29].mxu1 }
 0x66a   :  { %v1498_v16 = vpop.f32.mrb[18].mxu0 }
 0x66b   :  { %v5497_v23 = vpop.eup %5496  ;;  %v1500_v9 = vpop.f32.mrb[19].mxu0 }
 0x66c   :  { %v1613_v19 = vmul.f32 %v5497_v23, %v1313_v34  ;;  %v1593_v50 = vpop.f32.mrb[30].mxu1  ;;  %v8038_v23 = vld [vmem:[#allocation8_spill] sm:$0xff] }
 0x66d   :  { %5502 = vrcp.f32 %v1593_v50  ;;  %v1595_v1 = vpop.f32.mrb[31].mxu1 }
 0x66f   :  { %v5499_v28 = vpop.eup %5498 }
 0x670   :  { %v1614_v22 = vmul.f32 %v5499_v28, %v1318_v61 }
 0x672   :  { %v1619_v27 = vpack.c.bf16 %v1614_v22, %v1613_v19 }
 0x673   :  { %v5501_v7 = vpop.eup %5500 }
 0x674   :  { %4277 = vmatmul.mubr.msk.bf16.vlgmr.msra.gmra.mrb[24].mxu0 %vm197_vm2, %v1619_v27  ;;  %v1615_v44 = vmul.f32 %v5501_v7, %v1323_v58  ;;  %v8039_v27 = vld [vmem:[#allocation9_spill] sm:$0xff] }
 0x675   :  { %4280 = vmatprep.mubr.msk.bf16.mxu0 %vm5653_vm0, %v8024_v60 }
 0x677   :  { %v5503_v31 = vpop.eup %5502 }
 0x678   :  { %v1616_v51 = vmul.f32 %v5503_v31, %v1498_v16 }
 0x67a   :  { %v1620_v35 = vpack.c.bf16 %v1616_v51, %v1615_v44 }
 0x67c   :  { %4281 = vmatmul.mubr.msk.bf16.gmra.mrb[28].mxu0 %vm197_vm2, %v1620_v35  ;;  %v8040_v35 = vld [vmem:[#allocation10_spill] sm:$0xff] }
 0x67d   :  { %4284 = vmatprep.mubr.msk.bf16.mxu0 %vm5653_vm0, %v8024_v60 }
 0x691   :  { %v1503_v29 = vpop.f32.mrb[20].mxu0  ;;  %v1598_v17 = vpop.f32.mrb[32].mxu1 }
 0x692   :  { %5504 = vrcp.f32 %v1598_v17  ;;  %v1505_v18 = vpop.f32.mrb[21].mxu0  ;;  %v1600_v8 = vpop.f32.mrb[33].mxu1 }
 0x69c   :  { %v5505_v15 = vpop.eup %5504 }
 0x69d   :  { %v1617_v62 = vmul.f32 %v5505_v15, %v1503_v29 }
 0x6a1   :  { %v1508_v10 = vpop.f32.mrb[22].mxu0  ;;  %v1603_v40 = vpop.f32.mrb[34].mxu1 }
 0x6a2   :  { %5506 = vrcp.f32 %v1603_v40  ;;  %v1510_v56 = vpop.f32.mrb[23].mxu0  ;;  %v1605_v12 = vpop.f32.mrb[35].mxu1 }
 0x6ac   :  { %v5507_v59 = vpop.eup %5506 }
 0x6ad   :  { %v1618_v32 = vmul.f32 %v5507_v59, %v1508_v10 }
 0x6af   :  { %v1621_v5 = vpack.c.bf16 %v1618_v32, %v1617_v62 }
 0x6b1   :  { %4285 = vmatmul.mubr.msk.bf16.gmra.mrb[32].mxu0 %vm197_vm2, %v1621_v5 }
 0x6b2   :  { %4292 = vmatprep.mubr.msk.bf16.mxu0 %vm5653_vm0, %v8024_v60 }
 0x747   :  { %v1681_v3 = vpop.f32.mrb[24].mxu0 }
 0x748   :  { %v1704_v13 = vadd.f32 %v1681_v3, %v8035_v2  ;;  %v4278_v39 = vpop.f32.mrb[25].mxu0 }
 0x749   :  { %v1684_v33 = vpop.f32.mrb[26].mxu0 }
 0x74a   :  { %v6741_v34 = vadd.f32 %v1715_v24, %v1704_v13  ;;  %v1705_v61 = vadd.f32 %v1684_v33, %v8036_v48  ;;  %v4279_v38 = vpop.f32.mrb[27].mxu0 }
 0x74c   :  { %v6744_v58 = vadd.f32 %v1715_v24, %v1705_v61  ;;  %v1726_v4 = vsel %vm197_vm2, %v6741_v34, 0.0 }
 0x74d   :  { %1727 = vadd.xlane.f32.xlu0 %v1726_v4 }
 0x74e   :  { %v1729_v0 = vsel %vm197_vm2, %v6744_v58, 0.0 }
 0x74f   :  { %v1689_v11 = vpop.f32.mrb[28].mxu0 }
 0x750   :  { %v1706_v30 = vadd.f32 %v1689_v11, %v8037_v21  ;;  %v4282_v41 = vpop.f32.mrb[29].mxu0  ;;  %v5438_v11 = vld [vmem:[%s7832_s1 + $0xb0] sm:$0xff]   ;;  %v5439_v21 = vld [vmem:[%s7832_s1 + $0xb8] sm:$0xff]  }
 0x751   :  { %1730 = vadd.xlane.f32.xlu0 %v1729_v0  ;;  %v1692_v25 = vpop.f32.mrb[30].mxu0  ;;  %4289 = vmatpush3.bf16.msra.mxu0 %v5438_v11 }
 0x752   :  { %v6751_v16 = vadd.f32 %v1715_v24, %v1706_v30  ;;  %v1707_v9 = vadd.f32 %v1692_v25, %v8038_v23  ;;  %v4283_v19 = vpop.f32.mrb[31].mxu0  ;;  %4290 = vmatprep.subr.bf16.mxu0 %v8024_v60 }
 0x754   :  { %v6754_v50 = vadd.f32 %v1715_v24, %v1707_v9  ;;  %v1732_v1 = vsel %vm197_vm2, %v6751_v16, 0.0 }
 0x755   :  { %1733 = vadd.xlane.f32.xlu0 %v1732_v1  ;;  %4291 = vmatpush3.bf16.msra.mxu0 %v5439_v21 }
 0x756   :  { %v1735_v28 = vsel %vm197_vm2, %v6754_v50, 0.0  ;;  %4304 = vmatprep.subr.bf16.mxu0 %v8024_v60 }
 0x757   :  { %1736 = vadd.xlane.f32.xlu1 %v1735_v28 }
 0x784   :  { %v1697_v22 = vpop.f32.mrb[32].mxu0 }
 0x785   :  { %v1708_v7 = vadd.f32 %v1697_v22, %v8039_v27  ;;  %v4286_v44 = vpop.f32.mrb[33].mxu0 }
 0x786   :  { %v1700_v31 = vpop.f32.mrb[34].mxu0 }
 0x787   :  { %v6761_v51 = vadd.f32 %v1715_v24, %v1708_v7  ;;  %v1709_v29 = vadd.f32 %v1700_v31, %v8040_v35  ;;  %v4287_v17 = vpop.f32.mrb[35].mxu0 }
 0x789   :  { %v6764_v18 = vadd.f32 %v1715_v24, %v1709_v29  ;;  %v1738_v8 = vsel %vm197_vm2, %v6761_v51, 0.0 }
 0x78a   :  { %1739 = vadd.xlane.f32.xlu0 %v1738_v8  ;;  %v1722_v8 = vld [vmem:[%s7832_s1 + $0xf0] sm:$0x1] }
 0x78b   :  { %v1741_v15 = vsel %vm197_vm2, %v6764_v18, 0.0 }
 0x78c   :  { %1742 = vadd.xlane.f32.xlu1 %v1741_v15 }
 0x7da   :  { %v1728_v62 = vpop.xlane.xlu0 %1727 }
 0x7db   :  { %v1744_v10 = vmul.f32 0.03125, %v1728_v62 }
 0x7dd   :  { %v1750_v40 = vsub.f32 %v6741_v34, %v1744_v10 }
 0x7de   :  { %v1731_v56 = vpop.xlane.xlu0 %1730 }
 0x7df   :  { %v1745_v12 = vmul.f32 0.03125, %v1731_v56  ;;  %v1756_v59 = vmul.f32 %v1750_v40, %v1750_v40 }
 0x7e1   :  { %v1751_v32 = vsub.f32 %v6744_v58, %v1745_v12  ;;  %v1762_v5 = vsel %vm197_vm2, %v1756_v59, 0.0  ;;  %v1723_v12 = vunpack.c.l.bf16 %v1722_v8  ;;  %v1724_v59 = vld [vmem:[%s7832_s1 + $0xf8] sm:$0x1] }
 0x7e2   :  { %v1734_v46 = vpop.xlane.xlu0 %1733  ;;  %1763 = vadd.xlane.f32.xlu0 %v1762_v5 }
 0x7e3   :  { %v1746_v6 = vmul.f32 0.03125, %v1734_v46  ;;  %v1757_v24 = vmul.f32 %v1751_v32, %v1751_v32 }
 0x7e4   :  { %v1737_v3 = vpop.xlane.xlu1 %1736 }
 0x7e5   :  { %v1752_v2 = vsub.f32 %v6751_v16, %v1746_v6  ;;  %v1747_v13 = vmul.f32 0.03125, %v1737_v3  ;;  %v1765_v39 = vsel %vm197_vm2, %v1757_v24, 0.0  ;;  %v1725_v6 = vunpack.c.l.bf16 %v1724_v59  ;;  %v5443_v59 = vld [vmem:[%s7832_s1 + $0xd8] sm:$0xff]  }
 0x7e6   :  { %1766 = vadd.xlane.f32.xlu1 %v1765_v39  ;;  %v1807_v24 = vrot.slane %v1723_v12, %v8034_v53  ;;  %v5440_v12 = vld [vmem:[%s7832_s1 + $0xc0] sm:$0xff]  }
 0x7e7   :  { %v1753_v33 = vsub.f32 %v6754_v50, %v1747_v13  ;;  %v1758_v48 = vmul.f32 %v1752_v2, %v1752_v2  ;;  %v1817_v39 = vrot.slane %v1725_v6, %v8034_v53 }
 0x7e9   :  { %v1768_v61 = vsel %vm197_vm2, %v1758_v48, 0.0  ;;  %v1759_v38 = vmul.f32 %v1753_v33, %v1753_v33 }
 0x7ea   :  { %1769 = vadd.xlane.f32.xlu0 %v1768_v61 }
 0x7eb   :  { %v1771_v4 = vsel %vm197_vm2, %v1759_v38, 0.0 }
 0x7ec   :  { %1772 = vadd.xlane.f32.xlu1 %v1771_v4 }
 0x817   :  { %v1740_v30 = vpop.xlane.xlu0 %1739 }
 0x818   :  { %v1748_v41 = vmul.f32 0.03125, %v1740_v30 }
 0x819   :  { %v1743_v0 = vpop.xlane.xlu1 %1742 }
 0x81a   :  { %v1754_v25 = vsub.f32 %v6761_v51, %v1748_v41  ;;  %v1749_v23 = vmul.f32 0.03125, %v1743_v0 }
 0x81c   :  { %v1755_v9 = vsub.f32 %v6764_v18, %v1749_v23  ;;  %v1760_v19 = vmul.f32 %v1754_v25, %v1754_v25 }
 0x81e   :  { %v1774_v1 = vsel %vm197_vm2, %v1760_v19, 0.0  ;;  %v1761_v28 = vmul.f32 %v1755_v9, %v1755_v9 }
 0x81f   :  { %1775 = vadd.xlane.f32.xlu0 %v1774_v1 }
 0x820   :  { %v1777_v22 = vsel %vm197_vm2, %v1761_v28, 0.0 }
 0x821   :  { %1778 = vadd.xlane.f32.xlu1 %v1777_v22 }
 0x86f   :  { %v1764_v27 = vpop.xlane.xlu0 %1763 }
 0x870   :  { %v1780_v7 = vmul.f32 0.03125, %v1764_v27 }
 0x872   :  { %v1786_v44 = vadd.f32 1e-05, %v1780_v7 }
 0x873   :  { %v1767_v31 = vpop.xlane.xlu1 %1766 }
 0x874   :  { %5508 = vrsqrt.f32 %v1786_v44  ;;  %v1781_v35 = vmul.f32 0.03125, %v1767_v31 }
 0x876   :  { %v1787_v29 = vadd.f32 1e-05, %v1781_v35 }
 0x877   :  { %v1770_v17 = vpop.xlane.xlu0 %1769 }
 0x878   :  { %5510 = vrsqrt.f32 %v1787_v29  ;;  %v1782_v15 = vmul.f32 0.03125, %v1770_v17 }
 0x879   :  { %v1773_v62 = vpop.xlane.xlu1 %1772 }
 0x87a   :  { %v1788_v10 = vadd.f32 1e-05, %v1782_v15  ;;  %v1783_v56 = vmul.f32 0.03125, %v1773_v62 }
 0x87c   :  { %5512 = vrsqrt.f32 %v1788_v10  ;;  %v1789_v5 = vadd.f32 1e-05, %v1783_v56 }
 0x87e   :  { %v5509_v46 = vpop.eup %5508  ;;  %5514 = vrsqrt.f32 %v1789_v5  ;;  %v1831_v5 = vld [vmem:[%s7832_s1 + $0x108] sm:$0x1] }
 0x87f   :  { %v1798_v3 = vmul.f32 %v5509_v46, %v1750_v40  ;;  %v1832_v46 = vunpack.c.l.bf16 %v1831_v5 }
 0x881   :  { %v1808_v48 = vmul.f32 %v1807_v24, %v1798_v3  ;;  %v1836_v6 = vrot.slane %v1832_v46, %v8034_v53 }
 0x882   :  { %v5511_v13 = vpop.eup %5510 }
 0x883   :  { %v1799_v61 = vmul.f32 %v5511_v13, %v1751_v32  ;;  %v1818_v11 = vadd.f32 %v1817_v39, %v1808_v48 }
 0x885   :  { %v1809_v38 = vmul.f32 %v1807_v24, %v1799_v61 }
 0x886   :  { %v5513_v4 = vpop.eup %5512 }
 0x887   :  { %v1819_v21 = vadd.f32 %v1817_v39, %v1809_v38  ;;  %v1800_v30 = vmul.f32 %v5513_v4, %v1752_v2 }
 0x888   :  { %v5515_v41 = vpop.eup %5514 }
 0x889   :  { %v1801_v0 = vmul.f32 %v5515_v41, %v1753_v33  ;;  %v1824_v23 = vpack.c.bf16 %v1819_v21, %v1818_v11  ;;  %v1810_v19 = vmul.f32 %v1807_v24, %v1800_v30 }
 0x88b   :  { %4293 = vmatmul.mubr.msk.bf16.vlgmr.msra.gmra.mrb[36].mxu0 %vm197_vm2, %v1824_v23  ;;  %v1811_v1 = vmul.f32 %v1807_v24, %v1801_v0  ;;  %v1820_v28 = vadd.f32 %v1817_v39, %v1810_v19 }
 0x88c   :  { %4296 = vmatprep.mubr.msk.bf16.mxu0 %vm5653_vm0, %v8024_v60  ;;  %4305 = vmatpush3.bf16.msra.mxu0 %v5440_v12 }
 0x88d   :  { %v1821_v40 = vadd.f32 %v1817_v39, %v1811_v1  ;;  %4306 = vmatprep.subr.bf16.mxu0 %v8024_v60 }
 0x88f   :  { %v1825_v22 = vpack.c.bf16 %v1821_v40, %v1820_v28 }
 0x893   :  { %4297 = vmatmul.mubr.msk.bf16.gmra.mrb[40].mxu0 %vm197_vm2, %v1825_v22 }
 0x894   :  { %4300 = vmatprep.mubr.msk.bf16.mxu0 %vm5653_vm0, %v8024_v60 }
 0x8ac   :  { %v1776_v32 = vpop.xlane.xlu0 %1775 }
 0x8ad   :  { %v1784_v2 = vmul.f32 0.03125, %v1776_v32 }
 0x8ae   :  { %v1779_v27 = vpop.xlane.xlu1 %1778 }
 0x8af   :  { %v1790_v33 = vadd.f32 1e-05, %v1784_v2  ;;  %v1785_v7 = vmul.f32 0.03125, %v1779_v27 }
 0x8b1   :  { %5516 = vrsqrt.f32 %v1790_v33  ;;  %v1791_v44 = vadd.f32 1e-05, %v1785_v7 }
 0x8b3   :  { %5518 = vrsqrt.f32 %v1791_v44 }
 0x8bb   :  { %v5517_v31 = vpop.eup %5516 }
 0x8bc   :  { %v1802_v35 = vmul.f32 %v5517_v31, %v1754_v25  ;;  %v5441_v25 = vld [vmem:[%s7832_s1 + $0xc8] sm:$0xff]  }
 0x8bd   :  { %v5519_v29 = vpop.eup %5518  ;;  %4307 = vmatpush3.bf16.msra.mxu0 %v5441_v25 }
 0x8be   :  { %v1803_v17 = vmul.f32 %v5519_v29, %v1755_v9  ;;  %v1812_v8 = vmul.f32 %v1807_v24, %v1802_v35  ;;  %4308 = vmatprep.subr.bf16.mxu0 %v8024_v60  ;;  %v5442_v9 = vld [vmem:[%s7832_s1 + $0xd0] sm:$0xff]  }
 0x8c0   :  { %v1813_v15 = vmul.f32 %v1807_v24, %v1803_v17  ;;  %v1822_v62 = vadd.f32 %v1817_v39, %v1812_v8 }
 0x8c1   :  { %4309 = vmatpush3.bf16.msra.mxu0 %v5442_v9 }
 0x8c2   :  { %v1823_v10 = vadd.f32 %v1817_v39, %v1813_v15  ;;  %4310 = vmatprep.subr.bf16.mxu0 %v8024_v60 }
 0x8c4   :  { %v1826_v56 = vpack.c.bf16 %v1823_v10, %v1822_v62 }
 0x8c5   :  { %4311 = vmatpush3.bf16.msra.mxu0 %v5443_v59 }
 0x8c6   :  { %4301 = vmatmul.mubr.msk.bf16.gmra.mrb[44].mxu0 %vm197_vm2, %v1826_v56  ;;  %4616 = vmatprep.subr.bf16.mxu0 %v7995_v43 }
 0x8c7   :  { %4312 = vmatprep.mubr.msk.bf16.mxu0 %vm5653_vm0, %v8024_v60 }
 0x95e   :  { %v1892_v24 = vpop.f32.mrb[36].mxu0 }
 0x95f   :  { %v1893_v3 = vadd.f32 %v1892_v24, %v1836_v6  ;;  %v4294_v13 = vpop.f32.mrb[37].mxu0 }
 0x960   :  { %v1895_v39 = vpop.f32.mrb[38].mxu0 }
 0x961   :  { %v1921_v48 = vmul.f32 0.70710677, %v1893_v3  ;;  %v1896_v61 = vadd.f32 %v1895_v39, %v1836_v6  ;;  %v4295_v38 = vpop.f32.mrb[39].mxu0  ;;  %v1915_v32 = vmul.f32 0.5, %v1893_v3 }
 0x963   :  { %5520 = verf.f32 %v1921_v48  ;;  %v1922_v4 = vmul.f32 0.70710677, %v1896_v61  ;;  %v1916_v2 = vmul.f32 0.5, %v1896_v61 }
 0x965   :  { %5522 = verf.f32 %v1922_v4 }
 0x966   :  { %v1900_v11 = vpop.f32.mrb[40].mxu0 }
 0x967   :  { %v1901_v21 = vadd.f32 %v1900_v11, %v1836_v6  ;;  %v4298_v30 = vpop.f32.mrb[41].mxu0 }
 0x968   :  { %v1903_v41 = vpop.f32.mrb[42].mxu0 }
 0x969   :  { %v1923_v0 = vmul.f32 0.70710677, %v1901_v21  ;;  %v1904_v23 = vadd.f32 %v1903_v41, %v1836_v6  ;;  %v4299_v19 = vpop.f32.mrb[43].mxu0  ;;  %v1917_v17 = vmul.f32 0.5, %v1901_v21 }
 0x96b   :  { %5524 = verf.f32 %v1923_v0  ;;  %v1924_v1 = vmul.f32 0.70710677, %v1904_v23  ;;  %v1918_v8 = vmul.f32 0.5, %v1904_v23 }
 0x96d   :  { %v5521_v40 = vpop.eup %5520  ;;  %5526 = verf.f32 %v1924_v1 }
 0x96e   :  { %v1933_v28 = vadd.f32 1.0, %v5521_v40 }
 0x96f   :  { %v5523_v22 = vpop.eup %5522 }
 0x970   :  { %v1934_v27 = vadd.f32 1.0, %v5523_v22  ;;  %v1939_v33 = vmul.f32 %v1933_v28, %v1915_v32 }
 0x972   :  { %v1940_v7 = vmul.f32 %v1934_v27, %v1916_v2 }
 0x974   :  { %v1945_v44 = vpack.c.bf16 %v1940_v7, %v1939_v33 }
 0x975   :  { %v5525_v31 = vpop.eup %5524 }
 0x976   :  { %v1935_v35 = vadd.f32 1.0, %v5525_v31  ;;  %4313 = vmatmul.mubr.msk.bf16.vlgmr.msra.gmra.mrb[48].mxu0 %vm66_vm1, %v1945_v44 }
 0x977   :  { %v5527_v29 = vpop.eup %5526  ;;  %4316 = vmatprep.mubr.msk.bf16.mxu0 %vm5653_vm0, %v8024_v60 }
 0x978   :  { %v1936_v15 = vadd.f32 1.0, %v5527_v29  ;;  %v1941_v62 = vmul.f32 %v1935_v35, %v1917_v17 }
 0x97a   :  { %v1942_v10 = vmul.f32 %v1936_v15, %v1918_v8 }
 0x97c   :  { %v1946_v56 = vpack.c.bf16 %v1942_v10, %v1941_v62 }
 0x97e   :  { %4317 = vmatmul.mubr.msk.bf16.gmra.mrb[52].mxu0 %vm66_vm1, %v1946_v56 }
 0x97f   :  { %4320 = vmatprep.mubr.msk.bf16.mxu0 %vm5653_vm0, %v8024_v60 }
 0x999   :  { %v1908_v12 = vpop.f32.mrb[44].mxu0 }
 0x99a   :  { %v1909_v25 = vadd.f32 %v1908_v12, %v1836_v6  ;;  %v4302_v9 = vpop.f32.mrb[45].mxu0 }
 0x99b   :  { %v1911_v59 = vpop.f32.mrb[46].mxu0 }
 0x99c   :  { %v1925_v5 = vmul.f32 0.70710677, %v1909_v25  ;;  %v1912_v46 = vadd.f32 %v1911_v59, %v1836_v6  ;;  %v4303_v24 = vpop.f32.mrb[47].mxu0  ;;  %v1919_v61 = vmul.f32 0.5, %v1909_v25  ;;  %v1956_v6 = vld [vmem:[%s7832_s1 + $0x110] sm:$0x1] }
 0x99d   :  { %v1957_v41 = vunpack.c.l.bf16 %v1956_v6 }
 0x99e   :  { %5528 = verf.f32 %v1925_v5  ;;  %v1926_v3 = vmul.f32 0.70710677, %v1912_v46  ;;  %v1920_v38 = vmul.f32 0.5, %v1912_v46 }
 0x99f   :  { %v1961_v0 = vrot.slane %v1957_v41, %v8034_v53 }
 0x9a0   :  { %5530 = verf.f32 %v1926_v3 }
 0x9a8   :  { %v5529_v13 = vpop.eup %5528 }
 0x9a9   :  { %v1937_v39 = vadd.f32 1.0, %v5529_v13 }
 0x9aa   :  { %v5531_v48 = vpop.eup %5530 }
 0x9ab   :  { %v1938_v4 = vadd.f32 1.0, %v5531_v48  ;;  %v1943_v11 = vmul.f32 %v1937_v39, %v1919_v61 }
 0x9ad   :  { %v1944_v21 = vmul.f32 %v1938_v4, %v1920_v38 }
 0x9af   :  { %v1947_v30 = vpack.c.bf16 %v1944_v21, %v1943_v11 }
 0x9b1   :  { %4321 = vmatmul.mubr.msk.bf16.gmra.mrb[56].mxu0 %vm66_vm1, %v1947_v30 }
 0x9b2   :  { %2534 = vmatprep.mubr.f32.mxu0 %v8024_v60 }
 0xa49   :  { %v2029_v23 = vpop.f32.mrb[48].mxu0 }
 0xa4a   :  { %v2030_v19 = vadd.f32 %v2029_v23, %v1961_v0  ;;  %v4314_v1 = vpop.f32.mrb[49].mxu0 }
 0xa4b   :  { %v2032_v40 = vpop.f32.mrb[50].mxu0 }
 0xa4c   :  { %v6840_v28 = vadd.f32 %v2030_v19, %v6741_v34  ;;  %v2033_v22 = vadd.f32 %v2032_v40, %v1961_v0  ;;  %v4315_v32 = vpop.f32.mrb[51].mxu0  ;;  %v5444_v40 = vld [vmem:[%s7832_s1 + $0x118] sm:$0xff]  }
 0xa4d   :  { %4325 = vmatpush3.bf16.msra.mxu1 %v5444_v40 }
 0xa4e   :  { %8041 = vst [vmem:[#allocation5_spill] sm:$0xff] %v6840_v28  ;;  %v6843_v2 = vadd.f32 %v2033_v22, %v6744_v58  ;;  %v2062_v27 = vsel %vm197_vm2, %v6840_v28, 0.0  ;;  %4326 = vmatprep.subr.bf16.mxu1 %v8024_v60  ;;  %v5445_v22 = vld [vmem:[%s7832_s1 + $0x120] sm:$0xff]  }
 0xa4f   :  { %2063 = vadd.xlane.f32.xlu0 %v2062_v27 }
 0xa50   :  { %8042 = vst [vmem:[#allocation6_spill] sm:$0xff] %v6843_v2  ;;  %v2065_v33 = vsel %vm197_vm2, %v6843_v2, 0.0 }
 0xa51   :  { %2066 = vadd.xlane.f32.xlu1 %v2065_v33  ;;  %v2037_v7 = vpop.f32.mrb[52].mxu0  ;;  %4327 = vmatpush3.bf16.msra.mxu1 %v5445_v22 }
 0xa52   :  { %v2038_v44 = vadd.f32 %v2037_v7, %v1961_v0  ;;  %v4318_v31 = vpop.f32.mrb[53].mxu0  ;;  %4664 = vmatprep.subr.bf16.mxu1 %v7995_v43 }
 0xa53   :  { %v2040_v35 = vpop.f32.mrb[54].mxu0 }
 0xa54   :  { %v6850_v34 = vadd.f32 %v2038_v44, %v6751_v16  ;;  %v2041_v29 = vadd.f32 %v2040_v35, %v1961_v0  ;;  %v4319_v17 = vpop.f32.mrb[55].mxu0 }
 0xa56   :  { %8043 = vst [vmem:[#allocation7_spill] sm:$0xff] %v6850_v34  ;;  %v6853_v58 = vadd.f32 %v2041_v29, %v6754_v50  ;;  %v2068_v8 = vsel %vm197_vm2, %v6850_v34, 0.0 }
 0xa57   :  { %2069 = vadd.xlane.f32.xlu0 %v2068_v8 }
 0xa58   :  { %8044 = vst [vmem:[#allocation8_spill] sm:$0xff] %v6853_v58  ;;  %v2071_v15 = vsel %vm197_vm2, %v6853_v58, 0.0 }
 0xa59   :  { %2072 = vadd.xlane.f32.xlu1 %v2071_v15 }
 0xa84   :  { %v2045_v62 = vpop.f32.mrb[56].mxu0 }
 0xa85   :  { %v2046_v10 = vadd.f32 %v2045_v62, %v1961_v0  ;;  %v4322_v56 = vpop.f32.mrb[57].mxu0 }
 0xa86   :  { %v2048_v12 = vpop.f32.mrb[58].mxu0 }
 0xa87   :  { %v6860_v16 = vadd.f32 %v2046_v10, %v6761_v51  ;;  %v2049_v25 = vadd.f32 %v2048_v12, %v1961_v0  ;;  %v4323_v9 = vpop.f32.mrb[59].mxu0 }
 0xa88   :  { %v2058_v9 = vld [vmem:[%s7832_s1 + $0x168] sm:$0x1] }
 0xa89   :  { %8045 = vst [vmem:[#allocation9_spill] sm:$0xff] %v6860_v16  ;;  %v6863_v50 = vadd.f32 %v2049_v25, %v6764_v18  ;;  %v2074_v59 = vsel %vm197_vm2, %v6860_v16, 0.0 }
 0xa8a   :  { %2075 = vadd.xlane.f32.xlu0 %v2074_v59 }
 0xa8b   :  { %8046 = vst [vmem:[#allocation10_spill] sm:$0xff] %v6863_v50  ;;  %v2077_v5 = vsel %vm197_vm2, %v6863_v50, 0.0 }
 0xa8c   :  { %2078 = vadd.xlane.f32.xlu1 %v2077_v5 }
 0xadc   :  { %v2064_v46 = vpop.xlane.xlu0 %2063 }
 0xadd   :  { %v2080_v24 = vmul.f32 0.03125, %v2064_v46  ;;  %v2059_v46 = vunpack.c.l.bf16 %v2058_v9 }
 0xade   :  { %v2067_v3 = vpop.xlane.xlu1 %2066 }
 0xadf   :  { %v2086_v13 = vsub.f32 %v6840_v28, %v2080_v24  ;;  %v2081_v51 = vmul.f32 0.03125, %v2067_v3  ;;  %v2060_v3 = vld [vmem:[%s7832_s1 + $0x170] sm:$0x1] }
 0xae1   :  { %v6871_v39 = vsub.f32 %v6843_v2, %v2081_v51  ;;  %v2092_v48 = vmul.f32 %v2086_v13, %v2086_v13 }
 0xae3   :  { %v2098_v18 = vsel %vm197_vm2, %v2092_v48, 0.0  ;;  %v2093_v61 = vmul.f32 %v6871_v39, %v6871_v39 }
 0xae4   :  { %v2070_v38 = vpop.xlane.xlu0 %2069  ;;  %2099 = vadd.xlane.f32.xlu0 %v2098_v18 }
 0xae5   :  { %v2082_v4 = vmul.f32 0.03125, %v2070_v38  ;;  %v2101_v11 = vsel %vm197_vm2, %v2093_v61, 0.0  ;;  %v2061_v61 = vunpack.c.l.bf16 %v2060_v3  ;;  %v2143_v38 = vrot.slane %v2059_v46, %v8034_v53 }
 0xae6   :  { %v2073_v21 = vpop.xlane.xlu1 %2072  ;;  %2102 = vadd.xlane.f32.xlu1 %v2101_v11 }
 0xae7   :  { %v2088_v30 = vsub.f32 %v6850_v34, %v2082_v4  ;;  %v2083_v6 = vmul.f32 0.03125, %v2073_v21 }
 0xae9   :  { %v2089_v41 = vsub.f32 %v6853_v58, %v2083_v6  ;;  %v2094_v0 = vmul.f32 %v2088_v30, %v2088_v30  ;;  %v2153_v6 = vrot.slane %v2061_v61, %v8034_v53  ;;  %v8067_v58 = vld [vmem:[#allocation33_spill] sm:$0xff] }
 0xaeb   :  { %v2104_v23 = vsel %vm197_vm2, %v2094_v0, 0.0  ;;  %v2095_v19 = vmul.f32 %v2089_v41, %v2089_v41 }
 0xaec   :  { %2105 = vadd.xlane.f32.xlu0 %v2104_v23 }
 0xaed   :  { %v2107_v1 = vsel %vm197_vm2, %v2095_v19, 0.0 }
 0xaee   :  { %2108 = vadd.xlane.f32.xlu1 %v2107_v1 }
 0xb17   :  { %v2076_v32 = vpop.xlane.xlu0 %2075 }
 0xb18   :  { %v2084_v27 = vmul.f32 0.03125, %v2076_v32 }
 0xb19   :  { %v2079_v33 = vpop.xlane.xlu1 %2078 }
 0xb1a   :  { %v2090_v7 = vsub.f32 %v6860_v16, %v2084_v27  ;;  %v2085_v44 = vmul.f32 0.03125, %v2079_v33 }
 0xb1c   :  { %v2091_v31 = vsub.f32 %v6863_v50, %v2085_v44  ;;  %v2096_v35 = vmul.f32 %v2090_v7, %v2090_v7  ;;  %v8066_v50 = vld [vmem:[#allocation32_spill] sm:$0xff] }
 0xb1e   :  { %v2110_v29 = vsel %vm197_vm2, %v2096_v35, 0.0  ;;  %v2097_v17 = vmul.f32 %v2091_v31, %v2091_v31 }
 0xb1f   :  { %2111 = vadd.xlane.f32.xlu0 %v2110_v29 }
 0xb20   :  { %v2113_v8 = vsel %vm197_vm2, %v2097_v17, 0.0 }
 0xb21   :  { %2114 = vadd.xlane.f32.xlu1 %v2113_v8 }
 0xb71   :  { %v2100_v15 = vpop.xlane.xlu0 %2099 }
 0xb72   :  { %v2116_v62 = vmul.f32 0.03125, %v2100_v15 }
 0xb73   :  { %v2103_v10 = vpop.xlane.xlu1 %2102 }
 0xb74   :  { %v2122_v56 = vadd.f32 1e-05, %v2116_v62  ;;  %v2117_v12 = vmul.f32 0.03125, %v2103_v10 }
 0xb76   :  { %5532 = vrsqrt.f32 %v2122_v56  ;;  %v2123_v25 = vadd.f32 1e-05, %v2117_v12 }
 0xb78   :  { %5534 = vrsqrt.f32 %v2123_v25 }
 0xb79   :  { %v2106_v59 = vpop.xlane.xlu0 %2105 }
 0xb7a   :  { %v2118_v5 = vmul.f32 0.03125, %v2106_v59 }
 0xb7b   :  { %v2109_v24 = vpop.xlane.xlu1 %2108 }
 0xb7c   :  { %v2124_v51 = vadd.f32 1e-05, %v2118_v5  ;;  %v2119_v48 = vmul.f32 0.03125, %v2109_v24 }
 0xb7e   :  { %5536 = vrsqrt.f32 %v2124_v51  ;;  %v2125_v18 = vadd.f32 1e-05, %v2119_v48 }
 0xb80   :  { %v5533_v4 = vpop.eup %5532  ;;  %5538 = vrsqrt.f32 %v2125_v18 }
 0xb81   :  { %v2134_v11 = vmul.f32 %v5533_v4, %v2086_v13 }
 0xb82   :  { %v5535_v21 = vpop.eup %5534 }
 0xb83   :  { %v2144_v0 = vmul.f32 %v2143_v38, %v2134_v11  ;;  %v2135_v23 = vmul.f32 %v5535_v21, %v6871_v39 }
 0xb85   :  { %v2145_v19 = vmul.f32 %v2143_v38, %v2135_v23  ;;  %v2154_v1 = vadd.f32 %v2153_v6, %v2144_v0 }
 0xb87   :  { %v2155_v40 = vadd.f32 %v2153_v6, %v2145_v19 }
 0xb88   :  { %v5537_v22 = vpop.eup %5536 }
 0xb89   :  { %v2136_v32 = vmul.f32 %v5537_v22, %v2088_v30  ;;  %v2160_v27 = vpack.c.bf16 %v2155_v40, %v2154_v1  ;;  %v8065_v40 = vld [vmem:[#allocation31_spill] sm:$0xff] }
 0xb8a   :  { %v5539_v33 = vpop.eup %5538 }
 0xb8b   :  { %v2137_v44 = vmul.f32 %v5539_v33, %v2089_v41  ;;  %4329 = vmatmul.mubr.msk.bf16.vlgmr.msra.gmra.mrb[36].mxu1 %vm197_vm2, %v2160_v27  ;;  %v2146_v35 = vmul.f32 %v2143_v38, %v2136_v32  ;;  %v8048_v27 = vld [vmem:[#allocation14_spill] sm:$0xff] }
 0xb8c   :  { %4332 = vmatprep.mubr.msk.bf16.mxu1 %vm5653_vm0, %v8024_v60 }
 0xb8d   :  { %v2147_v13 = vmul.f32 %v2143_v38, %v2137_v44  ;;  %v2156_v29 = vadd.f32 %v2153_v6, %v2146_v35  ;;  %v8050_v44 = vld [vmem:[#allocation13_spill] sm:$0xff] }
 0xb8f   :  { %v2157_v17 = vadd.f32 %v2153_v6, %v2147_v13  ;;  %v8052_v13 = vld [vmem:[#allocation20_spill] sm:$0xff] }
 0xb91   :  { %v2161_v8 = vpack.c.bf16 %v2157_v17, %v2156_v29  ;;  %v8053_v17 = vld [vmem:[#allocation23_spill] sm:$0xff] }
 0xb93   :  { %4333 = vmatmul.mubr.msk.bf16.gmra.mrb[40].mxu1 %vm197_vm2, %v2161_v8 }
 0xb94   :  { %4336 = vmatprep.mubr.msk.bf16.mxu1 %vm5653_vm0, %v8024_v60 }
 0xbac   :  { %v2112_v39 = vpop.xlane.xlu0 %2111 }
 0xbad   :  { %v2120_v30 = vmul.f32 0.03125, %v2112_v39  ;;  %v8054_v39 = vld [vmem:[#allocation25_spill] sm:$0xff] }
 0xbae   :  { %v2115_v15 = vpop.xlane.xlu1 %2114 }
 0xbaf   :  { %v2126_v62 = vadd.f32 1e-05, %v2120_v30  ;;  %v2121_v41 = vmul.f32 0.03125, %v2115_v15  ;;  %v8055_v15 = vld [vmem:[#allocation27_spill] sm:$0xff] }
 0xbb1   :  { %5540 = vrsqrt.f32 %v2126_v62  ;;  %v2127_v10 = vadd.f32 1e-05, %v2121_v41 }
 0xbb3   :  { %5542 = vrsqrt.f32 %v2127_v10  ;;  %v8056_v10 = vld [vmem:[#allocation26_spill] sm:$0xff] }
 0xbbb   :  { %v5541_v56 = vpop.eup %5540 }
 0xbbc   :  { %v2138_v12 = vmul.f32 %v5541_v56, %v2090_v7 }
 0xbbd   :  { %v5543_v25 = vpop.eup %5542 }
 0xbbe   :  { %v2139_v9 = vmul.f32 %v5543_v25, %v2091_v31  ;;  %v2148_v59 = vmul.f32 %v2143_v38, %v2138_v12  ;;  %v8057_v12 = vld [vmem:[#allocation28_spill] sm:$0xff] }
 0xbc0   :  { %v2149_v5 = vmul.f32 %v2143_v38, %v2139_v9  ;;  %v2158_v46 = vadd.f32 %v2153_v6, %v2148_v59  ;;  %v8058_v59 = vld [vmem:[#allocation35_spill] sm:$0xff]  ;;  %v8064_v9 = vld [vmem:[#allocation30_spill] sm:$0xff] }
 0xbc2   :  { %v2159_v24 = vadd.f32 %v2153_v6, %v2149_v5 }
 0xbc4   :  { %v2162_v3 = vpack.c.bf16 %v2159_v24, %v2158_v46  ;;  %v8060_v24 = vld [vmem:[#allocation24_spill] sm:$0xff] }
 0xbc6   :  { %4337 = vmatmul.mubr.msk.bf16.gmra.mrb[44].mxu1 %vm197_vm2, %v2162_v3 }
 0xbc7   :  { %2746 = vmatprep.mubr.f32.mxu1 %v8024_v60 }
 0xc5e   :  { %v6910_v51 = vpop.f32.mrb[36].mxu1 }
 0xc5f   :  { %8047 = vst [vmem:[#allocation48_spill] sm:$0xff] %v6910_v51  ;;  %v4330_v48 = vpop.f32.mrb[37].mxu1  ;;  %v2245_v61 = vmul.f32 %v5907_v47, %v6910_v51  ;;  %v2257_v7 = vmul.f32 %v5917_v57, %v6910_v51  ;;  %v6924_v11 = vmul.f32 %v5903_v42, %v6910_v51  ;;  %v6932_v6 = vmul.f32 %v5909_v49, %v6910_v51 }
 0xc60   :  { %v6912_v18 = vpop.f32.mrb[38].mxu1  ;;  %v2254_v19 = vmul.f32 %v5925_v63, %v6910_v51  ;;  %v2248_v22 = vmul.f32 %v5895_v36, %v6910_v51  ;;  %v6948_v33 = vmul.f32 %v8048_v27, %v6910_v51  ;;  %v6963_v30 = vmul.f32 %v8054_v39, %v6910_v51  ;;  %v8061_v48 = vld [vmem:[#allocation18_spill] sm:$0xff] }
 0xc61   :  { %v4331_v31 = vpop.f32.mrb[39].mxu1  ;;  %v2246_v38 = vmul.f32 %v5905_v45, %v6912_v18  ;;  %v2258_v4 = vmul.f32 %v5915_v55, %v6912_v18  ;;  %v6928_v21 = vmul.f32 %v5911_v52, %v6912_v18  ;;  %v6936_v0 = vmul.f32 %v5913_v54, %v6912_v18 }
 0xc62   :  { %8049 = vst [vmem:[#allocation14_spill] sm:$0xff] %v6948_v33  ;;  %v6952_v35 = vmul.f32 %v8050_v44, %v6912_v18  ;;  %v2249_v29 = vmul.f32 %v8052_v13, %v6912_v18  ;;  %v6959_v8 = vmul.f32 %v8053_v17, %v6912_v18  ;;  %v6967_v62 = vmul.f32 %v8055_v15, %v6910_v51 }
 0xc63   :  { %v5187_v23 = vpack.i.bf16 %v2246_v38, %v2245_v61  ;;  %v5217_v1 = vpack.i.bf16 %v2258_v4, %v2257_v7  ;;  %v2261_v56 = vmul.f32 %v8056_v10, %v6912_v18  ;;  %v6975_v25 = vmul.f32 %v8057_v12, %v6912_v18  ;;  %v8062_v7 = vld [vmem:[#allocation19_spill] sm:$0xff]  ;;  %v8063_v38 = vld [vmem:[#allocation22_spill] sm:$0xff] }
 0xc64   :  { %8051 = vst [vmem:[#allocation49_spill] sm:$0xff] %v6952_v35  ;;  %v6981_v5 = vmul.f32 %v8058_v59, %v6912_v18 }
 0xc65   :  { %5188 = vrot.lane.b32.xlu0 %v5187_v23, %s5656_s30 }
 0xc66   :  { %v6969_v41 = vpop.f32.mrb[40].mxu1  ;;  %8059 = vst [vmem:[#allocation20_spill] sm:$0xff] %v6981_v5 }
 0xc67   :  { %v4334_v46 = vpop.f32.mrb[41].mxu1  ;;  %v2253_v3 = vmul.f32 %v8060_v24, %v6969_v41  ;;  %v2247_v61 = vmul.f32 %v8061_v48, %v6969_v41  ;;  %v2250_v31 = vmul.f32 %v8062_v7, %v6969_v41  ;;  %v2256_v4 = vmul.f32 %v8063_v38, %v6969_v41 }
 0xc68   :  { %v6991_v23 = vpop.f32.mrb[42].mxu1  ;;  %v2259_v32 = vmul.f32 %v8064_v9, %v6969_v41  ;;  %v2262_v46 = vmul.f32 %v8065_v40, %v6969_v41  ;;  %v2265_v16 = vmul.f32 %v8066_v50, %v6969_v41  ;;  %v2268_v34 = vmul.f32 %v8067_v58, %v6969_v41  ;;  %v8068_v50 = vld [vmem:[#allocation45_spill] sm:$0xff] }
 0xc69   :  { %v4335_v2 = vpop.f32.mrb[43].mxu1  ;;  %v5207_v28 = vpack.i.bf16 %v2254_v19, %v2253_v3  ;;  %v5192_v53 = vpack.i.bf16 %v2248_v22, %v2247_v61  ;;  %v5197_v60 = vpack.i.bf16 %v2250_v31, %v2249_v29  ;;  %v5212_v43 = vpack.i.bf16 %v2256_v4, %v6959_v8  ;;  %v8072_v22 = vld [vmem:[#allocation16_spill] sm:$0xff]  ;;  %v8083_v3 = vld [vmem:[#allocation29_spill] sm:$0xff]  ;;  %v8090_v4 = vld [vmem:[#allocation34_spill] sm:$0xff] }
 0xc6a   :  { %v5222_v37 = vpack.i.bf16 %v6963_v30, %v2259_v32  ;;  %v5232_v33 = vpack.i.bf16 %v2262_v46, %v2261_v56  ;;  %v5252_v35 = vpack.i.bf16 %v6967_v62, %v2265_v16  ;;  %v5262_v44 = vpack.i.bf16 %v2268_v34, %v6975_v25  ;;  %v8070_v2 = vld [vmem:[#allocation12_spill] sm:$0xff]  ;;  %v8079_v30 = vld [vmem:[#allocation21_spill] sm:$0xff]  ;;  %v8081_v56 = vld [vmem:[#allocation46_spill] sm:$0xff] }
 0xc6b   :  { %5208 = vrot.lane.b32.xlu0 %v5207_v28, %s5656_s30  ;;  %5193 = vrot.lane.b32.xlu1 %v5192_v53, %s5656_s30  ;;  %v7009_v59 = vmul.f32 %v8068_v50, %v6912_v18  ;;  %v7013_v19 = vmul.f32 %v8070_v2, %v6969_v41  ;;  %v7017_v32 = vmul.f32 %v8072_v22, %v6910_v51  ;;  %v8073_v16 = vld [vmem:[#allocation36_spill] sm:$0xff]  ;;  %v8077_v53 = vld [vmem:[#allocation43_spill] sm:$0xff] }
 0xc6c   :  { %v7021_v29 = vmul.f32 %v8073_v16, %v6910_v51  ;;  %v8075_v28 = vld [vmem:[#allocation40_spill] sm:$0xff]  ;;  %v7029_v8 = vmul.f32 %v8077_v53, %v6910_v51  ;;  %v7033_v62 = vmul.f32 %v8079_v30, %v6912_v18  ;;  %v7037_v25 = vmul.f32 %v8081_v56, %v6910_v51  ;;  %v8085_v46 = vld [vmem:[#allocation39_spill] sm:$0xff] }
 0xc6d   :  { %8069 = vst [vmem:[#allocation23_spill] sm:$0xff] %v7009_v59  ;;  %8071 = vst [vmem:[#allocation25_spill] sm:$0xff] %v7013_v19  ;;  %v7025_v34 = vmul.f32 %v8075_v28, %v6912_v18  ;;  %v7041_v61 = vmul.f32 %v8083_v3, %v6910_v51  ;;  %v7049_v50 = vmul.f32 %v8085_v46, %v6969_v41  ;;  %v8086_v30 = vld [vmem:[#allocation44_spill] sm:$0xff]  ;;  %v8088_v2 = vld [vmem:[#allocation15_spill] sm:$0xff] }
 0xc6e   :  { %8074 = vst [vmem:[#allocation27_spill] sm:$0xff] %v7021_v29  ;;  %8078 = vst [vmem:[#allocation28_spill] sm:$0xff] %v7029_v8  ;;  %v7053_v28 = vmul.f32 %v8086_v30, %v6969_v41  ;;  %v7059_v40 = vmul.f32 %v8088_v2, %v6969_v41  ;;  %v7065_v29 = vmul.f32 %v8090_v4, %v6969_v41  ;;  %v8094_v59 = vld [vmem:[#allocation38_spill] sm:$0xff]  ;;  %v8095_v19 = vld [vmem:[#allocation37_spill] sm:$0xff] }
 0xc6f   :  { %8076 = vst [vmem:[#allocation26_spill] sm:$0xff] %v7025_v34  ;;  %8080 = vst [vmem:[#allocation24_spill] sm:$0xff] %v7033_v62  ;;  %5218 = vrot.lane.b32.xlu0 %v5217_v1, %s5656_s30  ;;  %5198 = vrot.lane.b32.xlu1 %v5197_v60, %s5656_s30  ;;  %v7073_v60 = vmul.f32 %v6429_v26, %v6912_v18  ;;  %v7077_v1 = vmul.f32 %v6427_v20, %v6969_v41  ;;  %v8096_v31 = vld [vmem:[#allocation47_spill] sm:$0xff]  ;;  %v8099_v8 = vld [vmem:[#allocation41_spill] sm:$0xff] }
 0xc70   :  { %8082 = vst [vmem:[#allocation18_spill] sm:$0xff] %v7037_v25  ;;  %8084 = vst [vmem:[#allocation19_spill] sm:$0xff] %v7041_v61  ;;  %v7085_v5 = vmul.f32 %v8094_v59, %v6910_v51  ;;  %v7095_v34 = vmul.f32 %v6456_v14, %v6969_v41  ;;  %v7099_v62 = vmul.f32 %v8096_v31, %v6910_v51  ;;  %v8098_v61 = vld [vmem:[#allocation42_spill] sm:$0xff] }
 0xc71   :  { %8087 = vst [vmem:[#allocation22_spill] sm:$0xff] %v7053_v28  ;;  %8089 = vst [vmem:[#allocation30_spill] sm:$0xff] %v7059_v40  ;;  %v7089_v28 = vmul.f32 %v8095_v19, %v6912_v18  ;;  %v8097_v25 = vpack.i.bf16 %v6928_v21, %v6924_v11  ;;  %v7109_v40 = vmul.f32 %v8098_v61, %v6912_v18 }
 0xc72   :  { %8091 = vst [vmem:[#allocation33_spill] sm:$0xff] %v7065_v29  ;;  %8092 = vst [vmem:[#allocation16_spill] sm:$0xff] %v7073_v60  ;;  %v7113_v60 = vmul.f32 %v8099_v8, %v6969_v41  ;;  %v8100_v11 = vpack.i.bf16 %v6936_v0, %v6932_v6  ;;  %v2269_v21 = vmul.f32 %v5907_v47, %v6991_v23 }
 0xc73   :  { %8093 = vst [vmem:[#allocation36_spill] sm:$0xff] %v7077_v1  ;;  %5203 = vrot.lane.b32.xlu1 %v8097_v25, %s5656_s30  ;;  %v5352_v29 = vpack.i.bf16 %v7089_v28, %v7085_v5  ;;  %v2272_v25 = vmul.f32 %v5895_v36, %v6991_v23  ;;  %v7140_v6 = vmul.f32 %v5903_v42, %v6991_v23 }
 0xc74   :  { %v7144_v0 = vmul.f32 %v5925_v63, %v6991_v23  ;;  %v7148_v47 = vmul.f32 %v5917_v57, %v6991_v23  ;;  %v7152_v36 = vmul.f32 %v8073_v16, %v6991_v23  ;;  %v7160_v42 = vmul.f32 %v8072_v22, %v6991_v23 }
 0xc75   :  { %v7164_v63 = vmul.f32 %v8077_v53, %v6991_v23  ;;  %v7168_v57 = vmul.f32 %v8081_v56, %v6991_v23 }
 0xc77   :  { %5213 = vrot.lane.b32.xlu1 %v5212_v43, %s5656_s30  ;;  %v7136_v43 = vmul.f32 %v5909_v49, %v6991_v23  ;;  %v7156_v49 = vmul.f32 %v8055_v15, %v6991_v23  ;;  %v7186_v15 = vmul.f32 %v8094_v59, %v6991_v23 }
 0xc7b   :  { %5223 = vrot.lane.b32.xlu1 %v5222_v37, %s5656_s30  ;;  %v2284_v37 = vmul.f32 %v8054_v39, %v6991_v23  ;;  %v7182_v39 = vmul.f32 %v8096_v31, %v6991_v23 }
 0xc7f   :  { %5233 = vrot.lane.b32.xlu1 %v5232_v33, %s5656_s30 }
 0xc83   :  { %5243 = vrot.lane.b32.xlu1 %v8100_v11, %s5656_s30 }
 0xc87   :  { %5253 = vrot.lane.b32.xlu1 %v5252_v35, %s5656_s30  ;;  %v7178_v35 = vmul.f32 %v8083_v3, %v6991_v23 }
 0xc8b   :  { %5263 = vrot.lane.b32.xlu1 %v5262_v44, %s5656_s30  ;;  %v7174_v44 = vmul.f32 %v8048_v27, %v6991_v23 }
 0xc99   :  { %v7170_v33 = vpop.f32.mrb[44].mxu1 }
 0xc9a   :  { %v4338_v22 = vpop.f32.mrb[45].mxu1  ;;  %v2270_v16 = vmul.f32 %v5905_v45, %v7170_v33  ;;  %v2279_v27 = vmul.f32 %v8053_v17, %v7170_v33  ;;  %v2273_v53 = vmul.f32 %v8052_v13, %v7170_v33  ;;  %v2288_v56 = vmul.f32 %v5913_v54, %v7170_v33 }
 0xc9b   :  { %v7196_v3 = vpop.f32.mrb[46].mxu1  ;;  %v2276_v31 = vmul.f32 %v5911_v52, %v7170_v33  ;;  %v2291_v59 = vmul.f32 %v8057_v12, %v7170_v33  ;;  %v2282_v45 = vmul.f32 %v5915_v55, %v7170_v33  ;;  %v2285_v17 = vmul.f32 %v8056_v10, %v7170_v33 }
 0xc9c   :  { %v4339_v11 = vpop.f32.mrb[47].mxu1  ;;  %v5227_v22 = vpack.i.bf16 %v2270_v16, %v2269_v21  ;;  %v2280_v13 = vmul.f32 %v8063_v38, %v7196_v3  ;;  %v2271_v54 = vmul.f32 %v8061_v48, %v7196_v3  ;;  %v2283_v52 = vmul.f32 %v8064_v9, %v7196_v3 }
 0xc9d   :  { %v2274_v12 = vmul.f32 %v8062_v7, %v7196_v3  ;;  %v5292_v1 = vpack.i.bf16 %v2288_v56, %v7136_v43  ;;  %v5257_v55 = vpack.i.bf16 %v2276_v31, %v7140_v6  ;;  %v2292_v10 = vmul.f32 %v8067_v58, %v7196_v3  ;;  %v8101_v7 = vld [vmem:[#allocation31_spill] sm:$0xff]  ;;  %v8105_v31 = vld [vmem:[#allocation40_spill] sm:$0xff] }
 0xc9e   :  { %5228 = vrot.lane.b32.xlu0 %v5227_v22, %s5656_s30  ;;  %v5272_v21 = vpack.i.bf16 %v2280_v13, %v2279_v27  ;;  %v5237_v38 = vpack.i.bf16 %v2272_v25, %v2271_v54  ;;  %v5282_v16 = vpack.i.bf16 %v2284_v37, %v2283_v52  ;;  %v2277_v48 = vmul.f32 %v8060_v24, %v7196_v3  ;;  %v8102_v58 = vld [vmem:[#allocation35_spill] sm:$0xff]  ;;  %v8103_v25 = vld [vmem:[#allocation32_spill] sm:$0xff]  ;;  %v8106_v13 = vld [vmem:[#allocation21_spill] sm:$0xff] }
 0xc9f   :  { %v5247_v11 = vpack.i.bf16 %v2274_v12, %v2273_v53  ;;  %v5302_v9 = vpack.i.bf16 %v2292_v10, %v2291_v59  ;;  %v5277_v51 = vpack.i.bf16 %v2282_v45, %v7148_v47  ;;  %v2286_v43 = vmul.f32 %v8101_v7, %v7196_v3  ;;  %v8104_v27 = vld [vmem:[#allocation12_spill] sm:$0xff] }
 0xca0   :  { %5273 = vrot.lane.b32.xlu1 %v5272_v21, %s5656_s30  ;;  %v5267_v6 = vpack.i.bf16 %v7144_v0, %v2277_v48  ;;  %v2318_v56 = vmul.f32 %v8102_v58, %v7170_v33  ;;  %v2289_v37 = vmul.f32 %v8103_v25, %v7196_v3  ;;  %v2319_v24 = vmul.f32 %v8104_v27, %v7196_v3  ;;  %v8112_v25 = vld [vmem:[#allocation14_spill] sm:$0xff] }
 0xca1   :  { %v5287_v53 = vpack.i.bf16 %v2286_v43, %v2285_v17  ;;  %v7234_v47 = vmul.f32 %v8105_v31, %v7170_v33  ;;  %v7238_v59 = vmul.f32 %v8085_v46, %v7196_v3  ;;  %v7242_v0 = vmul.f32 %v8086_v30, %v7196_v3  ;;  %v8120_v27 = vld [vmem:[#allocation22_spill] sm:$0xff]  ;;  %v8123_v31 = vld [vmem:[#allocation24_spill] sm:$0xff] }
 0xca2   :  { %5238 = vrot.lane.b32.xlu0 %v5237_v38, %s5656_s30  ;;  %v5367_v45 = vpack.i.bf16 %v2318_v56, %v7152_v36  ;;  %v5297_v22 = vpack.i.bf16 %v7156_v49, %v2289_v37  ;;  %v5372_v17 = vpack.i.bf16 %v7160_v42, %v2319_v24  ;;  %v7250_v54 = vmul.f32 %v8106_v13, %v7170_v33  ;;  %v8107_v36 = vld [vmem:[#allocation45_spill] sm:$0xff]  ;;  %v8119_v37 = vld [vmem:[#allocation28_spill] sm:$0xff] }
 0xca3   :  { %v5377_v46 = vpack.i.bf16 %v7238_v59, %v7234_v47  ;;  %v5387_v52 = vpack.i.bf16 %v7164_v63, %v7242_v0  ;;  %v7258_v30 = vmul.f32 %v8088_v2, %v7196_v3  ;;  %v7262_v12 = vmul.f32 %v8107_v36, %v7170_v33  ;;  %v8108_v49 = vld [vmem:[#allocation13_spill] sm:$0xff]  ;;  %v8128_v36 = vld [vmem:[#allocation19_spill] sm:$0xff] }
 0xca4   :  { %5283 = vrot.lane.b32.xlu1 %v5282_v16, %s5656_s30  ;;  %v7267_v42 = vmul.f32 %v8108_v49, %v7170_v33  ;;  %v7271_v10 = vmul.f32 %v8090_v4, %v7196_v3  ;;  %v7275_v21 = vmul.f32 %v6456_v14, %v7196_v3  ;;  %v7279_v2 = vmul.f32 %v6429_v26, %v7170_v33  ;;  %v8109_v56 = vld [vmem:[#allocation25_spill] sm:$0xff] }
 0xca5   :  { %v5392_v38 = vpack.i.bf16 %v7258_v30, %v7250_v54  ;;  %v5397_v16 = vpack.i.bf16 %v7262_v12, %v7168_v57  ;;  %v7287_v48 = vmul.f32 %v6427_v20, %v7196_v3  ;;  %v7291_v4 = vmul.f32 %v8095_v19, %v7170_v33  ;;  %v8129_v49 = vld [vmem:[#allocation33_spill] sm:$0xff] }
 0xca6   :  { %5248 = vrot.lane.b32.xlu0 %v5247_v11, %s5656_s30  ;;  %v5382_v26 = vpack.i.bf16 %v7267_v42, %v7174_v44  ;;  %v5402_v14 = vpack.i.bf16 %v7178_v35, %v7271_v10  ;;  %v5417_v7 = vpack.i.bf16 %v7182_v39, %v7275_v21  ;;  %v7306_v19 = vmul.f32 %v8098_v61, %v7170_v33 }
 0xca7   :  { %v5407_v43 = vpack.i.bf16 %v7287_v48, %v7279_v2  ;;  %v5412_v20 = vpack.i.bf16 %v7291_v4, %v7186_v15  ;;  %v7310_v11 = vmul.f32 %v8099_v8, %v7196_v3  ;;  %v8110_v61 = vpack.i.bf16 %v7017_v32, %v8109_v56  ;;  %v8111_v8 = vld [vmem:[#allocation49_spill] sm:$0xff]  ;;  %v8131_v56 = vld [vmem:[#allocation36_spill] sm:$0xff] }
 0xca8   :  { %5293 = vrot.lane.b32.xlu1 %v5292_v1, %s5656_s30  ;;  %v8113_v1 = vpack.i.bf16 %v8111_v8, %v8112_v25  ;;  %v8121_v24 = vpack.i.bf16 %v8119_v37, %v8120_v27 }
 0xca9   :  { %v5422_v58 = vpack.i.bf16 %v7310_v11, %v7306_v19  ;;  %v5616_v11 = vld [vmem:[%s7832_s1 + $0x30] sm:$0xff]  }
 0xcaa   :  { %5258 = vrot.lane.b32.xlu0 %v5257_v55, %s5656_s30  ;;  %v8114_v55 = vld [vmem:[#allocation20_spill] sm:$0xff] }
 0xcac   :  { %5303 = vrot.lane.b32.xlu1 %v5302_v9, %s5656_s30  ;;  %v8115_v9 = vld [vmem:[#allocation27_spill] sm:$0xff] }
 0xcad   :  { %v8116_v32 = vpack.i.bf16 %v8114_v55, %v8115_v9 }
 0xcae   :  { %5268 = vrot.lane.b32.xlu0 %v5267_v6, %s5656_s30 }
 0xcb0   :  { %5313 = vrot.lane.b32.xlu1 %v8110_v61, %s5657_s3  ;;  %v8132_v61 = vld [vmem:[#allocation16_spill] sm:$0xff] }
 0xcb1   :  { %v8133_v8 = vpack.i.bf16 %v8131_v56, %v8132_v61 }
 0xcb2   :  { %5278 = vrot.lane.b32.xlu0 %v5277_v51, %s5656_s30  ;;  %v8117_v51 = vld [vmem:[#allocation26_spill] sm:$0xff] }
 0xcb3   :  { %v8118_v6 = vpack.i.bf16 %v7049_v50, %v8117_v51  ;;  %v8130_v50 = vpack.i.bf16 %v8128_v36, %v8129_v49 }
 0xcb4   :  { %5323 = vrot.lane.b32.xlu1 %v8113_v1, %s5657_s3 }
 0xcb6   :  { %5288 = vrot.lane.b32.xlu0 %v5287_v53, %s5656_s30  ;;  %v8122_v53 = vld [vmem:[#allocation30_spill] sm:$0xff] }
 0xcb8   :  { %5368 = vrot.lane.b32.xlu1 %v5367_v45, %s5657_s3  ;;  %v8124_v45 = vpack.i.bf16 %v8122_v53, %v8123_v31  ;;  %v8137_v31 = vpack.i.bf16 %v7113_v60, %v7109_v40 }
 0xcba   :  { %5298 = vrot.lane.b32.xlu0 %v5297_v22, %s5656_s30  ;;  %v8125_v22 = vld [vmem:[#allocation23_spill] sm:$0xff] }
 0xcbc   :  { %5373 = vrot.lane.b32.xlu1 %v5372_v17, %s5657_s3  ;;  %v8126_v17 = vld [vmem:[#allocation18_spill] sm:$0xff] }
 0xcbd   :  { %v8127_v13 = vpack.i.bf16 %v8125_v22, %v8126_v17 }
 0xcbe   :  { %5308 = vrot.lane.b32.xlu0 %v8116_v32, %s5657_s3 }
 0xcc2   :  { %5318 = vrot.lane.b32.xlu0 %v8118_v6, %s5657_s3  ;;  %v8135_v6 = vmov 0.0|0.0  }
 0xcc6   :  { %5328 = vrot.lane.b32.xlu0 %v8121_v24, %s5657_s3  ;;  %v8136_v24 = vpack.i.bf16 %v7099_v62, %v7095_v34 }
 0xcca   :  { %5333 = vrot.lane.b32.xlu0 %v8124_v45, %s5657_s3 }
 0xcce   :  { %5338 = vrot.lane.b32.xlu0 %v8127_v13, %s5657_s3 }
 0xcd2   :  { %5343 = vrot.lane.b32.xlu0 %v8130_v50, %s5657_s3 }
 0xcd6   :  { %5348 = vrot.lane.b32.xlu0 %v8133_v8, %s5657_s3 }
 0xcd7   :  { %v5189_v25 = vpop.permute.xlu0 %5188 }
 0xcd8   :  { %v5191_v1 = vunpack.i.h.bf16 %v5189_v25  ;;  %v5190_v55 = vunpack.i.l.bf16 %v5189_v25 }
 0xcda   :  { %v4617_v9 = vpack.c.bf16 %v5191_v1, %v5190_v55  ;;  %5353 = vrot.lane.b32.xlu0 %v5352_v29, %s5657_s3 }
 0xcdc   :  { %4619 = vmatpush1.bf16.xpose.msk.msra.mxu0 %vm6137_vm3, %v4617_v9 }
 0xcdd   :  { %v5194_v51 = vpop.permute.xlu1 %5193  ;;  %4620 = vmatprep.subr.bf16.mxu0 %v8135_v6  ;;  %v5209_v40 = vpop.permute.xlu0 %5208 }
 0xcde   :  { %v5196_v37 = vunpack.i.h.bf16 %v5194_v51  ;;  %v5195_v27 = vunpack.i.l.bf16 %v5194_v51  ;;  %5358 = vrot.lane.b32.xlu0 %v8136_v24, %s5657_s3  ;;  %v5211_v60 = vunpack.i.h.bf16 %v5209_v40  ;;  %v5210_v13 = vunpack.i.l.bf16 %v5209_v40 }
 0xce0   :  { %v4621_v53 = vpack.c.bf16 %v5196_v37, %v5195_v27  ;;  %v4633_v36 = vpack.c.bf16 %v5211_v60, %v5210_v13 }
 0xce1   :  { %v5199_v5 = vpop.permute.xlu1 %5198  ;;  %v5219_v8 = vpop.permute.xlu0 %5218 }
 0xce2   :  { %5363 = vrot.lane.b32.xlu0 %v8137_v31, %s5657_s3  ;;  %v5201_v29 = vunpack.i.h.bf16 %v5199_v5  ;;  %v5200_v28 = vunpack.i.l.bf16 %v5199_v5  ;;  %v5221_v1 = vunpack.i.h.bf16 %v5219_v8  ;;  %v5220_v55 = vunpack.i.l.bf16 %v5219_v8 }
 0xce4   :  { %4623 = vmatpush1.bf16.xpose.msk.msra.mxu0 %vm6137_vm3, %v4621_v53  ;;  %v4625_v45 = vpack.c.bf16 %v5201_v29, %v5200_v28  ;;  %v4641_v51 = vpack.c.bf16 %v5221_v1, %v5220_v55 }
 0xce5   :  { %4624 = vmatprep.subr.bf16.mxu0 %v8135_v6  ;;  %v5204_v22 = vpop.permute.xlu1 %5203 }
 0xce6   :  { %v5206_v34 = vunpack.i.h.bf16 %v5204_v22  ;;  %v5205_v62 = vunpack.i.l.bf16 %v5204_v22 }
 0xce8   :  { %v4629_v17 = vpack.c.bf16 %v5206_v34, %v5205_v62 }
 0xce9   :  { %v5214_v49 = vpop.permute.xlu1 %5213 }
 0xcea   :  { %v5216_v50 = vunpack.i.h.bf16 %v5214_v49  ;;  %v5215_v56 = vunpack.i.l.bf16 %v5214_v49 }
 0xcec   :  { %4627 = vmatpush1.bf16.xpose.msk.msra.mxu0 %vm6137_vm3, %v4625_v45  ;;  %v4637_v61 = vpack.c.bf16 %v5216_v50, %v5215_v56 }
 0xced   :  { %4628 = vmatprep.subr.bf16.mxu0 %v8135_v6  ;;  %v5224_v25 = vpop.permute.xlu1 %5223 }
 0xcee   :  { %v5226_v37 = vunpack.i.h.bf16 %v5224_v25  ;;  %v5225_v27 = vunpack.i.l.bf16 %v5224_v25 }
 0xcf0   :  { %v4645_v29 = vpack.c.bf16 %v5226_v37, %v5225_v27 }
 0xcf1   :  { %v5234_v9 = vpop.permute.xlu1 %5233 }
 0xcf2   :  { %v5236_v34 = vunpack.i.h.bf16 %v5234_v9  ;;  %v5235_v62 = vunpack.i.l.bf16 %v5234_v9 }
 0xcf4   :  { %4631 = vmatpush1.bf16.xpose.msk.msra.mxu0 %vm6137_vm3, %v4629_v17  ;;  %v4649_v13 = vpack.c.bf16 %v5236_v34, %v5235_v62 }
 0xcf5   :  { %4632 = vmatprep.subr.bf16.mxu0 %v8135_v6  ;;  %v5244_v24 = vpop.permute.xlu1 %5243 }
 0xcf6   :  { %v5246_v56 = vunpack.i.h.bf16 %v5244_v24 }
 0xcf9   :  { %v5254_v22 = vpop.permute.xlu1 %5253 }
 0xcfc   :  { %4635 = vmatpush1.bf16.xpose.msk.msra.mxu0 %vm6137_vm3, %v4633_v36 }
 0xcfd   :  { %4636 = vmatprep.subr.bf16.mxu0 %v8135_v6  ;;  %v5264_v36 = vpop.permute.xlu1 %5263 }
 0xd04   :  { %4639 = vmatpush1.bf16.xpose.msk.msra.mxu0 %vm6137_vm3, %v4637_v61  ;;  %v5245_v61 = vunpack.i.l.bf16 %v5244_v24  ;;  %v5256_v24 = vunpack.i.h.bf16 %v5254_v22 }
 0xd05   :  { %4640 = vmatprep.subr.bf16.mxu0 %v8135_v6 }
 0xd06   :  { %v4653_v9 = vpack.c.bf16 %v5246_v56, %v5245_v61 }
 0xd0c   :  { %4643 = vmatpush1.bf16.xpose.msk.msra.mxu0 %vm6137_vm3, %v4641_v51 }
 0xd0d   :  { %4644 = vmatprep.subr.bf16.mxu0 %v8135_v6 }
 0xd10   :  { %v5229_v53 = vpop.permute.xlu0 %5228 }
 0xd11   :  { %v5231_v31 = vunpack.i.h.bf16 %v5229_v53  ;;  %v5230_v5 = vunpack.i.l.bf16 %v5229_v53  ;;  %v5255_v53 = vunpack.i.l.bf16 %v5254_v22  ;;  %v5266_v22 = vunpack.i.h.bf16 %v5264_v36 }
 0xd12   :  { %v5274_v8 = vpop.permute.xlu1 %5273 }
 0xd13   :  { %v4665_v28 = vpack.c.bf16 %v5231_v31, %v5230_v5 }
 0xd14   :  { %v5239_v45 = vpop.permute.xlu0 %5238  ;;  %4647 = vmatpush1.bf16.xpose.msk.msra.mxu0 %vm6137_vm3, %v4645_v29 }
 0xd15   :  { %4667 = vmatpush1.bf16.xpose.msk.msra.mxu1 %vm6137_vm3, %v4665_v28  ;;  %4648 = vmatprep.subr.bf16.mxu0 %v8135_v6  ;;  %v5241_v17 = vunpack.i.h.bf16 %v5239_v45  ;;  %v5240_v40 = vunpack.i.l.bf16 %v5239_v45  ;;  %v4657_v28 = vpack.c.bf16 %v5256_v24, %v5255_v53 }
 0xd16   :  { %4668 = vmatprep.subr.bf16.mxu1 %v8135_v6  ;;  %v7408_v27 = vpop.permute.xlu1 %5283 }
 0xd17   :  { %v4669_v49 = vpack.c.bf16 %v5241_v17, %v5240_v40  ;;  %v5265_v17 = vunpack.i.l.bf16 %v5264_v36 }
 0xd18   :  { %v5249_v60 = vpop.permute.xlu0 %5248 }
 0xd19   :  { %v5251_v25 = vunpack.i.h.bf16 %v5249_v60  ;;  %v5250_v1 = vunpack.i.l.bf16 %v5249_v60 }
 0xd1a   :  { %v7416_v45 = vpop.permute.xlu1 %5293 }
 0xd1b   :  { %v4673_v51 = vpack.c.bf16 %v5251_v25, %v5250_v1  ;;  %v5276_v1 = vunpack.i.h.bf16 %v5274_v8 }
 0xd1c   :  { %v5259_v50 = vpop.permute.xlu0 %5258  ;;  %4651 = vmatpush1.bf16.xpose.msk.msra.mxu0 %vm6137_vm3, %v4649_v13 }
 0xd1d   :  { %4671 = vmatpush1.bf16.xpose.msk.msra.mxu1 %vm6137_vm3, %v4669_v49  ;;  %4652 = vmatprep.subr.bf16.mxu0 %v8135_v6  ;;  %v5261_v31 = vunpack.i.h.bf16 %v5259_v50  ;;  %v5260_v5 = vunpack.i.l.bf16 %v5259_v50  ;;  %v4661_v50 = vpack.c.bf16 %v5266_v22, %v5265_v17  ;;  %v8139_v22 = vmov 0.0  }
 0xd1e   :  { %4672 = vmatprep.subr.bf16.mxu1 %v8135_v6  ;;  %v7426_v49 = vpop.permute.xlu1 %5303 }
 0xd1f   :  { %v4677_v34 = vpack.c.bf16 %v5261_v31, %v5260_v5 }
 0xd20   :  { %v5269_v55 = vpop.permute.xlu0 %5268 }
 0xd21   :  { %v5271_v40 = vunpack.i.h.bf16 %v5269_v55  ;;  %v5270_v60 = vunpack.i.l.bf16 %v5269_v55  ;;  %v5275_v55 = vunpack.i.l.bf16 %v5274_v8 }
 0xd23   :  { %v4681_v56 = vpack.c.bf16 %v5271_v40, %v5270_v60  ;;  %v4685_v5 = vpack.c.bf16 %v5276_v1, %v5275_v55 }
 0xd24   :  { %v7404_v37 = vpop.permute.xlu0 %5278  ;;  %4655 = vmatpush1.bf16.xpose.msk.msra.mxu0 %vm6137_vm3, %v4653_v9  ;;  %v5314_v9 = vpop.permute.xlu1 %5313 }
 0xd25   :  { %4675 = vmatpush1.bf16.xpose.msk.msra.mxu1 %vm6137_vm3, %v4673_v51  ;;  %4656 = vmatprep.subr.bf16.mxu0 %v8135_v6  ;;  %v5316_v24 = vunpack.i.h.bf16 %v5314_v9  ;;  %v5315_v53 = vunpack.i.l.bf16 %v5314_v9  ;;  %v5281_v60 = vunpack.i.h.bf16 %v7404_v37  ;;  %v5286_v9 = vunpack.i.h.bf16 %v7408_v27 }
 0xd26   :  { %4676 = vmatprep.subr.bf16.mxu1 %v8135_v6 }
 0xd27   :  { %v4716_v17 = vpack.c.bf16 %v5316_v24, %v5315_v53  ;;  %v5285_v24 = vunpack.i.l.bf16 %v7408_v27 }
 0xd28   :  { %v7414_v29 = vpop.permute.xlu0 %5288 }
 0xd29   :  { %v5291_v27 = vunpack.i.h.bf16 %v7414_v29 }
 0xd2c   :  { %v7418_v62 = vpop.permute.xlu0 %5298  ;;  %4659 = vmatpush1.bf16.xpose.msk.msra.mxu0 %vm6137_vm3, %v4657_v28  ;;  %v8138_v28 = vld [vmem:[#allocation48_spill] sm:$0xff] }
 0xd2d   :  { %4679 = vmatpush1.bf16.xpose.msk.msra.mxu1 %vm6137_vm3, %v4677_v34  ;;  %4660 = vmatprep.subr.bf16.mxu0 %v8135_v6 }
 0xd2e   :  { %4680 = vmatprep.subr.bf16.mxu1 %v8135_v6 }
 0xd30   :  { %v5309_v13 = vpop.permute.xlu0 %5308 }
 0xd31   :  { %v5311_v25 = vunpack.i.h.bf16 %v5309_v13  ;;  %v5310_v36 = vunpack.i.l.bf16 %v5309_v13  ;;  %v5280_v13 = vunpack.i.l.bf16 %v7404_v37 }
 0xd33   :  { %v4713_v31 = vpack.c.bf16 %v5311_v25, %v5310_v36 }
 0xd34   :  { %v5319_v61 = vpop.permute.xlu0 %5318  ;;  %4663 = vmatpush1.bf16.xpose.msk.msra.mxu0 %vm6137_vm3, %v4661_v50  ;;  %v5324_v50 = vpop.permute.xlu1 %5323 }
 0xd35   :  { %4683 = vmatpush1.bf16.xpose.msk.msra.mxu1 %vm6137_vm3, %v4681_v56  ;;  %4712 = vmatprep.subr.bf16.mxu0 %v8135_v6  ;;  %v5321_v8 = vunpack.i.h.bf16 %v5319_v61  ;;  %v5320_v40 = vunpack.i.l.bf16 %v5319_v61  ;;  %v5326_v25 = vunpack.i.h.bf16 %v5324_v50  ;;  %v5325_v36 = vunpack.i.l.bf16 %v5324_v50 }
 0xd36   :  { %4684 = vmatprep.subr.bf16.mxu1 %v8135_v6  ;;  %v4689_v61 = vpack.c.bf16 %v5281_v60, %v5280_v13  ;;  %v5290_v60 = vunpack.i.l.bf16 %v7414_v29  ;;  %v5296_v29 = vunpack.i.h.bf16 %v7416_v45 }
 0xd37   :  { %v4719_v1 = vpack.c.bf16 %v5321_v8, %v5320_v40 }
 0xd38   :  { %v5329_v51 = vpop.permute.xlu0 %5328 }
 0xd39   :  { %v5331_v37 = vunpack.i.h.bf16 %v5329_v51  ;;  %v5330_v55 = vunpack.i.l.bf16 %v5329_v51 }
 0xd3b   :  { %4045 = vmatmul.mubr.msk.f32.vlgmr.msra.gmra.mrb[60].mxu0 %vm197_vm2, %v8138_v28  ;;  %v4693_v28 = vpack.c.bf16 %v5286_v9, %v5285_v24 }
 0xd3c   :  { %v5334_v34 = vpop.permute.xlu0 %5333  ;;  %4714 = vmatpush1.bf16.msra.mxu0 %v4713_v31  ;;  %2540 = vmatprep.mubr.f32.mxu0 %v8139_v22 }
 0xd3d   :  { %4687 = vmatpush1.bf16.xpose.msk.msra.mxu1 %vm6137_vm3, %v4685_v5  ;;  %4715 = vmatprep.subr.bf16.mxu0 %v8135_v6  ;;  %v5336_v31 = vunpack.i.h.bf16 %v5334_v34  ;;  %v5335_v5 = vunpack.i.l.bf16 %v5334_v34 }
 0xd3e   :  { %4688 = vmatprep.subr.bf16.mxu1 %v8135_v6 }
 0xd3f   :  { %4046 = vmatmul.mubr.msk.f32.gmra.mrb[62].mxu0 %vm197_vm2, %v6912_v18  ;;  %v4722_v18 = vpack.c.bf16 %v5326_v25, %v5325_v36  ;;  %v4728_v51 = vpack.c.bf16 %v5336_v31, %v5335_v5  ;;  %v4697_v25 = vpack.c.bf16 %v5291_v27, %v5290_v60 }
 0xd40   :  { %4717 = vmatpush1.bf16.msra.mxu0 %v4716_v17  ;;  %2546 = vmatprep.mubr.f32.mxu0 %v8139_v22  ;;  %v5339_v56 = vpop.permute.xlu0 %5338 }
 0xd41   :  { %4718 = vmatprep.subr.bf16.mxu0 %v8135_v6  ;;  %v5341_v8 = vunpack.i.h.bf16 %v5339_v56  ;;  %v5340_v40 = vunpack.i.l.bf16 %v5339_v56 }
 0xd43   :  { %4047 = vmatmul.mubr.msk.f32.gmra.mrb[64].mxu0 %vm197_vm2, %v6969_v41  ;;  %v4725_v41 = vpack.c.bf16 %v5331_v37, %v5330_v55  ;;  %v4731_v34 = vpack.c.bf16 %v5341_v8, %v5340_v40 }
 0xd44   :  { %4720 = vmatpush1.bf16.msra.mxu0 %v4719_v1  ;;  %v5344_v53 = vpop.permute.xlu0 %5343 }
 0xd45   :  { %4691 = vmatpush1.bf16.xpose.msk.msra.mxu1 %vm6137_vm3, %v4689_v61  ;;  %4721 = vmatprep.subr.bf16.mxu0 %v8135_v6  ;;  %v5346_v13 = vunpack.i.h.bf16 %v5344_v53  ;;  %v5345_v50 = vunpack.i.l.bf16 %v5344_v53 }
 0xd46   :  { %4692 = vmatprep.subr.bf16.mxu1 %v8135_v6 }
 0xd47   :  { %v4734_v56 = vpack.c.bf16 %v5346_v13, %v5345_v50  ;;  %v5369_v13 = vpop.permute.xlu1 %5368 }
 0xd48   :  { %4723 = vmatpush1.bf16.msra.mxu0 %v4722_v18  ;;  %v5349_v17 = vpop.permute.xlu0 %5348  ;;  %v5295_v18 = vunpack.i.l.bf16 %v7416_v45  ;;  %v5301_v45 = vunpack.i.h.bf16 %v7418_v62 }
 0xd49   :  { %4724 = vmatprep.subr.bf16.mxu0 %v8135_v6  ;;  %v5351_v1 = vunpack.i.h.bf16 %v5349_v17  ;;  %v5350_v61 = vunpack.i.l.bf16 %v5349_v17 }
 0xd4a   :  { %v4701_v53 = vpack.c.bf16 %v5296_v29, %v5295_v18 }
 0xd4b   :  { %v4737_v55 = vpack.c.bf16 %v5351_v1, %v5350_v61 }
 0xd4c   :  { %4726 = vmatpush1.bf16.msra.mxu0 %v4725_v41  ;;  %v5354_v36 = vpop.permute.xlu0 %5353 }
 0xd4d   :  { %4695 = vmatpush1.bf16.xpose.msk.msra.mxu1 %vm6137_vm3, %v4693_v28  ;;  %4727 = vmatprep.subr.bf16.mxu0 %v8135_v6  ;;  %v5356_v9 = vunpack.i.h.bf16 %v5354_v36  ;;  %v5355_v24 = vunpack.i.l.bf16 %v5354_v36  ;;  %v5300_v28 = vunpack.i.l.bf16 %v7418_v62  ;;  %v5305_v62 = vunpack.i.l.bf16 %v7426_v49 }
 0xd4e   :  { %4696 = vmatprep.subr.bf16.mxu1 %v8135_v6  ;;  %v5370_v36 = vunpack.i.l.bf16 %v5369_v13 }
 0xd4f   :  { %v4740_v41 = vpack.c.bf16 %v5356_v9, %v5355_v24  ;;  %v4705_v27 = vpack.c.bf16 %v5301_v45, %v5300_v28 }
 0xd50   :  { %4729 = vmatpush1.bf16.msra.mxu0 %v4728_v51  ;;  %v5359_v37 = vpop.permute.xlu0 %5358 }
 0xd51   :  { %4730 = vmatprep.subr.bf16.mxu0 %v8135_v6  ;;  %v5361_v31 = vunpack.i.h.bf16 %v5359_v37  ;;  %v5360_v5 = vunpack.i.l.bf16 %v5359_v37 }
 0xd53   :  { %v4743_v51 = vpack.c.bf16 %v5361_v31, %v5360_v5 }
 0xd54   :  { %4732 = vmatpush1.bf16.msra.mxu0 %v4731_v34  ;;  %v5364_v17 = vpop.permute.xlu0 %5363  ;;  %v5306_v34 = vunpack.i.h.bf16 %v7426_v49 }
 0xd55   :  { %4699 = vmatpush1.bf16.xpose.msk.msra.mxu1 %vm6137_vm3, %v4697_v25  ;;  %4733 = vmatprep.subr.bf16.mxu0 %v8135_v6  ;;  %v5366_v8 = vunpack.i.h.bf16 %v5364_v17  ;;  %v5365_v40 = vunpack.i.l.bf16 %v5364_v17  ;;  %v5371_v25 = vunpack.i.h.bf16 %v5369_v13 }
 0xd56   :  { %4700 = vmatprep.subr.bf16.mxu1 %v8135_v6  ;;  %v4709_v50 = vpack.c.bf16 %v5306_v34, %v5305_v62 }
 0xd57   :  { %v4746_v60 = vpack.c.bf16 %v5366_v8, %v5365_v40  ;;  %v4749_v1 = vpack.c.bf16 %v5371_v25, %v5370_v36  ;;  %v5617_v25 = vld [vmem:[%s7832_s1 + $0x38] sm:$0xff]   ;;  %v5618_v36 = vld [vmem:[%s7832_s1 + $0x40] sm:$0xff]  }
 0xd58   :  { %4735 = vmatpush1.bf16.msra.mxu0 %v4734_v56  ;;  %v5374_v56 = vpop.permute.xlu1 %5373 }
 0xd59   :  { %4736 = vmatprep.subr.bf16.mxu0 %v8135_v6  ;;  %v5376_v61 = vunpack.i.h.bf16 %v5374_v56  ;;  %v5375_v29 = vunpack.i.l.bf16 %v5374_v56  ;;  %v5619_v56 = vld [vmem:[%s7832_s1 + $0x48] sm:$0xff]  }
 0xd5b   :  { %v4752_v49 = vpack.c.bf16 %v5376_v61, %v5375_v29  ;;  %v5621_v61 = vld [vmem:[%s7832_s1 + $0x58] sm:$0xff]   ;;  %v5622_v29 = vld [vmem:[%s7832_s1 + $0x60] sm:$0xff]  }
 0xd5c   :  { %4738 = vmatpush1.bf16.msra.mxu0 %v4737_v55 }
 0xd5d   :  { %4703 = vmatpush1.bf16.xpose.msk.msra.mxu1 %vm6137_vm3, %v4701_v53  ;;  %4739 = vmatprep.subr.bf16.mxu0 %v8135_v6 }
 0xd5e   :  { %4704 = vmatprep.subr.bf16.mxu1 %v8135_v6 }
 0xd60   :  { %4741 = vmatpush1.bf16.msra.mxu0 %v4740_v41 }
 0xd61   :  { %4742 = vmatprep.subr.bf16.mxu0 %v8135_v6 }
 0xd64   :  { %4744 = vmatpush1.bf16.msra.mxu0 %v4743_v51 }
 0xd65   :  { %4707 = vmatpush1.bf16.xpose.msk.msra.mxu1 %vm6137_vm3, %v4705_v27  ;;  %4745 = vmatprep.subr.bf16.mxu0 %v8135_v6 }
 0xd66   :  { %4708 = vmatprep.subr.bf16.mxu1 %v8135_v6 }
 0xd68   :  { %4747 = vmatpush1.bf16.msra.mxu0 %v4746_v60 }
 0xd69   :  { %4784 = vmatprep.subr.bf16.mxu0 %v8135_v6 }
 0xd6d   :  { %4711 = vmatpush1.bf16.xpose.msk.msra.mxu1 %vm6137_vm3, %v4709_v50 }
 0xd6e   :  { %4748 = vmatprep.subr.bf16.mxu1 %v8135_v6 }
 0xd74   :  { %4072 = vmatmul.mubr.msk.f32.vlgmr.msra.gmra.mrb[48].mxu1 %vm197_vm2, %v6991_v23 }
 0xd75   :  { %4750 = vmatpush1.bf16.msra.mxu1 %v4749_v1  ;;  %2752 = vmatprep.mubr.f32.mxu1 %v8139_v22  ;;  %v5620_v1 = vld [vmem:[%s7832_s1 + $0x50] sm:$0xff]  }
 0xd76   :  { %4751 = vmatprep.subr.bf16.mxu1 %v8135_v6 }
 0xd78   :  { %4073 = vmatmul.mubr.msk.f32.gmra.mrb[50].mxu1 %vm197_vm2, %v7170_v33 }
 0xd79   :  { %4753 = vmatpush1.bf16.msra.mxu1 %v4752_v49  ;;  %2758 = vmatprep.mubr.f32.mxu1 %v8139_v22  ;;  %v5623_v49 = vld [vmem:[%s7832_s1 + $0x68] sm:$0xff]  }
 0xd7a   :  { %4754 = vmatprep.subr.bf16.mxu1 %v8135_v6 }
 0xd7c   :  { %4074 = vmatmul.mubr.msk.f32.gmra.mrb[52].mxu1 %vm197_vm2, %v7196_v3 }
 0xe0e   :  { %v2536_v32 = vpop.f32.mrb[60].mxu0 }
 0xe0f   :  { %v2538_v18 = vpop.f32.mrb[61].mxu0  ;;  %v2765_v37 = vmul.f32 0.17677669, %v2536_v32  ;;  %v5624_v32 = vld [vmem:[%s7832_s1 + $0x70] sm:$0xff]  }
 0xe10   :  { %v2766_v23 = vmul.f32 0.17677669, %v2538_v18 }
 0xe12   :  { %v2777_v55 = vsel %vm66_vm1, %v2766_v23, -inf  ;;  %v2542_v9 = vpop.f32.mrb[62].mxu0 }
 0xe13   :  { %v2778_v24 = vmax.f32 %v2765_v37, %v2777_v55  ;;  %v2544_v53 = vpop.f32.mrb[63].mxu0  ;;  %v2767_v31 = vmul.f32 0.17677669, %v2542_v9  ;;  %v5625_v55 = vld [vmem:[%s7832_s1 + $0x78] sm:$0xff]  }
 0xe14   :  { %v2768_v41 = vmul.f32 0.17677669, %v2544_v53 }
 0xe15   :  { %2779 = vmax.xlane.f32.xlu1 %v2778_v24 }
 0xe16   :  { %v2781_v33 = vsel %vm66_vm1, %v2768_v41, -inf  ;;  %v2548_v5 = vpop.f32.mrb[64].mxu0 }
 0xe17   :  { %v2782_v45 = vmax.f32 %v2767_v31, %v2781_v33  ;;  %v2550_v28 = vpop.f32.mrb[65].mxu0  ;;  %v7507_v51 = vmul.f32 0.17677669, %v2548_v5  ;;  %v5626_v33 = vld [vmem:[%s7832_s1 + $0x80] sm:$0xff]  }
 0xe18   :  { %v7503_v3 = vmul.f32 0.17677669, %v2550_v28 }
 0xe19   :  { %2783 = vmax.xlane.f32.xlu0 %v2782_v45 }
 0xe1a   :  { %v2785_v17 = vsel %vm66_vm1, %v7503_v3, -inf }
 0xe1b   :  { %v2786_v40 = vmax.f32 %v7507_v51, %v2785_v17 }
 0xe26   :  { %5378 = vrot.lane.b32.xlu1 %v5377_v46, %s5657_s3 }
 0xe47   :  { %v2748_v8 = vpop.f32.mrb[48].mxu1 }
 0xe48   :  { %v2750_v27 = vpop.f32.mrb[49].mxu1  ;;  %v7512_v34 = vmul.f32 0.17677669, %v2748_v8 }
 0xe49   :  { %v7510_v60 = vmul.f32 0.17677669, %v2750_v27 }
 0xe4a   :  { %2787 = vmax.xlane.f32.xlu1 %v2786_v40 }
 0xe4b   :  { %v2789_v47 = vsel %vm66_vm1, %v7510_v60, -inf  ;;  %v2754_v59 = vpop.f32.mrb[50].mxu1 }
 0xe4c   :  { %v2790_v46 = vmax.f32 %v7512_v34, %v2789_v47  ;;  %v2756_v62 = vpop.f32.mrb[51].mxu1  ;;  %v7557_v44 = vmul.f32 0.17677669, %v2754_v59 }
 0xe4d   :  { %v7553_v63 = vmul.f32 0.17677669, %v2756_v62 }
 0xe4e   :  { %2791 = vmax.xlane.f32.xlu0 %v2790_v46 }
 0xe4f   :  { %v2760_v13 = vpop.f32.mrb[52].mxu1  ;;  %v2793_v57 = vsel %vm66_vm1, %v7553_v63, -inf }
 0xe50   :  { %v2762_v50 = vpop.f32.mrb[53].mxu1  ;;  %v2794_v35 = vmax.f32 %v7557_v44, %v2793_v57  ;;  %v7564_v0 = vmul.f32 0.17677669, %v2760_v13 }
 0xe51   :  { %v7560_v39 = vmul.f32 0.17677669, %v2762_v50 }
 0xe53   :  { %v2797_v15 = vsel %vm66_vm1, %v7560_v39, -inf }
 0xe54   :  { %v2798_v54 = vmax.f32 %v7564_v0, %v2797_v15 }
 0xe5b   :  { %5388 = vrot.lane.b32.xlu1 %v5387_v52, %s5657_s3 }
 0xe5f   :  { %5393 = vrot.lane.b32.xlu1 %v5392_v38, %s5657_s3 }
 0xe63   :  { %5398 = vrot.lane.b32.xlu1 %v5397_v16, %s5657_s3 }
 0xe64   :  { %5383 = vrot.lane.b32.xlu0 %v5382_v26, %s5657_s3 }
 0xe67   :  { %5403 = vrot.lane.b32.xlu1 %v5402_v14, %s5657_s3 }
 0xe68   :  { %5418 = vrot.lane.b32.xlu0 %v5417_v7, %s5657_s3 }
 0xe6b   :  { %5408 = vrot.lane.b32.xlu1 %v5407_v43, %s5657_s3 }
 0xe6f   :  { %5413 = vrot.lane.b32.xlu1 %v5412_v20, %s5657_s3 }
 0xe73   :  { %5423 = vrot.lane.b32.xlu1 %v5422_v58, %s5657_s3 }
 0xe87   :  { %2795 = vmax.xlane.f32.xlu0 %v2794_v35 }
 0xe97   :  { %2799 = vmax.xlane.f32.xlu1 %v2798_v54 }
 0xea2   :  { %v2780_v52 = vpop.xlane.xlu1 %2779 }
 0xea3   :  { %v2801_v30 = vsub.f32 %v2765_v37, %v2780_v52  ;;  %v2802_v12 = vsub.f32 %v2766_v23, %v2780_v52 }
 0xea5   :  { %v2813_v42 = vmul.f32 1.442695, %v2801_v30  ;;  %v2815_v10 = vmul.f32 1.442695, %v2802_v12 }
 0xea6   :  { %v5379_v21 = vpop.permute.xlu1 %5378  ;;  %v2784_v2 = vpop.xlane.xlu0 %2783 }
 0xea7   :  { %5544 = vpow2.f32 %v2813_v42  ;;  %v5381_v38 = vunpack.i.h.bf16 %v5379_v21  ;;  %v5380_v16 = vunpack.i.l.bf16 %v5379_v21  ;;  %v2803_v48 = vsub.f32 %v2767_v31, %v2784_v2 }
 0xea8   :  { %5546 = vpow2.f32 %v2815_v10  ;;  %v2804_v4 = vsub.f32 %v2768_v41, %v2784_v2 }
 0xea9   :  { %v4755_v26 = vpack.c.bf16 %v5381_v38, %v5380_v16  ;;  %v2817_v14 = vmul.f32 1.442695, %v2803_v48 }
 0xeaa   :  { %v2819_v7 = vmul.f32 1.442695, %v2804_v4 }
 0xeab   :  { %5548 = vpow2.f32 %v2817_v14  ;;  %4756 = vmatpush1.bf16.msra.mxu1 %v4755_v26 }
 0xeac   :  { %5550 = vpow2.f32 %v2819_v7  ;;  %4757 = vmatprep.subr.bf16.mxu1 %v8135_v6 }
 0xeb1   :  { %v7568_v43 = vpop.eup %5544 }
 0xeb2   :  { %v7570_v20 = vpop.eup %5546 }
 0xeb3   :  { %4075 = vmatprep.mubr.msk.f32.mxu0 %vm66_vm1, %v7570_v20 }
 0xeb4   :  { %3007 = vmatmul.mubr.f32.vlgmr.msra.gmra.mrb[66].mxu0 %v7568_v43 }
 0xeb5   :  { %v7575_v19 = vpop.eup %5548  ;;  %4786 = vmatpush1.bf16.msra.mxu0 %v5616_v11 }
 0xeb6   :  { %v7580_v58 = vpop.eup %5550  ;;  %4787 = vmatprep.subr.bf16.mxu0 %v8135_v6 }
 0xeb7   :  { %4076 = vmatprep.mubr.msk.f32.mxu0 %vm66_vm1, %v7580_v58 }
 0xeb8   :  { %3012 = vmatmul.mubr.f32.gmra.mrb[68].mxu0 %v7575_v19 }
 0xeb9   :  { %4789 = vmatpush1.bf16.msra.mxu0 %v5617_v25 }
 0xeba   :  { %4790 = vmatprep.subr.bf16.mxu0 %v8135_v6 }
 0xebd   :  { %4792 = vmatpush1.bf16.msra.mxu0 %v5618_v36 }
 0xebe   :  { %4793 = vmatprep.subr.bf16.mxu0 %v8135_v6 }
 0xec1   :  { %4795 = vmatpush1.bf16.msra.mxu0 %v5619_v56 }
 0xec2   :  { %4796 = vmatprep.subr.bf16.mxu0 %v8135_v6 }
 0xec5   :  { %4798 = vmatpush1.bf16.msra.mxu0 %v5620_v1 }
 0xec6   :  { %4799 = vmatprep.subr.bf16.mxu0 %v8135_v6 }
 0xec9   :  { %4801 = vmatpush1.bf16.msra.mxu0 %v5621_v61 }
 0xeca   :  { %4802 = vmatprep.subr.bf16.mxu0 %v8135_v6 }
 0xecd   :  { %4804 = vmatpush1.bf16.msra.mxu0 %v5622_v29 }
 0xece   :  { %4805 = vmatprep.subr.bf16.mxu0 %v8135_v6 }
 0xed1   :  { %4807 = vmatpush1.bf16.msra.mxu0 %v5623_v49 }
 0xed2   :  { %4808 = vmatprep.subr.bf16.mxu0 %v8135_v6 }
 0xed5   :  { %4810 = vmatpush1.bf16.msra.mxu0 %v5624_v32 }
 0xed6   :  { %4811 = vmatprep.subr.bf16.mxu0 %v8135_v6 }
 0xed7   :  { %v2788_v18 = vpop.xlane.xlu1 %2787 }
 0xed8   :  { %v2805_v23 = vsub.f32 %v7507_v51, %v2788_v18  ;;  %v2806_v37 = vsub.f32 %v7503_v3, %v2788_v18  ;;  %v5627_v51 = vld [vmem:[%s7832_s1 + $0x88] sm:$0xff]  }
 0xed9   :  { %4813 = vmatpush1.bf16.msra.mxu0 %v5625_v55 }
 0xeda   :  { %v2821_v9 = vmul.f32 1.442695, %v2805_v23  ;;  %v2823_v24 = vmul.f32 1.442695, %v2806_v37  ;;  %4814 = vmatprep.subr.bf16.mxu0 %v8135_v6 }
 0xedb   :  { %v2792_v53 = vpop.xlane.xlu0 %2791  ;;  %v5389_v41 = vpop.permute.xlu1 %5388 }
 0xedc   :  { %5552 = vpow2.f32 %v2821_v9  ;;  %v2808_v31 = vsub.f32 %v7510_v60, %v2792_v53  ;;  %v5391_v8 = vunpack.i.h.bf16 %v5389_v41  ;;  %v5390_v40 = vunpack.i.l.bf16 %v5389_v41 }
 0xedd   :  { %5554 = vpow2.f32 %v2823_v24  ;;  %4816 = vmatpush1.bf16.msra.mxu0 %v5626_v33  ;;  %v2807_v59 = vsub.f32 %v7512_v34, %v2792_v53 }
 0xede   :  { %v2827_v5 = vmul.f32 1.442695, %v2808_v31  ;;  %4817 = vmatprep.subr.bf16.mxu0 %v8135_v6  ;;  %v4761_v46 = vpack.c.bf16 %v5391_v8, %v5390_v40 }
 0xedf   :  { %v5384_v45 = vpop.permute.xlu0 %5383  ;;  %v5394_v28 = vpop.permute.xlu1 %5393  ;;  %v2825_v35 = vmul.f32 1.442695, %v2807_v59 }
 0xee0   :  { %v5386_v3 = vunpack.i.h.bf16 %v5384_v45  ;;  %v5385_v17 = vunpack.i.l.bf16 %v5384_v45  ;;  %5556 = vpow2.f32 %v2827_v5  ;;  %v5396_v62 = vunpack.i.h.bf16 %v5394_v28 }
 0xee1   :  { %4819 = vmatpush1.bf16.msra.mxu0 %v5627_v51  ;;  %v5395_v13 = vunpack.i.l.bf16 %v5394_v28  ;;  %5558 = vpow2.f32 %v2825_v35 }
 0xee2   :  { %v4758_v27 = vpack.c.bf16 %v5386_v3, %v5385_v17  ;;  %4392 = vmatprep.subr.bf16.mxu0 %v8139_v22 }
 0xee3   :  { %v5399_v60 = vpop.permute.xlu1 %5398  ;;  %v4764_v15 = vpack.c.bf16 %v5396_v62, %v5395_v13  ;;  %v5419_v14 = vpop.permute.xlu0 %5418 }
 0xee4   :  { %4759 = vmatpush1.bf16.msra.mxu1 %v4758_v27  ;;  %v5401_v54 = vunpack.i.h.bf16 %v5399_v60  ;;  %v5400_v52 = vunpack.i.l.bf16 %v5399_v60 }
 0xee5   :  { %4760 = vmatprep.subr.bf16.mxu1 %v8135_v6 }
 0xee6   :  { %v5553_v47 = vpop.eup %5552  ;;  %v4767_v12 = vpack.c.bf16 %v5401_v54, %v5400_v52 }
 0xee7   :  { %v5555_v50 = vpop.eup %5554  ;;  %v5404_v57 = vpop.permute.xlu1 %5403 }
 0xee8   :  { %4077 = vmatprep.mubr.msk.f32.mxu0 %vm66_vm1, %v5555_v50  ;;  %4762 = vmatpush1.bf16.msra.mxu1 %v4761_v46  ;;  %v5406_v42 = vunpack.i.h.bf16 %v5404_v57  ;;  %v5405_v10 = vunpack.i.l.bf16 %v5404_v57 }
 0xee9   :  { %3017 = vmatmul.mubr.f32.gmra.mrb[70].mxu0 %v5553_v47  ;;  %4763 = vmatprep.subr.bf16.mxu1 %v8135_v6 }
 0xeea   :  { %4081 = vmatprep.mubr.msk.f32.mxu0 %vm66_vm1, %v7570_v20  ;;  %v5557_v30 = vpop.eup %5556  ;;  %v4770_v21 = vpack.c.bf16 %v5406_v42, %v5405_v10  ;;  %v5420_v20 = vunpack.i.l.bf16 %v5419_v14 }
 0xeeb   :  { %4078 = vmatprep.mubr.msk.f32.mxu1 %vm66_vm1, %v5557_v30  ;;  %v5409_v34 = vpop.permute.xlu1 %5408  ;;  %v5559_v7 = vpop.eup %5558 }
 0xeec   :  { %4765 = vmatpush1.bf16.msra.mxu1 %v4764_v15  ;;  %v5411_v2 = vunpack.i.h.bf16 %v5409_v34  ;;  %v5410_v38 = vunpack.i.l.bf16 %v5409_v34 }
 0xeed   :  { %3272 = vmatmul.mubr.f32.vlgmr.msra.gmra.mrb[72].mxu0 %v7568_v43  ;;  %4766 = vmatprep.subr.bf16.mxu1 %v8135_v6  ;;  %v5421_v43 = vunpack.i.h.bf16 %v5419_v14 }
 0xeee   :  { %4082 = vmatprep.mubr.msk.f32.mxu0 %vm66_vm1, %v7580_v58  ;;  %v4773_v48 = vpack.c.bf16 %v5411_v2, %v5410_v38 }
 0xeef   :  { %v5414_v16 = vpop.permute.xlu1 %5413  ;;  %v4779_v58 = vpack.c.bf16 %v5421_v43, %v5420_v20  ;;  %v3405_v43 = vld [vmem:[%s7832_s1 + $0x188] sm:$0x1] }
 0xef0   :  { %4768 = vmatpush1.bf16.msra.mxu1 %v4767_v12  ;;  %v5416_v4 = vunpack.i.h.bf16 %v5414_v16  ;;  %v5415_v26 = vunpack.i.l.bf16 %v5414_v16  ;;  %v3406_v20 = vunpack.c.l.bf16 %v3405_v43 }
 0xef1   :  { %3277 = vmatmul.mubr.f32.gmra.mrb[74].mxu0 %v7575_v19  ;;  %4769 = vmatprep.subr.bf16.mxu1 %v8135_v6 }
 0xef2   :  { %4083 = vmatprep.mubr.msk.f32.mxu0 %vm66_vm1, %v5555_v50  ;;  %v4776_v19 = vpack.c.bf16 %v5416_v4, %v5415_v26 }
 0xef3   :  { %v5424_v11 = vpop.permute.xlu1 %5423 }
 0xef4   :  { %4771 = vmatpush1.bf16.msra.mxu1 %v4770_v21  ;;  %v5426_v25 = vunpack.i.h.bf16 %v5424_v11  ;;  %v5425_v36 = vunpack.i.l.bf16 %v5424_v11 }
 0xef5   :  { %3282 = vmatmul.mubr.f32.gmra.mrb[76].mxu0 %v5553_v47  ;;  %4772 = vmatprep.subr.bf16.mxu1 %v8135_v6 }
 0xef6   :  { %4084 = vmatprep.mubr.msk.f32.mxu0 %vm66_vm1, %v5557_v30  ;;  %v4782_v56 = vpack.c.bf16 %v5426_v25, %v5425_v36  ;;  %v8141_v25 = vld [vmem:[#allocation5_spill] sm:$0xff] }
 0xef8   :  { %4774 = vmatpush1.bf16.msra.mxu1 %v4773_v48 }
 0xef9   :  { %3287 = vmatmul.mubr.f32.gmra.mrb[78].mxu0 %v5559_v7  ;;  %4775 = vmatprep.subr.bf16.mxu1 %v8135_v6 }
 0xefc   :  { %4777 = vmatpush1.bf16.msra.mxu1 %v4776_v19  ;;  %v8140_v19 = vld [vmem:[#allocation17_spill] sm:$0xff] }
 0xefd   :  { %4778 = vmatprep.subr.bf16.mxu1 %v8135_v6  ;;  %v3410_v11 = vrot.slane %v3406_v20, %v8140_v19 }
 0xf00   :  { %4780 = vmatpush1.bf16.msra.mxu1 %v4779_v58 }
 0xf01   :  { %4781 = vmatprep.subr.bf16.mxu1 %v8135_v6 }
 0xf04   :  { %4783 = vmatpush1.bf16.msra.mxu1 %v4782_v56 }
 0xf05   :  { %4340 = vmatprep.subr.bf16.mxu1 %v8139_v22 }
 0xf07   :  { %3192 = vmatmul.mubr.f32.vlgmr.msra.gmra.mrb[54].mxu1 %v5559_v7 }
 0xf14   :  { %v2796_v1 = vpop.xlane.xlu0 %2795 }
 0xf15   :  { %v2809_v61 = vsub.f32 %v7557_v44, %v2796_v1  ;;  %v2810_v29 = vsub.f32 %v7553_v63, %v2796_v1 }
 0xf17   :  { %v2829_v49 = vmul.f32 1.442695, %v2809_v61  ;;  %v2831_v32 = vmul.f32 1.442695, %v2810_v29  ;;  %v8142_v29 = vld [vmem:[#allocation6_spill] sm:$0xff] }
 0xf19   :  { %5560 = vpow2.f32 %v2829_v49 }
 0xf1a   :  { %5562 = vpow2.f32 %v2831_v32 }
 0xf23   :  { %v5561_v18 = vpop.eup %5560 }
 0xf24   :  { %v5563_v23 = vpop.eup %5562  ;;  %v2800_v37 = vpop.xlane.xlu1 %2799 }
 0xf25   :  { %4085 = vmatprep.mubr.msk.f32.mxu0 %vm66_vm1, %v5563_v23  ;;  %v2811_v6 = vsub.f32 %v7564_v0, %v2800_v37  ;;  %v2812_v55 = vsub.f32 %v7560_v39, %v2800_v37  ;;  %4079 = vmatprep.mubr.msk.f32.mxu1 %vm66_vm1, %v5563_v23  ;;  %v5446_v39 = vld [vmem:[%s7832_s1 + $0x128] sm:$0xff]   ;;  %v5447_v0 = vld [vmem:[%s7832_s1 + $0x130] sm:$0xff]  }
 0xf26   :  { %3197 = vmatmul.mubr.f32.gmra.mrb[56].mxu1 %v5561_v18  ;;  %3292 = vmatmul.mubr.f32.gmra.mrb[80].mxu0 %v5561_v18 }
 0xf27   :  { %v2833_v44 = vmul.f32 1.442695, %v2811_v6  ;;  %v2835_v9 = vmul.f32 1.442695, %v2812_v55  ;;  %4341 = vmatpush3.bf16.msra.mxu1 %v5446_v39  ;;  %v8143_v55 = vld [vmem:[#allocation7_spill] sm:$0xff]  ;;  %v8144_v39 = vld [vmem:[#allocation8_spill] sm:$0xff] }
 0xf28   :  { %4342 = vmatprep.subr.bf16.mxu1 %v8139_v22 }
 0xf29   :  { %5564 = vpow2.f32 %v2833_v44 }
 0xf2a   :  { %5566 = vpow2.f32 %v2835_v9 }
 0xf2b   :  { %4343 = vmatpush3.bf16.msra.mxu1 %v5447_v0 }
 0xf2c   :  { %4356 = vmatprep.subr.bf16.mxu1 %v8139_v22 }
 0xf33   :  { %v5565_v63 = vpop.eup %5564 }
 0xf34   :  { %v5567_v24 = vpop.eup %5566 }
 0xf35   :  { %4080 = vmatprep.mubr.msk.f32.mxu1 %vm66_vm1, %v5567_v24  ;;  %4086 = vmatprep.mubr.msk.f32.mxu0 %vm66_vm1, %v5567_v24 }
 0xf36   :  { %3202 = vmatmul.mubr.f32.gmra.mrb[58].mxu1 %v5565_v63  ;;  %3297 = vmatmul.mubr.f32.gmra.mrb[82].mxu0 %v5565_v63 }
 0xf37   :  { %4344 = vmatprep.mubr.msk.bf16.mxu1 %vm5653_vm0, %v8139_v22  ;;  %4396 = vmatprep.mubr.msk.bf16.mxu0 %vm5653_vm0, %v8139_v22 }
 0xf87   :  { %v3008_v53 = vpop.f32.mrb[66].mxu0 }
 0xf88   :  { %v3010_v41 = vpop.f32.mrb[67].mxu0 }
 0xf8b   :  { %v3013_v31 = vpop.f32.mrb[68].mxu0 }
 0xf8c   :  { %v3015_v33 = vpop.f32.mrb[69].mxu0 }
 0xfbc   :  { %v3018_v5 = vpop.f32.mrb[70].mxu0 }
 0xfbd   :  { %v3020_v45 = vpop.f32.mrb[71].mxu0 }
 0xfc0   :  { %v3273_v28 = vpop.f32.mrb[72].mxu0 }
 0xfc1   :  { %5568 = vrcp.f32 %v3273_v28  ;;  %v3275_v3 = vpop.f32.mrb[73].mxu0 }
 0xfc4   :  { %v3278_v17 = vpop.f32.mrb[74].mxu0 }
 0xfc5   :  { %5570 = vrcp.f32 %v3278_v17  ;;  %v3280_v51 = vpop.f32.mrb[75].mxu0 }
 0xfc8   :  { %v3283_v8 = vpop.f32.mrb[76].mxu0 }
 0xfc9   :  { %5572 = vrcp.f32 %v3283_v8  ;;  %v3285_v40 = vpop.f32.mrb[77].mxu0 }
 0xfcb   :  { %v5569_v27 = vpop.eup %5568 }
 0xfcc   :  { %v3308_v60 = vmul.f32 %v5569_v27, %v3008_v53  ;;  %v3288_v47 = vpop.f32.mrb[78].mxu0 }
 0xfcd   :  { %v3290_v59 = vpop.f32.mrb[79].mxu0  ;;  %5574 = vrcp.f32 %v3288_v47 }
 0xfcf   :  { %v5571_v46 = vpop.eup %5570 }
 0xfd0   :  { %v3309_v62 = vmul.f32 %v5571_v46, %v3013_v31 }
 0xfd2   :  { %v3314_v13 = vpack.c.bf16 %v3309_v62, %v3308_v60 }
 0xfd3   :  { %v5573_v50 = vpop.eup %5572 }
 0xfd4   :  { %4345 = vmatmul.mubr.msk.bf16.vlgmr.msra.gmra.mrb[60].mxu1 %vm197_vm2, %v3314_v13  ;;  %v3310_v57 = vmul.f32 %v5573_v50, %v3018_v5 }
 0xfd5   :  { %4348 = vmatprep.mubr.msk.bf16.mxu1 %vm5653_vm0, %v8139_v22 }
 0xfd7   :  { %v5575_v35 = vpop.eup %5574 }
 0xfda   :  { %v3193_v15 = vpop.f32.mrb[54].mxu1 }
 0xfdb   :  { %v3311_v54 = vmul.f32 %v5575_v35, %v3193_v15  ;;  %v3195_v52 = vpop.f32.mrb[55].mxu1  ;;  %v8145_v35 = vld [vmem:[#allocation9_spill] sm:$0xff] }
 0xfdd   :  { %v3315_v30 = vpack.c.bf16 %v3311_v54, %v3310_v57 }
 0xfdf   :  { %4349 = vmatmul.mubr.msk.bf16.gmra.mrb[64].mxu1 %vm197_vm2, %v3315_v30  ;;  %v8146_v30 = vld [vmem:[#allocation10_spill] sm:$0xff] }
 0xfe0   :  { %4352 = vmatprep.mubr.msk.bf16.mxu1 %vm5653_vm0, %v8139_v22 }
 0xff9   :  { %v3198_v34 = vpop.f32.mrb[56].mxu1  ;;  %v3293_v12 = vpop.f32.mrb[80].mxu0 }
 0xffa   :  { %5576 = vrcp.f32 %v3293_v12  ;;  %v3200_v42 = vpop.f32.mrb[57].mxu1  ;;  %v3295_v10 = vpop.f32.mrb[81].mxu0 }
0x1004   :  { %v5577_v21 = vpop.eup %5576 }
0x1005   :  { %v3312_v2 = vmul.f32 %v5577_v21, %v3198_v34 }
0x1009   :  { %v3203_v38 = vpop.f32.mrb[58].mxu1  ;;  %v3298_v16 = vpop.f32.mrb[82].mxu0 }
0x100a   :  { %5578 = vrcp.f32 %v3298_v16  ;;  %v3205_v48 = vpop.f32.mrb[59].mxu1  ;;  %v3300_v4 = vpop.f32.mrb[83].mxu0 }
0x1014   :  { %v5579_v26 = vpop.eup %5578 }
0x1015   :  { %v3313_v14 = vmul.f32 %v5579_v26, %v3203_v38  ;;  %v5448_v26 = vld [vmem:[%s7832_s1 + $0x138] sm:$0xff]  }
0x1016   :  { %4357 = vmatpush3.bf16.msra.mxu1 %v5448_v26 }
0x1017   :  { %v3316_v7 = vpack.c.bf16 %v3313_v14, %v3312_v2  ;;  %4358 = vmatprep.subr.bf16.mxu1 %v8139_v22  ;;  %v5449_v14 = vld [vmem:[%s7832_s1 + $0x140] sm:$0xff]  }
0x1019   :  { %4353 = vmatmul.mubr.msk.bf16.gmra.mrb[68].mxu1 %vm197_vm2, %v3316_v7 }
0x101a   :  { %4360 = vmatprep.mubr.msk.bf16.mxu1 %vm5653_vm0, %v8139_v22  ;;  %4359 = vmatpush3.bf16.msra.mxu1 %v5449_v14 }
0x101b   :  { %4372 = vmatprep.subr.bf16.mxu1 %v8139_v22 }
0x10a7   :  { %v3376_v58 = vpop.f32.mrb[60].mxu1 }
0x10a8   :  { %v3399_v36 = vadd.f32 %v3376_v58, %v8141_v25  ;;  %v4346_v56 = vpop.f32.mrb[61].mxu1 }
0x10a9   :  { %v3379_v1 = vpop.f32.mrb[62].mxu1 }
0x10aa   :  { %v7687_v61 = vadd.f32 %v3410_v11, %v3399_v36  ;;  %v3400_v49 = vadd.f32 %v3379_v1, %v8142_v29  ;;  %v4347_v32 = vpop.f32.mrb[63].mxu1  ;;  %v3417_v36 = vld [vmem:[%s7832_s1 + $0x178] sm:$0x1]  ;;  %v3419_v29 = vld [vmem:[%s7832_s1 + $0x180] sm:$0x1] }
0x10ab   :  { %v3418_v56 = vunpack.c.l.bf16 %v3417_v36 }
0x10ac   :  { %v3412_v18 = vadd.f32 %v3410_v11, %v3400_v49  ;;  %v3421_v23 = vsel %vm197_vm2, %v7687_v61, 0.0 }
0x10ad   :  { %3422 = vadd.xlane.f32.xlu0 %v3421_v23 }
0x10ae   :  { %v3424_v37 = vsel %vm197_vm2, %v3412_v18, 0.0 }
0x10b1   :  { %3425 = vadd.xlane.f32.xlu0 %v3424_v37 }
0x10b2   :  { %v3384_v6 = vpop.f32.mrb[64].mxu1 }
0x10b3   :  { %v3401_v44 = vadd.f32 %v3384_v6, %v8143_v55  ;;  %v4350_v9 = vpop.f32.mrb[65].mxu1  ;;  %v3420_v6 = vunpack.c.l.bf16 %v3419_v29  ;;  %v3502_v55 = vrot.slane %v3418_v56, %v8140_v19 }
0x10b4   :  { %v3387_v63 = vpop.f32.mrb[66].mxu1 }
0x10b5   :  { %v3413_v24 = vadd.f32 %v3410_v11, %v3401_v44  ;;  %v3402_v0 = vadd.f32 %v3387_v63, %v8144_v39  ;;  %v4351_v53 = vpop.f32.mrb[67].mxu1 }
0x10b7   :  { %v7695_v41 = vadd.f32 %v3410_v11, %v3402_v0  ;;  %v3427_v31 = vsel %vm197_vm2, %v3413_v24, 0.0 }
0x10b8   :  { %3428 = vadd.xlane.f32.xlu0 %v3427_v31 }
0x10b9   :  { %v3430_v33 = vsel %vm197_vm2, %v7695_v41, 0.0 }
0x10ba   :  { %3431 = vadd.xlane.f32.xlu1 %v3430_v33  ;;  %v3512_v33 = vrot.slane %v3420_v6, %v8140_v19 }
0x10ec   :  { %v3392_v5 = vpop.f32.mrb[68].mxu1 }
0x10ed   :  { %v4354_v45 = vpop.f32.mrb[69].mxu1  ;;  %v3403_v15 = vadd.f32 %v3392_v5, %v8145_v35 }
0x10ee   :  { %v3395_v28 = vpop.f32.mrb[70].mxu1 }
0x10ef   :  { %v4355_v3 = vpop.f32.mrb[71].mxu1  ;;  %v3404_v34 = vadd.f32 %v3395_v28, %v8146_v30  ;;  %v3415_v10 = vadd.f32 %v3410_v11, %v3403_v15  ;;  %v5451_v30 = vld [vmem:[%s7832_s1 + $0x150] sm:$0xff]  }
0x10f1   :  { %v3416_v38 = vadd.f32 %v3410_v11, %v3404_v34  ;;  %v3433_v48 = vsel %vm197_vm2, %v3415_v10, 0.0  ;;  %v5452_v34 = vld [vmem:[%s7832_s1 + $0x158] sm:$0xff]  }
0x10f3   :  { %v3436_v4 = vsel %vm197_vm2, %v3416_v38, 0.0 }
0x113a   :  { %v3423_v17 = vpop.xlane.xlu0 %3422 }
0x113b   :  { %v3439_v51 = vmul.f32 0.03125, %v3423_v17 }
0x113d   :  { %v3445_v8 = vsub.f32 %v7687_v61, %v3439_v51 }
0x113e   :  { %v3426_v40 = vpop.xlane.xlu0 %3425 }
0x113f   :  { %v3440_v27 = vmul.f32 0.03125, %v3426_v40  ;;  %v3451_v60 = vmul.f32 %v3445_v8, %v3445_v8 }
0x1141   :  { %v7701_v47 = vsub.f32 %v3412_v18, %v3440_v27  ;;  %v3457_v59 = vsel %vm197_vm2, %v3451_v60, 0.0 }
0x1142   :  { %3458 = vadd.xlane.f32.xlu0 %v3457_v59 }
0x1143   :  { %v3452_v46 = vmul.f32 %v7701_v47, %v7701_v47 }
0x1145   :  { %v3429_v62 = vpop.xlane.xlu0 %3428  ;;  %v3460_v13 = vsel %vm197_vm2, %v3452_v46, 0.0 }
0x1146   :  { %v3441_v50 = vmul.f32 0.03125, %v3429_v62  ;;  %3461 = vadd.xlane.f32.xlu1 %v3460_v13 }
0x1147   :  { %v3432_v57 = vpop.xlane.xlu1 %3431 }
0x1148   :  { %v7708_v54 = vsub.f32 %v3413_v24, %v3441_v50  ;;  %v3442_v52 = vmul.f32 0.03125, %v3432_v57 }
0x114a   :  { %v7712_v12 = vsub.f32 %v7695_v41, %v3442_v52  ;;  %v3453_v42 = vmul.f32 %v7708_v54, %v7708_v54 }
0x114c   :  { %v3463_v21 = vsel %vm197_vm2, %v3453_v42, 0.0  ;;  %v3454_v2 = vmul.f32 %v7712_v12, %v7712_v12 }
0x114d   :  { %3464 = vadd.xlane.f32.xlu0 %v3463_v21 }
0x114e   :  { %v3466_v16 = vsel %vm197_vm2, %v3454_v2, 0.0 }
0x114f   :  { %3467 = vadd.xlane.f32.xlu1 %v3466_v16 }
0x1151   :  { %3434 = vadd.xlane.f32.xlu0 %v3433_v48 }
0x1153   :  { %3437 = vadd.xlane.f32.xlu1 %v3436_v4 }
0x11cf   :  { %v3459_v7 = vpop.xlane.xlu0 %3458 }
0x11d0   :  { %v3475_v43 = vmul.f32 0.03125, %v3459_v7 }
0x11d2   :  { %v3481_v20 = vadd.f32 1e-05, %v3475_v43 }
0x11d3   :  { %v3462_v11 = vpop.xlane.xlu1 %3461 }
0x11d4   :  { %5580 = vrsqrt.f32 %v3481_v20  ;;  %v3476_v58 = vmul.f32 0.03125, %v3462_v11 }
0x11d6   :  { %v3482_v25 = vadd.f32 1e-05, %v3476_v58 }
0x11d8   :  { %5582 = vrsqrt.f32 %v3482_v25  ;;  %v3526_v25 = vld [vmem:[%s7832_s1 + $0x190] sm:$0x1] }
0x11d9   :  { %v3527_v36 = vunpack.c.l.bf16 %v3526_v25 }
0x11da   :  { %v3465_v1 = vpop.xlane.xlu0 %3464 }
0x11db   :  { %v3477_v49 = vmul.f32 0.03125, %v3465_v1  ;;  %v3531_v56 = vrot.slane %v3527_v36, %v8140_v19 }
0x11dc   :  { %v3468_v32 = vpop.xlane.xlu1 %3467 }
0x11dd   :  { %v3483_v18 = vadd.f32 1e-05, %v3477_v49  ;;  %v3478_v23 = vmul.f32 0.03125, %v3468_v32 }
0x11de   :  { %v5581_v37 = vpop.eup %5580  ;;  %v3435_v44 = vpop.xlane.xlu0 %3434 }
0x11df   :  { %v3493_v9 = vmul.f32 %v5581_v37, %v3445_v8  ;;  %5584 = vrsqrt.f32 %v3483_v18  ;;  %v3484_v63 = vadd.f32 1e-05, %v3478_v23  ;;  %v3443_v24 = vmul.f32 0.03125, %v3435_v44 }
0x11e0   :  { %v3438_v39 = vpop.xlane.xlu1 %3437 }
0x11e1   :  { %5586 = vrsqrt.f32 %v3484_v63  ;;  %v3449_v0 = vsub.f32 %v3415_v10, %v3443_v24  ;;  %v3444_v53 = vmul.f32 0.03125, %v3438_v39  ;;  %v3503_v5 = vmul.f32 %v3502_v55, %v3493_v9 }
0x11e2   :  { %v5583_v31 = vpop.eup %5582 }
0x11e3   :  { %v3494_v45 = vmul.f32 %v5583_v31, %v7701_v47  ;;  %v3450_v28 = vsub.f32 %v3416_v38, %v3444_v53  ;;  %v3455_v3 = vmul.f32 %v3449_v0, %v3449_v0  ;;  %v3513_v8 = vadd.f32 %v3512_v33, %v3503_v5 }
0x11e5   :  { %v3504_v17 = vmul.f32 %v3502_v55, %v3494_v45  ;;  %v3469_v51 = vsel %vm197_vm2, %v3455_v3, 0.0  ;;  %v3456_v40 = vmul.f32 %v3450_v28, %v3450_v28 }
0x11e6   :  { %3470 = vadd.xlane.f32.xlu0 %v3469_v51 }
0x11e7   :  { %v3514_v27 = vadd.f32 %v3512_v33, %v3504_v17  ;;  %v3472_v60 = vsel %vm197_vm2, %v3456_v40, 0.0 }
0x11e8   :  { %3473 = vadd.xlane.f32.xlu1 %v3472_v60 }
0x11e9   :  { %v5585_v59 = vpop.eup %5584  ;;  %v3519_v46 = vpack.c.bf16 %v3514_v27, %v3513_v8 }
0x11ea   :  { %v3495_v62 = vmul.f32 %v5585_v59, %v7708_v54  ;;  %v5450_v54 = vld [vmem:[%s7832_s1 + $0x148] sm:$0xff]  }
0x11eb   :  { %v5587_v13 = vpop.eup %5586  ;;  %4361 = vmatmul.mubr.msk.bf16.vlgmr.msra.gmra.mrb[72].mxu1 %vm197_vm2, %v3519_v46 }
0x11ec   :  { %v3496_v47 = vmul.f32 %v5587_v13, %v7712_v12  ;;  %4364 = vmatprep.mubr.msk.bf16.mxu1 %vm5653_vm0, %v8139_v22  ;;  %v3505_v50 = vmul.f32 %v3502_v55, %v3495_v62  ;;  %4373 = vmatpush3.bf16.msra.mxu1 %v5450_v54  ;;  %v5453_v12 = vld [vmem:[%s7832_s1 + $0x160] sm:$0xff]  }
0x11ed   :  { %4374 = vmatprep.subr.bf16.mxu1 %v8139_v22 }
0x11ee   :  { %v3506_v57 = vmul.f32 %v3502_v55, %v3496_v47  ;;  %v3515_v35 = vadd.f32 %v3512_v33, %v3505_v50 }
0x11f0   :  { %v3516_v15 = vadd.f32 %v3512_v33, %v3506_v57  ;;  %4375 = vmatpush3.bf16.msra.mxu1 %v5451_v30  ;;  %v5454_v57 = vld [vmem:[%s7832_s1 + $0x1a0] sm:$0xff]  }
0x11f1   :  { %4376 = vmatprep.subr.bf16.mxu1 %v8139_v22  ;;  %4393 = vmatpush3.bf16.msra.mxu0 %v5454_v57 }
0x11f2   :  { %v3520_v52 = vpack.c.bf16 %v3516_v15, %v3515_v35  ;;  %4394 = vmatprep.subr.bf16.mxu0 %v8139_v22  ;;  %v5455_v35 = vld [vmem:[%s7832_s1 + $0x1a8] sm:$0xff]  }
0x11f4   :  { %4365 = vmatmul.mubr.msk.bf16.gmra.mrb[76].mxu1 %vm197_vm2, %v3520_v52 }
0x11f5   :  { %4368 = vmatprep.mubr.msk.bf16.mxu1 %vm5653_vm0, %v8139_v22  ;;  %4377 = vmatpush3.bf16.msra.mxu1 %v5452_v34 }
0x11f6   :  { %4378 = vmatprep.subr.bf16.mxu1 %v8139_v22  ;;  %4395 = vmatpush3.bf16.msra.mxu0 %v5455_v35 }
0x11f7   :  { %4400 = vmatprep.subr.bf16.mxu0 %v8139_v22 }
0x11f9   :  { %4379 = vmatpush3.bf16.msra.mxu1 %v5453_v12 }
0x1273   :  { %v3471_v42 = vpop.xlane.xlu0 %3470 }
0x1274   :  { %v3479_v10 = vmul.f32 0.03125, %v3471_v42 }
0x1275   :  { %v3474_v21 = vpop.xlane.xlu1 %3473 }
0x1276   :  { %v3485_v2 = vadd.f32 1e-05, %v3479_v10  ;;  %v3480_v38 = vmul.f32 0.03125, %v3474_v21 }
0x1278   :  { %5588 = vrsqrt.f32 %v3485_v2  ;;  %v3486_v16 = vadd.f32 1e-05, %v3480_v38 }
0x127a   :  { %5590 = vrsqrt.f32 %v3486_v16 }
0x1282   :  { %v5589_v48 = vpop.eup %5588 }
0x1283   :  { %v3497_v4 = vmul.f32 %v5589_v48, %v3449_v0 }
0x1284   :  { %v5591_v26 = vpop.eup %5590 }
0x1285   :  { %v3498_v14 = vmul.f32 %v5591_v26, %v3450_v28  ;;  %v3507_v7 = vmul.f32 %v3502_v55, %v3497_v4 }
0x1287   :  { %v3508_v43 = vmul.f32 %v3502_v55, %v3498_v14  ;;  %v3517_v20 = vadd.f32 %v3512_v33, %v3507_v7 }
0x1289   :  { %v3518_v11 = vadd.f32 %v3512_v33, %v3508_v43  ;;  %v3651_v43 = vld [vmem:[%s7832_s1 + $0x198] sm:$0x1] }
0x128b   :  { %v3521_v58 = vpack.c.bf16 %v3518_v11, %v3517_v20  ;;  %v3652_v20 = vunpack.c.l.bf16 %v3651_v43 }
0x128d   :  { %4369 = vmatmul.mubr.msk.bf16.gmra.mrb[80].mxu1 %vm197_vm2, %v3521_v58 }
0x128e   :  { %4380 = vmatprep.mubr.msk.bf16.mxu1 %vm5653_vm0, %v8139_v22 }
0x12be   :  { %v3587_v1 = vpop.f32.mrb[72].mxu1 }
0x12bf   :  { %v3588_v29 = vadd.f32 %v3587_v1, %v3531_v56  ;;  %v4362_v49 = vpop.f32.mrb[73].mxu1 }
0x12c0   :  { %v3590_v32 = vpop.f32.mrb[74].mxu1 }
0x12c1   :  { %v3616_v18 = vmul.f32 0.70710677, %v3588_v29  ;;  %v3591_v23 = vadd.f32 %v3590_v32, %v3531_v56  ;;  %v4363_v37 = vpop.f32.mrb[75].mxu1  ;;  %v3610_v45 = vmul.f32 0.5, %v3588_v29 }
0x12c3   :  { %5592 = verf.f32 %v3616_v18  ;;  %v3617_v6 = vmul.f32 0.70710677, %v3591_v23  ;;  %v3611_v28 = vmul.f32 0.5, %v3591_v23 }
0x12c5   :  { %5594 = verf.f32 %v3617_v6 }
0x12c7   :  { %v3595_v55 = vpop.f32.mrb[76].mxu1 }
0x12c8   :  { %v3596_v44 = vadd.f32 %v3595_v55, %v3531_v56  ;;  %v4366_v9 = vpop.f32.mrb[77].mxu1 }
0x12c9   :  { %v3598_v63 = vpop.f32.mrb[78].mxu1 }
0x12ca   :  { %v3618_v24 = vmul.f32 0.70710677, %v3596_v44  ;;  %v3599_v39 = vadd.f32 %v3598_v63, %v3531_v56  ;;  %v4367_v0 = vpop.f32.mrb[79].mxu1  ;;  %v3612_v59 = vmul.f32 0.5, %v3596_v44 }
0x12cc   :  { %5596 = verf.f32 %v3618_v24  ;;  %v3619_v53 = vmul.f32 0.70710677, %v3599_v39  ;;  %v3613_v46 = vmul.f32 0.5, %v3599_v39 }
0x12cd   :  { %v5593_v31 = vpop.eup %5592 }
0x12ce   :  { %v3628_v33 = vadd.f32 1.0, %v5593_v31  ;;  %5598 = verf.f32 %v3619_v53  ;;  %v5458_v53 = vld [vmem:[%s7832_s1 + $0x1c8] sm:$0xff]   ;;  %v5459_v31 = vld [vmem:[%s7832_s1 + $0x1d0] sm:$0xff]  }
0x12cf   :  { %v5595_v5 = vpop.eup %5594 }
0x12d0   :  { %v3629_v3 = vadd.f32 1.0, %v5595_v5  ;;  %v3634_v17 = vmul.f32 %v3628_v33, %v3610_v45 }
0x12d2   :  { %v3635_v51 = vmul.f32 %v3629_v3, %v3611_v28  ;;  %v3751_v3 = vld [vmem:[%s7832_s1 + $0x1b0] sm:$0x1] }
0x12d4   :  { %v3640_v40 = vpack.c.bf16 %v3635_v51, %v3634_v17  ;;  %v3752_v17 = vunpack.c.l.bf16 %v3751_v3 }
0x12d6   :  { %v5597_v8 = vpop.eup %5596  ;;  %4381 = vmatmul.mubr.msk.bf16.vlgmr.msra.gmra.mrb[84].mxu1 %vm66_vm1, %v3640_v40  ;;  %v3756_v51 = vrot.slane %v3752_v17, %v8140_v19 }
0x12d7   :  { %v3630_v27 = vadd.f32 1.0, %v5597_v8  ;;  %4384 = vmatprep.mubr.msk.bf16.mxu1 %vm5653_vm0, %v8139_v22 }
0x12d8   :  { %v5599_v60 = vpop.eup %5598 }
0x12d9   :  { %v3631_v62 = vadd.f32 1.0, %v5599_v60  ;;  %v3636_v13 = vmul.f32 %v3630_v27, %v3612_v59 }
0x12db   :  { %v3637_v47 = vmul.f32 %v3631_v62, %v3613_v46 }
0x12dd   :  { %v3641_v50 = vpack.c.bf16 %v3637_v47, %v3636_v13 }
0x12df   :  { %4385 = vmatmul.mubr.msk.bf16.gmra.mrb[88].mxu1 %vm66_vm1, %v3641_v50 }
0x12e0   :  { %4388 = vmatprep.mubr.msk.bf16.mxu1 %vm5653_vm0, %v8139_v22 }
0x1360   :  { %v3603_v15 = vpop.f32.mrb[80].mxu1 }
0x1361   :  { %v3604_v52 = vadd.f32 %v3603_v15, %v3531_v56  ;;  %v4370_v54 = vpop.f32.mrb[81].mxu1 }
0x1362   :  { %v3606_v30 = vpop.f32.mrb[82].mxu1 }
0x1363   :  { %v3620_v34 = vmul.f32 0.70710677, %v3604_v52  ;;  %v3607_v12 = vadd.f32 %v3606_v30, %v3531_v56  ;;  %v4371_v42 = vpop.f32.mrb[83].mxu1  ;;  %v3614_v16 = vmul.f32 0.5, %v3604_v52  ;;  %v3656_v56 = vrot.slane %v3652_v20, %v8140_v19 }
0x1365   :  { %5600 = verf.f32 %v3620_v34  ;;  %v3621_v10 = vmul.f32 0.70710677, %v3607_v12  ;;  %v3615_v48 = vmul.f32 0.5, %v3607_v12 }
0x1367   :  { %5602 = verf.f32 %v3621_v10 }
0x136f   :  { %v5601_v21 = vpop.eup %5600 }
0x1370   :  { %v3632_v2 = vadd.f32 1.0, %v5601_v21 }
0x1371   :  { %v5603_v38 = vpop.eup %5602 }
0x1372   :  { %v3633_v4 = vadd.f32 1.0, %v5603_v38  ;;  %v3638_v26 = vmul.f32 %v3632_v2, %v3614_v16 }
0x1374   :  { %v3639_v14 = vmul.f32 %v3633_v4, %v3615_v48 }
0x1376   :  { %v3642_v7 = vpack.c.bf16 %v3639_v14, %v3638_v26 }
0x1378   :  { %4389 = vmatmul.mubr.msk.bf16.gmra.mrb[92].mxu1 %vm66_vm1, %v3642_v7 }
0x13a9   :  { %v3724_v11 = vpop.f32.mrb[84].mxu1 }
0x13aa   :  { %v4382_v58 = vpop.f32.mrb[85].mxu1  ;;  %v3725_v1 = vadd.f32 %v3724_v11, %v3656_v56 }
0x13ab   :  { %v3727_v25 = vpop.f32.mrb[86].mxu1 }
0x13ac   :  { %v4383_v36 = vpop.f32.mrb[87].mxu1  ;;  %v3743_v18 = vadd.f32 %v3725_v1, %v7687_v61  ;;  %v5456_v61 = vld [vmem:[%s7832_s1 + $0x1b8] sm:$0xff]  }
0x13ae   :  { %v3745_v55 = vpack.c.bf16 %v3743_v18, %v3743_v18 }
0x13b0   :  { %v3759_v63 = vunpack.c.l.b16 %v3745_v55 }
0x13b2   :  { %v3731_v29 = vpop.f32.mrb[88].mxu1 }
0x13b3   :  { %v4386_v49 = vpop.f32.mrb[89].mxu1 }
0x13b4   :  { %v3733_v32 = vpop.f32.mrb[90].mxu1 }
0x13b5   :  { %v3734_v23 = vadd.f32 %v3733_v32, %v3656_v56  ;;  %v4387_v37 = vpop.f32.mrb[91].mxu1 }
0x13b7   :  { %v3744_v6 = vadd.f32 %v3734_v23, %v7695_v41  ;;  %v5457_v41 = vld [vmem:[%s7832_s1 + $0x1c0] sm:$0xff]  }
0x13b9   :  { %v3746_v44 = vpack.c.bf16 %v3744_v6, %v3744_v6 }
0x13bb   :  { %v3760_v9 = vunpack.c.l.b16 %v3746_v44 }
0x13bd   :  { %v3761_v24 = vrot.slane %v3760_v9, 7 }
0x13bf   :  { %v3763_v39 = vsel %vm3762_vm4, %v3761_v24, %v3759_v63 }
0x13c0   :  { %v3764_v0 = vpack.c.b16 %v3763_v39, %v3763_v39 }
0x13c2   :  { %4397 = vmatmul.mubr.msk.bf16.vlgmr.msra.gmra.mrb[84].mxu0 %vm197_vm2, %v3764_v0 }
0x13c3   :  { %4408 = vmatprep.mubr.msk.bf16.mxu0 %vm5653_vm0, %v8139_v22  ;;  %4401 = vmatpush3.bf16.msra.mxu0 %v5456_v61 }
0x13c4   :  { %4402 = vmatprep.subr.bf16.mxu0 %v8139_v22 }
0x13c7   :  { %4403 = vmatpush3.bf16.msra.mxu0 %v5457_v41 }
0x13c8   :  { %4404 = vmatprep.subr.bf16.mxu0 %v8139_v22 }
0x13cb   :  { %4405 = vmatpush3.bf16.msra.mxu0 %v5458_v53 }
0x13cc   :  { %4406 = vmatprep.subr.bf16.mxu0 %v8139_v22  ;;  %v3830_v22 = vld [vmem:[%s7832_s1 + $0x1d8] sm:$0x1] }
0x13cd   :  { %v3831_v13 = vunpack.c.l.bf16 %v3830_v22 }
0x13cf   :  { %4407 = vmatpush3.bf16.msra.mxu0 %v5459_v31  ;;  %v3835_v47 = vrot.slane %v3831_v13, %v8140_v19 }
0x144b   :  { %v3738_v33 = vpop.f32.mrb[92].mxu1 }
0x144c   :  { %v4390_v5 = vpop.f32.mrb[93].mxu1 }
0x144d   :  { %v3740_v45 = vpop.f32.mrb[94].mxu1 }
0x144e   :  { %v4391_v28 = vpop.f32.mrb[95].mxu1 }
0x1495   :  { %v3814_v40 = vpop.f32.mrb[84].mxu0 }
0x1496   :  { %v3815_v8 = vadd.f32 %v3814_v40, %v3756_v51  ;;  %v4398_v27 = vpop.f32.mrb[85].mxu0 }
0x1497   :  { %v3817_v60 = vpop.f32.mrb[86].mxu0 }
0x1498   :  { %v3820_v59 = vmax.f32 %v3815_v8, 0.0  ;;  %v4399_v46 = vpop.f32.mrb[87].mxu0 }
0x149a   :  { %v3821_v62 = vpack.c.bf16 %v3820_v59, %v3820_v59 }
0x149c   :  { %4409 = vmatmul.mubr.msk.bf16.vlgmr.msra.gmra.mrb[88].mxu0 %vm66_vm1, %v3821_v62 }
0x156f   :  { %v3897_v50 = vpop.f32.mrb[88].mxu0 }
0x1570   :  { %v3898_v57 = vadd.f32 %v3897_v50, %v3835_v47  ;;  %v4410_v35 = vpop.f32.mrb[89].mxu0 }
0x1571   :  { %v3900_v15 = vpop.f32.mrb[90].mxu0 }
0x1572   :  { %3903 = vst [vmem:[#allocation2] sm:$0x3] %v3898_v57  ;;  %v4411_v52 = vpop.f32.mrb[91].mxu0 }
0x1573   :  { %5639 = shalt.err (!%p5636_p4)
}
0x1574   :  { %s5640_s18 = scalar_lea.hbm %s7833_s2, 32 }
0x1575   :  { %p5641_p5 = scmp.ne.s32.totalorder %s7833_s2, %s5640_s18  ;;  %p5644_p6 = scmp.lt.u32.totalorder %s5640_s18, %s7833_s2 }
0x1577   :  { %p5646_p7 = pnand %p5644_p6, %p5641_p5 }
0x1579   :  { %5649 = shalt.err (!%p5646_p7)
}
0x157a   :  { %3913 = dma.vmem_to_hbm [thread:$0]  %s3911_s15, 32, %s7833_s2, [#allocation3]  }
0x157b   :  { %5650 = dma.done.wait [#allocation3], 32  }
0x157c   :  { %5651 = vsyncadd [#allocation3], 4294967264 }
0x157d   :  { %3917 = vsyncpa [#allocation3], 1 }

</bundles_post_ra>
